<compile_context>
chip_gen: v7x
topology: tpu7x:2x2x1
jax: 0.10.0
libtpu: 0.0.40
codegen_flags: <defaults>
</compile_context>

<pallas_src>
import jax
import jax.numpy as jnp
from jax.experimental import pallas as pl
from jax.experimental.pallas import tpu as pltpu


C_IN, C_OUT, KH, KW, STRIDE = 3, 16, 3, 3, 2
K_PAD = 32                       # contraction dim padded 27 -> 32 (sublane aligned)
_TILE_BUDGET = 8 * 1024 * 1024   # double-buffered per-step input bytes


def _pick_p_tiles(p):
    """Pick the largest lane-aligned P tile whose double-buffered footprint fits."""
    if p % 128 != 0:
        return 1, p  # full-extent block is always legal
    for nt in range(1, p // 128 + 1):
        if p % nt:
            continue
        tp = p // nt
        if tp % 128:
            continue
        # patches (K_PAD x tp) + linear weight (C_OUT x tp), bf16, double buffered
        if (K_PAD + C_OUT) * tp * 2 * 2 <= _TILE_BUDGET:
            return nt, tp
    return p // 128, 128


def _fused_kernel(p_ref, wc_ref, bc_ref, wl_ref, o_ref):
    # p_ref : (1, 32, TP)  bf16  im2col patches tile (K padded with zeros)
    # wc_ref: (16, 32)     bf16  conv weight (resident across the whole grid)
    # bc_ref: (16, 1)      f32   conv bias (resident)
    # wl_ref: (16, TP)     bf16  linear-weight tile (NCHW flatten order)
    # o_ref : (1, 1, 1)    f32   per-batch scalar accumulator (revisited over j)
    @pl.when(pl.program_id(1) == 0)
    def _init():
        o_ref[...] = jnp.zeros_like(o_ref)

    # Conv as MXU matmul: (16, 32) @ (32, TP) with f32 accumulation.
    y = jnp.dot(wc_ref[...], p_ref[0], preferred_element_type=jnp.float32)
    y = jnp.maximum(y + bc_ref[...], 0.0)                        # bias + ReLU

    # Flatten + Linear: elementwise mul, lane-axis reduce first, then 16 -> 1.
    prod = y * wl_ref[...].astype(jnp.float32)                   # (16, TP) f32
    lane_sums = jnp.sum(prod, axis=-1, keepdims=True)            # (16, 1)
    o_ref[...] += jnp.sum(lane_sums)                             # scalar accumulate


@jax.jit
def aesthetic_forward(x, conv_w, conv_b, lin_w, lin_b):
    """x: (N, 3, H, W) float32 (NCHW).  Returns (N, 1) float32."""
    N, C, H, W = x.shape
    Ho = (H - KH) // STRIDE + 1
    Wo = (W - KW) // STRIDE + 1
    P = Ho * Wo
    K = C * KH * KW  # 27

    # ---- glue: fused bf16 im2col (single XLA fusion, half the f32 bytes) ----
    x_b = x.astype(jnp.bfloat16)
    cols = []
    for kh in range(KH):
        for kw in range(KW):
            cols.append(
                x_b[:, :, kh:kh + STRIDE * (Ho - 1) + 1:STRIDE,
                          kw:kw + STRIDE * (Wo - 1) + 1:STRIDE])     # (N, C, Ho, Wo)
    patches = jnp.stack(cols, axis=2).reshape(N, K, P)               # (N, 27, P)
    patches = jnp.concatenate(
        [patches, jnp.zeros((N, K_PAD - K, P), jnp.bfloat16)], axis=1)  # (N, 32, P)

    wc2 = jnp.concatenate(
        [conv_w.reshape(C_OUT, K),
         jnp.zeros((C_OUT, K_PAD - K), conv_w.dtype)], axis=1
    ).astype(jnp.bfloat16)                                           # (16, 32)
    bc2 = conv_b.reshape(C_OUT, 1)                                   # (16, 1) f32
    # PyTorch flatten of (N, 16, Ho, Wo) gives feature index c*P + (ho*Wo + wo),
    # so lin_w reshaped to (16, P) lines up with y's (channel, spatial) axes.
    wl2 = lin_w.reshape(C_OUT, P).astype(jnp.bfloat16)               # (16, P)

    n_tiles, TP = _pick_p_tiles(P)

    out = pl.pallas_call(
        _fused_kernel,
        out_shape=jax.ShapeDtypeStruct((N, 1, 1), jnp.float32),
        grid=(N, n_tiles),
        in_specs=[
            pl.BlockSpec((1, K_PAD, TP), lambda n, j: (n, 0, j)),    # patches tile
            pl.BlockSpec((C_OUT, K_PAD), lambda n, j: (0, 0)),       # conv weight
            pl.BlockSpec((C_OUT, 1), lambda n, j: (0, 0)),           # conv bias
            pl.BlockSpec((C_OUT, TP), lambda n, j: (0, j)),          # linear-weight tile
        ],
        out_specs=pl.BlockSpec((1, 1, 1), lambda n, j: (n, 0, 0)),
        compiler_params=pltpu.CompilerParams(
            dimension_semantics=("parallel", "arbitrary")),
    )(patches, wc2, bc2, wl2)

    # Linear bias added outside the kernel.
    return out.reshape(N, 1) + lin_b[None, :]


def _reference(x, conv_w, conv_b, lin_w, lin_b):
    """Pure-JAX reference mirroring the PyTorch forward."""
    y = jax.lax.conv_general_dilated(
        x, conv_w, window_strides=(STRIDE, STRIDE), padding="VALID",
        dimension_numbers=("NCHW", "OIHW", "NCHW"),
        precision=jax.lax.Precision.HIGHEST)
    y = jnp.maximum(y + conv_b[None, :, None, None], 0.0)
    y = y.reshape(x.shape[0], -1)                      # NCHW flatten
    return y @ lin_w.T + lin_b[None, :]


if __name__ == "__main__":
    key = jax.random.PRNGKey(0)
    k_x, k_wc, k_bc, k_wl, k_bl = jax.random.split(key, 5)

    # Smallest shapes consistent with Linear(401408, 1): 16 * 112 * 224 = 401408
    N, H, W = 2, 225, 449
    Ho, Wo = (H - KH) // STRIDE + 1, (W - KW) // STRIDE + 1
    in_features = C_OUT * Ho * Wo
    assert in_features == 401408

    x = jax.random.normal(k_x, (N, C_IN, H, W), dtype=jnp.float32)

    # Deterministic synthetic parameters (not a checkpoint load)
    conv_w = 0.1 * jax.random.normal(k_wc, (C_OUT, C_IN, KH, KW), dtype=jnp.float32)
    conv_b = 0.05 * jax.random.normal(k_bc, (C_OUT,), dtype=jnp.float32)
    lin_w = jax.random.normal(k_wl, (1, in_features), dtype=jnp.float32) / jnp.sqrt(
        jnp.float32(in_features))
    lin_b = 0.01 * jax.random.normal(k_bl, (1,), dtype=jnp.float32)

    out = aesthetic_forward(x, conv_w, conv_b, lin_w, lin_b)
    out = jax.block_until_ready(out)

    ref = jax.block_until_ready(_reference(x, conv_w, conv_b, lin_w, lin_b))
    assert out.shape == (N, 1), out.shape
    assert bool(jnp.allclose(out, ref, rtol=5e-2, atol=1e-2)), (out, ref)

    print("KERNEL_OK")
</pallas_src>

<mosaic_0001>
module attributes {stable_mosaic.version = 11 : i64} {
  func.func @_fused_kernel(%arg0: i32, %arg1: i32, %arg2: memref<1x32x25088xbf16, #tpu.memory_space<vmem>>, %arg3: memref<16x32xbf16, #tpu.memory_space<vmem>>, %arg4: memref<16x1xf32, #tpu.memory_space<vmem>>, %arg5: memref<16x25088xbf16, #tpu.memory_space<vmem>>, %arg6: memref<1x1x1xf32, #tpu.memory_space<vmem>>) attributes {dimension_semantics = [#tpu.dimension_semantics<parallel>, #tpu.dimension_semantics<arbitrary>], iteration_bounds = array<i64: 2, 1>, scalar_prefetch = 0 : i64, scratch_operands = 0 : i64, tpu.core_type = #tpu.core_type<tc>, window_params = [{transform_indices = @transform_0, window_bounds = array<i64: 1, 32, 25088>}, {pipeline_mode = #tpu.pipeline_mode<synchronous>, transform_indices = @transform_1, window_bounds = array<i64: 16, 32>}, {pipeline_mode = #tpu.pipeline_mode<synchronous>, transform_indices = @transform_2, window_bounds = array<i64: 16, 1>}, {transform_indices = @transform_3, window_bounds = array<i64: 16, 25088>}, {transform_indices = @transform_4, window_bounds = array<i64: 1, 1, 1>}]} {
    %c0_i32 = arith.constant 0 : i32
    %0 = arith.cmpi eq, %arg1, %c0_i32 : i32
    %1 = arith.extui %0 : i1 to i32
    %c0_i32_0 = arith.constant 0 : i32
    %2 = arith.cmpi ne, %1, %c0_i32_0 : i32
    scf.if %2 {
      %cst_18 = arith.constant 0.000000e+00 : f32
      %25 = vector.broadcast %cst_18 : f32 to vector<1x1x1xf32>
      %c0_19 = arith.constant 0 : index
      %c0_20 = arith.constant 0 : index
      %c0_21 = arith.constant 0 : index
      %26 = vector.load %arg6[%c0_19, %c0_20, %c0_21] : memref<1x1x1xf32, #tpu.memory_space<vmem>>, vector<1x1x1xf32>
      tpu.vector_store %arg6[%c0_19, %c0_20, %c0_21], %25 {strides = array<i32>} : memref<1x1x1xf32, #tpu.memory_space<vmem>>, vector<1x1x1xf32>,
    } else {
    }
    %c0 = arith.constant 0 : index
    %c0_1 = arith.constant 0 : index
    %3 = vector.load %arg3[%c0, %c0_1] : memref<16x32xbf16, #tpu.memory_space<vmem>>, vector<16x32xbf16>
    %c0_2 = arith.constant 0 : index
    %c0_3 = arith.constant 0 : index
    %c0_4 = arith.constant 0 : index
    %4 = vector.load %arg2[%c0_2, %c0_3, %c0_4] : memref<1x32x25088xbf16, #tpu.memory_space<vmem>>, vector<1x32x25088xbf16>
    %5 = vector.shape_cast %4 : vector<1x32x25088xbf16> to vector<32x25088xbf16>
    %cst = arith.constant dense<0.000000e+00> : vector<16x25088xf32>
    %6 = tpu.matmul %3, %5, %cst {dimension_numbers = #tpu.dot_dimension_numbers<[1], [0], [0], [1], [0, 0, 1, 1], [], []>} : vector<16x32xbf16>, vector<32x25088xbf16>, vector<16x25088xf32> -> vector<16x25088xf32>
    %c0_5 = arith.constant 0 : index
    %c0_6 = arith.constant 0 : index
    %7 = vector.load %arg4[%c0_5, %c0_6] : memref<16x1xf32, #tpu.memory_space<vmem>>, vector<16x1xf32>
    %8 = vector.broadcast %7 : vector<16x1xf32> to vector<16x25088xf32>
    %9 = arith.addf %6, %8 : vector<16x25088xf32>
    %cst_7 = arith.constant 0.000000e+00 : f32
    %10 = vector.broadcast %cst_7 : f32 to vector<16x25088xf32>
    %11 = arith.maximumf %9, %10 : vector<16x25088xf32>
    %c0_8 = arith.constant 0 : index
    %c0_9 = arith.constant 0 : index
    %12 = vector.load %arg5[%c0_8, %c0_9] : memref<16x25088xbf16, #tpu.memory_space<vmem>>, vector<16x25088xbf16>
    %13 = arith.extf %12 : vector<16x25088xbf16> to vector<16x25088xf32>
    %14 = arith.mulf %11, %13 : vector<16x25088xf32>
    %cst_10 = arith.constant dense<0.000000e+00> : vector<16xf32>
    %15 = vector.multi_reduction <add>, %14, %cst_10 [1] : vector<16x25088xf32> to vector<16xf32>
    %16 = vector.shape_cast %15 : vector<16xf32> to vector<16x1xf32>
    %c0_11 = arith.constant 0 : index
    %c0_12 = arith.constant 0 : index
    %c0_13 = arith.constant 0 : index
    %17 = vector.load %arg6[%c0_11, %c0_12, %c0_13] : memref<1x1x1xf32, #tpu.memory_space<vmem>>, vector<1x1x1xf32>
    %18 = vector.shape_cast %16 : vector<16x1xf32> to vector<1x16x1xf32>
    %cst_14 = arith.constant dense<0.000000e+00> : vector<1xf32>
    %19 = vector.multi_reduction <add>, %18, %cst_14 [1, 2] : vector<1x16x1xf32> to vector<1xf32>
    %20 = vector.shape_cast %19 : vector<1xf32> to vector<1x1x1xf32>
    %21 = vector.extract %20[0, 0, 0] : f32 from vector<1x1x1xf32>
    %22 = vector.broadcast %21 : f32 to vector<1x1x1xf32>
    %23 = arith.addf %17, %22 : vector<1x1x1xf32>
    %c0_15 = arith.constant 0 : index
    %c0_16 = arith.constant 0 : index
    %c0_17 = arith.constant 0 : index
    %24 = vector.load %arg6[%c0_15, %c0_16, %c0_17] : memref<1x1x1xf32, #tpu.memory_space<vmem>>, vector<1x1x1xf32>
    tpu.vector_store %arg6[%c0_15, %c0_16, %c0_17], %23 {strides = array<i32>} : memref<1x1x1xf32, #tpu.memory_space<vmem>>, vector<1x1x1xf32>,
    return
  }
  func.func @transform_0(%arg0: i32, %arg1: i32) -> (i32, i32, i32) {
    %c0_i32 = arith.constant 0 : i32
    %c0_i32_0 = arith.constant 0 : i32
    return %arg0, %c0_i32, %arg1 : i32, i32, i32
  }
  func.func @transform_1(%arg0: i32, %arg1: i32) -> (i32, i32) {
    %c0_i32 = arith.constant 0 : i32
    %c0_i32_0 = arith.constant 0 : i32
    %c0_i32_1 = arith.constant 0 : i32
    return %c0_i32, %c0_i32_0 : i32, i32
  }
  func.func @transform_2(%arg0: i32, %arg1: i32) -> (i32, i32) {
    %c0_i32 = arith.constant 0 : i32
    %c0_i32_0 = arith.constant 0 : i32
    %c0_i32_1 = arith.constant 0 : i32
    return %c0_i32, %c0_i32_0 : i32, i32
  }
  func.func @transform_3(%arg0: i32, %arg1: i32) -> (i32, i32) {
    %c0_i32 = arith.constant 0 : i32
    %c0_i32_0 = arith.constant 0 : i32
    return %c0_i32, %arg1 : i32, i32
  }
  func.func @transform_4(%arg0: i32, %arg1: i32) -> (i32, i32, i32) {
    %c0_i32 = arith.constant 0 : i32
    %c0_i32_0 = arith.constant 0 : i32
    %c0_i32_1 = arith.constant 0 : i32
    return %arg0, %c0_i32, %c0_i32_0 : i32, i32, i32
  }
}

</mosaic_0001>

<bundles_post_ra>
// kernel: aesthetic_forward.1
= control target key start
LH: loop header
LB: loop body
LE: loop exit
PB: predicated region body
PF: predicated region fallthrough
CT: control target
= control target key end

     0   :  { %s9877_s15 = smov 0   ;;  %s9879_s16 = smov 0   ;;  %s12951_s0 = inlined_call_operand.vmem [shape: bf16[2,32,25088], index: 0, kind: input, shape index: {}]   ;;  %s12952_s1 = inlined_call_operand.vmem [shape: bf16[16,32], index: 1, kind: input, shape index: {}]   ;;  %s12953_s2 = inlined_call_operand.vmem [shape: f32[16,1], index: 2, kind: input, shape index: {}]   ;;  %s12954_s3 = inlined_call_operand.vmem [shape: bf16[16,25088], index: 3, kind: input, shape index: {}]   ;;  %s12955_s4 = inlined_call_operand.vmem [shape: f32[2,1,1], index: 4, kind: output, shape index: {}]  }
   0x1   :  { %s9881_s17 = smov 0  }
   0x2 LB: > { %s26_s18 = sadd.s32 1, %s9844_s16  ;;  %p8706_p0 = scmp.ge.s32.totalorder %s9848_s17, 1  ;;  %s9848_s17 = sphi %s9881_s17, %s14_s17   ;;  %s9844_s16 = sphi %s9879_s16, %s13207_s16   ;;  %s9840_s15 = sphi %s9877_s15, %s13206_s15  }
   0x3   : > { %p28_p1 = scmp.ge.s32.totalorder %s26_s18, 2  ;;  %p192_p2 = scmp.lt.s32.totalorder %s9848_s17, 3 }
   0x5   : > { %s13209_s18 = smov (%p28_p1, %s26_s18), 0  ;;  %p193_p3 = pnand %p8706_p0, %p192_p2 }
   0x7   : > { %196 = sbr.rel (%p193_p3) target bundleno = 1092 (0x444), region = 36 }
   0xe   : > { %p226_p4 = scmp.lt.s32.totalorder %s9840_s15, 1  ;;  %v12964_v0 = vmov 0   ;;  %v645_v1 = vld [vmem:[%s12953_s2] sm:$0xff]  ;;  %v646_v2 = vld [vmem:[%s12953_s2 + $0x8] sm:$0xff]  ;;  %vm2622_vm0 = vcmask 261120   ;;  %vm8607_vm1 = vcmask 7168  }
   0xf   : > { %2658 = vmatprep.mubr.bf16.mxu0 %v12964_v0  ;;  %2701 = vmatprep.mubr.bf16.mxu1 %v12964_v0  ;;  %v9923_v11 = vld [vmem:[%s12952_s1] sm:$0xff]   ;;  %vm249_vm2 = vcmask 0  }
  0x10   : > { %s13211_s15 = smov (!%p226_p4, %s9840_s15), 1  ;;  %9230 = vset.pattern.permute.xlu0 %v12964_v0 }
  0x11   : > { %649 = vperm.xlu0 %9230, %v645_v1   ;;  %s9201_s21 = smul.u32 3136, %s13211_s15  ;;  %s243_s24 = scalar_lea.vmem %s12955_s4, %s13211_s15 }
  0x13   : > { %s9910_s26 = scalar_lea.vmem %s12951_s0, %s9201_s21 }
  0x14   : > { %v9231_v3 = vld [vmem:[%s9910_s26 + $0x4] ss:$784 sps:$4 sm:$0xff]   ;;  %v9233_v4 = vld [vmem:[%s9910_s26 + $0xc] ss:$784 sps:$4 sm:$0xff]   ;;  %v9235_v5 = vld [vmem:[%s9910_s26] ss:$784 sps:$4 sm:$0xff]  }
  0x15   : > { %654 = vperm.xlu0 %9230, %v646_v2   ;;  %2626 = vmatprep.subr.bf16.mxu0 %v9231_v3  ;;  %v9236_v6 = vld [vmem:[%s9910_s26 + $0x8] ss:$784 sps:$4 sm:$0xff]   ;;  %v9237_v7 = vld [vmem:[%s9910_s26 + $0x624] ss:$784 sps:$4 sm:$0xff]   ;;  %v9239_v8 = vld [vmem:[%s9910_s26 + $0x62c] ss:$784 sps:$4 sm:$0xff]  }
  0x16   : > { %2669 = vmatprep.subr.bf16.mxu1 %v9233_v4  ;;  %2627 = vmatpush1.bf16.msra.mxu0 %v9235_v5  ;;  %v9241_v9 = vld [vmem:[%s9910_s26 + $0x620] ss:$784 sps:$4 sm:$0xff]   ;;  %v9242_v10 = vld [vmem:[%s9910_s26 + $0x628] ss:$784 sps:$4 sm:$0xff]   ;;  %v9246_v12 = vld [vmem:[%s9910_s26 + $0x14] ss:$784 sps:$4 sm:$0xff]  }
  0x17   : > { %2670 = vmatpush1.bf16.msra.mxu1 %v9236_v6  ;;  %2628 = vmatprep.subr.bf16.mxu0 %v9237_v7  ;;  %v9244_v13 = vld [vmem:[%s9910_s26 + $0x10] ss:$784 sps:$4 sm:$0xff]   ;;  %v9249_v14 = vld [vmem:[%s9910_s26 + $0x1c] ss:$784 sps:$4 sm:$0xff]   ;;  %v9247_v15 = vld [vmem:[%s9910_s26 + $0x18] ss:$784 sps:$4 sm:$0xff]  }
  0x18   : > { %2671 = vmatprep.subr.bf16.mxu1 %v9239_v8  ;;  %v9252_v16 = vld [vmem:[%s9910_s26 + $0x634] ss:$784 sps:$4 sm:$0xff]   ;;  %v9255_v17 = vld [vmem:[%s9910_s26 + $0x63c] ss:$784 sps:$4 sm:$0xff]   ;;  %v9250_v18 = vld [vmem:[%s9910_s26 + $0x630] ss:$784 sps:$4 sm:$0xff]  }
  0x19   : > { %v9253_v19 = vld [vmem:[%s9910_s26 + $0x638] ss:$784 sps:$4 sm:$0xff]   ;;  %v9258_v20 = vld [vmem:[%s9910_s26 + $0x24] ss:$784 sps:$4 sm:$0xff]   ;;  %v9261_v21 = vld [vmem:[%s9910_s26 + $0x2c] ss:$784 sps:$4 sm:$0xff]  }
  0x1a   : > { %2629 = vmatpush1.bf16.msra.mxu0 %v9241_v9  ;;  %v9256_v22 = vld [vmem:[%s9910_s26 + $0x20] ss:$784 sps:$4 sm:$0xff]   ;;  %v9259_v23 = vld [vmem:[%s9910_s26 + $0x28] ss:$784 sps:$4 sm:$0xff]   ;;  %v9264_v24 = vld [vmem:[%s9910_s26 + $0x644] ss:$784 sps:$4 sm:$0xff]  }
  0x1b   : > { %2672 = vmatpush1.bf16.msra.mxu1 %v9242_v10  ;;  %2712 = vmatprep.subr.bf16.mxu0 %v9246_v12  ;;  %v9267_v25 = vld [vmem:[%s9910_s26 + $0x64c] ss:$784 sps:$4 sm:$0xff]   ;;  %v9262_v26 = vld [vmem:[%s9910_s26 + $0x640] ss:$784 sps:$4 sm:$0xff]   ;;  %v9265_v27 = vld [vmem:[%s9910_s26 + $0x648] ss:$784 sps:$4 sm:$0xff]  }
  0x1c   : > { %2755 = vmatprep.subr.bf16.mxu1 %v9249_v14  ;;  %v9270_v28 = vld [vmem:[%s9910_s26 + $0x34] ss:$784 sps:$4 sm:$0xff]   ;;  %v9273_v29 = vld [vmem:[%s9910_s26 + $0x3c] ss:$784 sps:$4 sm:$0xff]   ;;  %v9268_v30 = vld [vmem:[%s9910_s26 + $0x30] ss:$784 sps:$4 sm:$0xff]  }
  0x1d   : > { %9101 = vmatmul.mubr.msk.bf16.vlgmr.msra.gmra.mrb[0].mxu0 %vm2622_vm0, %v9923_v11  ;;  %v9271_v31 = vld [vmem:[%s9910_s26 + $0x38] ss:$784 sps:$4 sm:$0xff]   ;;  %v9276_v32 = vld [vmem:[%s9910_s26 + $0x654] ss:$784 sps:$4 sm:$0xff]   ;;  %v9279_v33 = vld [vmem:[%s9910_s26 + $0x65c] ss:$784 sps:$4 sm:$0xff]  }
  0x1e   : > { %9102 = vmatmul.mubr.msk.bf16.vlgmr.msra.gmra.mrb[0].mxu1 %vm2622_vm0, %v9923_v11  ;;  %2713 = vmatpush1.bf16.msra.mxu0 %v9244_v13  ;;  %v9274_v34 = vld [vmem:[%s9910_s26 + $0x650] ss:$784 sps:$4 sm:$0xff]   ;;  %v9277_v35 = vld [vmem:[%s9910_s26 + $0x658] ss:$784 sps:$4 sm:$0xff]   ;;  %v9282_v36 = vld [vmem:[%s9910_s26 + $0x44] ss:$784 sps:$4 sm:$0xff]  }
  0x1f   : > { %2756 = vmatpush1.bf16.msra.mxu1 %v9247_v15  ;;  %2714 = vmatprep.subr.bf16.mxu0 %v9252_v16  ;;  %v9285_v37 = vld [vmem:[%s9910_s26 + $0x4c] ss:$784 sps:$4 sm:$0xff]   ;;  %v9280_v38 = vld [vmem:[%s9910_s26 + $0x40] ss:$784 sps:$4 sm:$0xff]   ;;  %v9283_v39 = vld [vmem:[%s9910_s26 + $0x48] ss:$784 sps:$4 sm:$0xff]  }
  0x20   : > { %2757 = vmatprep.subr.bf16.mxu1 %v9255_v17  ;;  %2744 = vmatprep.mubr.bf16.mxu0 %v12964_v0  ;;  %v9288_v40 = vld [vmem:[%s9910_s26 + $0x664] ss:$784 sps:$4 sm:$0xff]   ;;  %v9291_v41 = vld [vmem:[%s9910_s26 + $0x66c] ss:$784 sps:$4 sm:$0xff]   ;;  %v9286_v42 = vld [vmem:[%s9910_s26 + $0x660] ss:$784 sps:$4 sm:$0xff]  }
  0x21   : > { %2787 = vmatprep.mubr.bf16.mxu1 %v12964_v0  ;;  %v9289_v43 = vld [vmem:[%s9910_s26 + $0x668] ss:$784 sps:$4 sm:$0xff]   ;;  %v9294_v44 = vld [vmem:[%s9910_s26 + $0x54] ss:$784 sps:$4 sm:$0xff]   ;;  %v9297_v45 = vld [vmem:[%s9910_s26 + $0x5c] ss:$784 sps:$4 sm:$0xff]  }
  0x22   : > { %2715 = vmatpush1.bf16.msra.mxu0 %v9250_v18  ;;  %v9292_v46 = vld [vmem:[%s9910_s26 + $0x50] ss:$784 sps:$4 sm:$0xff]   ;;  %v9295_v47 = vld [vmem:[%s9910_s26 + $0x58] ss:$784 sps:$4 sm:$0xff]   ;;  %v9300_v48 = vld [vmem:[%s9910_s26 + $0x674] ss:$784 sps:$4 sm:$0xff]  }
  0x23   : > { %2758 = vmatpush1.bf16.msra.mxu1 %v9253_v19  ;;  %2798 = vmatprep.subr.bf16.mxu0 %v9258_v20  ;;  %v9303_v49 = vld [vmem:[%s9910_s26 + $0x67c] ss:$784 sps:$4 sm:$0xff]   ;;  %v9298_v50 = vld [vmem:[%s9910_s26 + $0x670] ss:$784 sps:$4 sm:$0xff]   ;;  %v9301_v51 = vld [vmem:[%s9910_s26 + $0x678] ss:$784 sps:$4 sm:$0xff]  }
  0x24   : > { %2841 = vmatprep.subr.bf16.mxu1 %v9261_v21  ;;  %v9306_v52 = vld [vmem:[%s9910_s26 + $0x64] ss:$784 sps:$4 sm:$0xff]   ;;  %v9309_v53 = vld [vmem:[%s9910_s26 + $0x6c] ss:$784 sps:$4 sm:$0xff]   ;;  %v9304_v54 = vld [vmem:[%s9910_s26 + $0x60] ss:$784 sps:$4 sm:$0xff]  }
  0x25   : > { %9103 = vmatmul.mubr.msk.bf16.vlgmr.msra.gmra.mrb[4].mxu0 %vm2622_vm0, %v9923_v11  ;;  %v9307_v55 = vld [vmem:[%s9910_s26 + $0x68] ss:$784 sps:$4 sm:$0xff]   ;;  %v9312_v56 = vld [vmem:[%s9910_s26 + $0x684] ss:$784 sps:$4 sm:$0xff]   ;;  %v9315_v57 = vld [vmem:[%s9910_s26 + $0x68c] ss:$784 sps:$4 sm:$0xff]  }
  0x26   : > { %9104 = vmatmul.mubr.msk.bf16.vlgmr.msra.gmra.mrb[4].mxu1 %vm2622_vm0, %v9923_v11  ;;  %2799 = vmatpush1.bf16.msra.mxu0 %v9256_v22  ;;  %v9310_v58 = vld [vmem:[%s9910_s26 + $0x680] ss:$784 sps:$4 sm:$0xff]   ;;  %v9313_v59 = vld [vmem:[%s9910_s26 + $0x688] ss:$784 sps:$4 sm:$0xff]   ;;  %v9318_v60 = vld [vmem:[%s9910_s26 + $0x74] ss:$784 sps:$4 sm:$0xff]  }
  0x27   : > { %2842 = vmatpush1.bf16.msra.mxu1 %v9259_v23  ;;  %2800 = vmatprep.subr.bf16.mxu0 %v9264_v24  ;;  %v9321_v61 = vld [vmem:[%s9910_s26 + $0x7c] ss:$784 sps:$4 sm:$0xff]   ;;  %v9316_v62 = vld [vmem:[%s9910_s26 + $0x70] ss:$784 sps:$4 sm:$0xff]   ;;  %v9319_v63 = vld [vmem:[%s9910_s26 + $0x78] ss:$784 sps:$4 sm:$0xff]  }
  0x28   : > { %2843 = vmatprep.subr.bf16.mxu1 %v9267_v25  ;;  %2830 = vmatprep.mubr.bf16.mxu0 %v12964_v0  ;;  %v9324_v1 = vld [vmem:[%s9910_s26 + $0x694] ss:$784 sps:$4 sm:$0xff]   ;;  %v9327_v2 = vld [vmem:[%s9910_s26 + $0x69c] ss:$784 sps:$4 sm:$0xff]   ;;  %v9322_v3 = vld [vmem:[%s9910_s26 + $0x690] ss:$784 sps:$4 sm:$0xff]  }
  0x29   : > { %2873 = vmatprep.mubr.bf16.mxu1 %v12964_v0  ;;  %v9325_v4 = vld [vmem:[%s9910_s26 + $0x698] ss:$784 sps:$4 sm:$0xff]   ;;  %v9330_v5 = vld [vmem:[%s9910_s26 + $0x84] ss:$784 sps:$4 sm:$0xff]   ;;  %v9333_v6 = vld [vmem:[%s9910_s26 + $0x8c] ss:$784 sps:$4 sm:$0xff]  }
  0x2a   : > { %2801 = vmatpush1.bf16.msra.mxu0 %v9262_v26  ;;  %v9328_v7 = vld [vmem:[%s9910_s26 + $0x80] ss:$784 sps:$4 sm:$0xff]   ;;  %v9331_v8 = vld [vmem:[%s9910_s26 + $0x88] ss:$784 sps:$4 sm:$0xff]   ;;  %v9336_v9 = vld [vmem:[%s9910_s26 + $0x6a4] ss:$784 sps:$4 sm:$0xff]  }
  0x2b   : > { %2844 = vmatpush1.bf16.msra.mxu1 %v9265_v27  ;;  %2884 = vmatprep.subr.bf16.mxu0 %v9270_v28  ;;  %v9339_v10 = vld [vmem:[%s9910_s26 + $0x6ac] ss:$784 sps:$4 sm:$0xff]   ;;  %v9334_v12 = vld [vmem:[%s9910_s26 + $0x6a0] ss:$784 sps:$4 sm:$0xff]   ;;  %v9337_v13 = vld [vmem:[%s9910_s26 + $0x6a8] ss:$784 sps:$4 sm:$0xff]  }
  0x2c   : > { %2927 = vmatprep.subr.bf16.mxu1 %v9273_v29  ;;  %v9342_v14 = vld [vmem:[%s9910_s26 + $0x94] ss:$784 sps:$4 sm:$0xff]   ;;  %v9345_v15 = vld [vmem:[%s9910_s26 + $0x9c] ss:$784 sps:$4 sm:$0xff]   ;;  %v9340_v16 = vld [vmem:[%s9910_s26 + $0x90] ss:$784 sps:$4 sm:$0xff]  }
  0x2d   : > { %9105 = vmatmul.mubr.msk.bf16.vlgmr.msra.gmra.mrb[8].mxu0 %vm2622_vm0, %v9923_v11  ;;  %v9343_v17 = vld [vmem:[%s9910_s26 + $0x98] ss:$784 sps:$4 sm:$0xff]   ;;  %v9348_v18 = vld [vmem:[%s9910_s26 + $0x6b4] ss:$784 sps:$4 sm:$0xff]   ;;  %v9351_v19 = vld [vmem:[%s9910_s26 + $0x6bc] ss:$784 sps:$4 sm:$0xff]  }
  0x2e   : > { %9106 = vmatmul.mubr.msk.bf16.vlgmr.msra.gmra.mrb[8].mxu1 %vm2622_vm0, %v9923_v11  ;;  %2885 = vmatpush1.bf16.msra.mxu0 %v9268_v30  ;;  %v9346_v20 = vld [vmem:[%s9910_s26 + $0x6b0] ss:$784 sps:$4 sm:$0xff]   ;;  %v9349_v21 = vld [vmem:[%s9910_s26 + $0x6b8] ss:$784 sps:$4 sm:$0xff]   ;;  %v9354_v22 = vld [vmem:[%s9910_s26 + $0xa4] ss:$784 sps:$4 sm:$0xff]  }
  0x2f   : > { %2928 = vmatpush1.bf16.msra.mxu1 %v9271_v31  ;;  %2886 = vmatprep.subr.bf16.mxu0 %v9276_v32  ;;  %v9357_v23 = vld [vmem:[%s9910_s26 + $0xac] ss:$784 sps:$4 sm:$0xff]   ;;  %v9352_v24 = vld [vmem:[%s9910_s26 + $0xa0] ss:$784 sps:$4 sm:$0xff]   ;;  %v9355_v25 = vld [vmem:[%s9910_s26 + $0xa8] ss:$784 sps:$4 sm:$0xff]  }
  0x30   : > { %2929 = vmatprep.subr.bf16.mxu1 %v9279_v33  ;;  %2916 = vmatprep.mubr.bf16.mxu0 %v12964_v0  ;;  %v9360_v26 = vld [vmem:[%s9910_s26 + $0x6c4] ss:$784 sps:$4 sm:$0xff]   ;;  %v9363_v27 = vld [vmem:[%s9910_s26 + $0x6cc] ss:$784 sps:$4 sm:$0xff]   ;;  %v9358_v28 = vld [vmem:[%s9910_s26 + $0x6c0] ss:$784 sps:$4 sm:$0xff]  }
  0x31   : > { %2959 = vmatprep.mubr.bf16.mxu1 %v12964_v0  ;;  %v9361_v29 = vld [vmem:[%s9910_s26 + $0x6c8] ss:$784 sps:$4 sm:$0xff]   ;;  %v9366_v30 = vld [vmem:[%s9910_s26 + $0xb4] ss:$784 sps:$4 sm:$0xff]   ;;  %v9369_v31 = vld [vmem:[%s9910_s26 + $0xbc] ss:$784 sps:$4 sm:$0xff]  }
  0x32   : > { %2887 = vmatpush1.bf16.msra.mxu0 %v9274_v34  ;;  %v9364_v32 = vld [vmem:[%s9910_s26 + $0xb0] ss:$784 sps:$4 sm:$0xff]   ;;  %v9367_v33 = vld [vmem:[%s9910_s26 + $0xb8] ss:$784 sps:$4 sm:$0xff]   ;;  %v9372_v34 = vld [vmem:[%s9910_s26 + $0x6d4] ss:$784 sps:$4 sm:$0xff]  }
  0x33   : > { %2930 = vmatpush1.bf16.msra.mxu1 %v9277_v35  ;;  %2970 = vmatprep.subr.bf16.mxu0 %v9282_v36  ;;  %v9375_v35 = vld [vmem:[%s9910_s26 + $0x6dc] ss:$784 sps:$4 sm:$0xff]   ;;  %v9370_v36 = vld [vmem:[%s9910_s26 + $0x6d0] ss:$784 sps:$4 sm:$0xff]  }
  0x34   : > { %3013 = vmatprep.subr.bf16.mxu1 %v9285_v37  ;;  %v9373_v37 = vld [vmem:[%s9910_s26 + $0x6d8] ss:$784 sps:$4 sm:$0xff]  }
  0x35   : > { %9107 = vmatmul.mubr.msk.bf16.vlgmr.msra.gmra.mrb[12].mxu0 %vm2622_vm0, %v9923_v11 }
  0x36   : > { %9108 = vmatmul.mubr.msk.bf16.vlgmr.msra.gmra.mrb[12].mxu1 %vm2622_vm0, %v9923_v11  ;;  %2971 = vmatpush1.bf16.msra.mxu0 %v9280_v38  ;;  %v9378_v38 = vld [vmem:[%s9910_s26 + $0xc4] ss:$784 sps:$4 sm:$0xff]  }
  0x37   : > { %3014 = vmatpush1.bf16.msra.mxu1 %v9283_v39  ;;  %2972 = vmatprep.subr.bf16.mxu0 %v9288_v40  ;;  %v9381_v39 = vld [vmem:[%s9910_s26 + $0xcc] ss:$784 sps:$4 sm:$0xff]   ;;  %v9376_v40 = vld [vmem:[%s9910_s26 + $0xc0] ss:$784 sps:$4 sm:$0xff]  }
  0x38   : > { %3015 = vmatprep.subr.bf16.mxu1 %v9291_v41  ;;  %3002 = vmatprep.mubr.bf16.mxu0 %v12964_v0  ;;  %v9379_v41 = vld [vmem:[%s9910_s26 + $0xc8] ss:$784 sps:$4 sm:$0xff]  }
  0x39   : > { %3045 = vmatprep.mubr.bf16.mxu1 %v12964_v0 }
  0x3a   : > { %2973 = vmatpush1.bf16.msra.mxu0 %v9286_v42  ;;  %v9384_v42 = vld [vmem:[%s9910_s26 + $0x6e4] ss:$784 sps:$4 sm:$0xff]  }
  0x3b   : > { %3016 = vmatpush1.bf16.msra.mxu1 %v9289_v43  ;;  %3056 = vmatprep.subr.bf16.mxu0 %v9294_v44  ;;  %v9387_v43 = vld [vmem:[%s9910_s26 + $0x6ec] ss:$784 sps:$4 sm:$0xff]   ;;  %v9382_v44 = vld [vmem:[%s9910_s26 + $0x6e0] ss:$784 sps:$4 sm:$0xff]  }
  0x3c   : > { %3099 = vmatprep.subr.bf16.mxu1 %v9297_v45  ;;  %v9385_v45 = vld [vmem:[%s9910_s26 + $0x6e8] ss:$784 sps:$4 sm:$0xff]  }
  0x3d   : > { %9109 = vmatmul.mubr.msk.bf16.vlgmr.msra.gmra.mrb[16].mxu0 %vm2622_vm0, %v9923_v11 }
  0x3e   : > { %9110 = vmatmul.mubr.msk.bf16.vlgmr.msra.gmra.mrb[16].mxu1 %vm2622_vm0, %v9923_v11  ;;  %3057 = vmatpush1.bf16.msra.mxu0 %v9292_v46  ;;  %v9390_v46 = vld [vmem:[%s9910_s26 + $0xd4] ss:$784 sps:$4 sm:$0xff]  }
  0x3f   : > { %3100 = vmatpush1.bf16.msra.mxu1 %v9295_v47  ;;  %3058 = vmatprep.subr.bf16.mxu0 %v9300_v48  ;;  %v9393_v47 = vld [vmem:[%s9910_s26 + $0xdc] ss:$784 sps:$4 sm:$0xff]   ;;  %v9388_v48 = vld [vmem:[%s9910_s26 + $0xd0] ss:$784 sps:$4 sm:$0xff]  }
  0x40   : > { %3101 = vmatprep.subr.bf16.mxu1 %v9303_v49  ;;  %3088 = vmatprep.mubr.bf16.mxu0 %v12964_v0  ;;  %v9391_v49 = vld [vmem:[%s9910_s26 + $0xd8] ss:$784 sps:$4 sm:$0xff]  }
  0x41   : > { %3131 = vmatprep.mubr.bf16.mxu1 %v12964_v0 }
  0x42   : > { %3059 = vmatpush1.bf16.msra.mxu0 %v9298_v50  ;;  %v9396_v50 = vld [vmem:[%s9910_s26 + $0x6f4] ss:$784 sps:$4 sm:$0xff]  }
  0x43   : > { %3102 = vmatpush1.bf16.msra.mxu1 %v9301_v51  ;;  %3142 = vmatprep.subr.bf16.mxu0 %v9306_v52  ;;  %v9399_v51 = vld [vmem:[%s9910_s26 + $0x6fc] ss:$784 sps:$4 sm:$0xff]   ;;  %v9394_v52 = vld [vmem:[%s9910_s26 + $0x6f0] ss:$784 sps:$4 sm:$0xff]  }
  0x44   : > { %3185 = vmatprep.subr.bf16.mxu1 %v9309_v53  ;;  %v9397_v53 = vld [vmem:[%s9910_s26 + $0x6f8] ss:$784 sps:$4 sm:$0xff]  }
  0x45   : > { %9111 = vmatmul.mubr.msk.bf16.vlgmr.msra.gmra.mrb[20].mxu0 %vm2622_vm0, %v9923_v11 }
  0x46   : > { %9112 = vmatmul.mubr.msk.bf16.vlgmr.msra.gmra.mrb[20].mxu1 %vm2622_vm0, %v9923_v11  ;;  %3143 = vmatpush1.bf16.msra.mxu0 %v9304_v54  ;;  %v9402_v54 = vld [vmem:[%s9910_s26 + $0xe4] ss:$784 sps:$4 sm:$0xff]  }
  0x47   : > { %3186 = vmatpush1.bf16.msra.mxu1 %v9307_v55  ;;  %3144 = vmatprep.subr.bf16.mxu0 %v9312_v56  ;;  %v9405_v55 = vld [vmem:[%s9910_s26 + $0xec] ss:$784 sps:$4 sm:$0xff]   ;;  %v9400_v56 = vld [vmem:[%s9910_s26 + $0xe0] ss:$784 sps:$4 sm:$0xff]  }
  0x48   : > { %3187 = vmatprep.subr.bf16.mxu1 %v9315_v57  ;;  %3174 = vmatprep.mubr.bf16.mxu0 %v12964_v0  ;;  %v9403_v57 = vld [vmem:[%s9910_s26 + $0xe8] ss:$784 sps:$4 sm:$0xff]  }
  0x49   : > { %3217 = vmatprep.mubr.bf16.mxu1 %v12964_v0 }
  0x4a   : > { %3145 = vmatpush1.bf16.msra.mxu0 %v9310_v58  ;;  %v9408_v58 = vld [vmem:[%s9910_s26 + $0x704] ss:$784 sps:$4 sm:$0xff]  }
  0x4b   : > { %3188 = vmatpush1.bf16.msra.mxu1 %v9313_v59  ;;  %3228 = vmatprep.subr.bf16.mxu0 %v9318_v60  ;;  %v9411_v59 = vld [vmem:[%s9910_s26 + $0x70c] ss:$784 sps:$4 sm:$0xff]   ;;  %v9406_v60 = vld [vmem:[%s9910_s26 + $0x700] ss:$784 sps:$4 sm:$0xff]  }
  0x4c   : > { %3271 = vmatprep.subr.bf16.mxu1 %v9321_v61  ;;  %v9409_v61 = vld [vmem:[%s9910_s26 + $0x708] ss:$784 sps:$4 sm:$0xff]  }
  0x4d   : > { %9113 = vmatmul.mubr.msk.bf16.vlgmr.msra.gmra.mrb[24].mxu0 %vm2622_vm0, %v9923_v11 }
  0x4e   : > { %9114 = vmatmul.mubr.msk.bf16.vlgmr.msra.gmra.mrb[24].mxu1 %vm2622_vm0, %v9923_v11  ;;  %3229 = vmatpush1.bf16.msra.mxu0 %v9316_v62  ;;  %v9414_v62 = vld [vmem:[%s9910_s26 + $0xf4] ss:$784 sps:$4 sm:$0xff]  }
  0x4f   : > { %3272 = vmatpush1.bf16.msra.mxu1 %v9319_v63  ;;  %3230 = vmatprep.subr.bf16.mxu0 %v9324_v1  ;;  %v9417_v63 = vld [vmem:[%s9910_s26 + $0xfc] ss:$784 sps:$4 sm:$0xff]   ;;  %v9412_v1 = vld [vmem:[%s9910_s26 + $0xf0] ss:$784 sps:$4 sm:$0xff]  }
  0x50   : > { %3273 = vmatprep.subr.bf16.mxu1 %v9327_v2  ;;  %3260 = vmatprep.mubr.bf16.mxu0 %v12964_v0  ;;  %v9415_v2 = vld [vmem:[%s9910_s26 + $0xf8] ss:$784 sps:$4 sm:$0xff]  }
  0x51   : > { %3303 = vmatprep.mubr.bf16.mxu1 %v12964_v0 }
  0x52   : > { %3231 = vmatpush1.bf16.msra.mxu0 %v9322_v3  ;;  %v9420_v3 = vld [vmem:[%s9910_s26 + $0x714] ss:$784 sps:$4 sm:$0xff]  }
  0x53   : > { %3274 = vmatpush1.bf16.msra.mxu1 %v9325_v4  ;;  %3314 = vmatprep.subr.bf16.mxu0 %v9330_v5  ;;  %v9423_v4 = vld [vmem:[%s9910_s26 + $0x71c] ss:$784 sps:$4 sm:$0xff]   ;;  %v9418_v5 = vld [vmem:[%s9910_s26 + $0x710] ss:$784 sps:$4 sm:$0xff]  }
  0x54   : > { %3357 = vmatprep.subr.bf16.mxu1 %v9333_v6  ;;  %v9421_v6 = vld [vmem:[%s9910_s26 + $0x718] ss:$784 sps:$4 sm:$0xff]  }
  0x55   : > { %9115 = vmatmul.mubr.msk.bf16.vlgmr.msra.gmra.mrb[28].mxu0 %vm2622_vm0, %v9923_v11 }
  0x56   : > { %9116 = vmatmul.mubr.msk.bf16.vlgmr.msra.gmra.mrb[28].mxu1 %vm2622_vm0, %v9923_v11  ;;  %3315 = vmatpush1.bf16.msra.mxu0 %v9328_v7  ;;  %v9426_v7 = vld [vmem:[%s9910_s26 + $0x104] ss:$784 sps:$4 sm:$0xff]  }
  0x57   : > { %3358 = vmatpush1.bf16.msra.mxu1 %v9331_v8  ;;  %3316 = vmatprep.subr.bf16.mxu0 %v9336_v9  ;;  %v9429_v8 = vld [vmem:[%s9910_s26 + $0x10c] ss:$784 sps:$4 sm:$0xff]   ;;  %v9424_v9 = vld [vmem:[%s9910_s26 + $0x100] ss:$784 sps:$4 sm:$0xff]  }
  0x58   : > { %3359 = vmatprep.subr.bf16.mxu1 %v9339_v10  ;;  %3346 = vmatprep.mubr.bf16.mxu0 %v12964_v0  ;;  %v9427_v10 = vld [vmem:[%s9910_s26 + $0x108] ss:$784 sps:$4 sm:$0xff]  }
  0x59   : > { %3389 = vmatprep.mubr.bf16.mxu1 %v12964_v0 }
  0x5a   : > { %3317 = vmatpush1.bf16.msra.mxu0 %v9334_v12  ;;  %v9432_v12 = vld [vmem:[%s9910_s26 + $0x724] ss:$784 sps:$4 sm:$0xff]  }
  0x5b   : > { %3360 = vmatpush1.bf16.msra.mxu1 %v9337_v13  ;;  %3400 = vmatprep.subr.bf16.mxu0 %v9342_v14  ;;  %v9435_v13 = vld [vmem:[%s9910_s26 + $0x72c] ss:$784 sps:$4 sm:$0xff]   ;;  %v9430_v14 = vld [vmem:[%s9910_s26 + $0x720] ss:$784 sps:$4 sm:$0xff]  }
  0x5c   : > { %3443 = vmatprep.subr.bf16.mxu1 %v9345_v15  ;;  %v9433_v15 = vld [vmem:[%s9910_s26 + $0x728] ss:$784 sps:$4 sm:$0xff]  }
  0x5d   : > { %9117 = vmatmul.mubr.msk.bf16.vlgmr.msra.gmra.mrb[32].mxu0 %vm2622_vm0, %v9923_v11 }
  0x5e   : > { %9118 = vmatmul.mubr.msk.bf16.vlgmr.msra.gmra.mrb[32].mxu1 %vm2622_vm0, %v9923_v11  ;;  %3401 = vmatpush1.bf16.msra.mxu0 %v9340_v16  ;;  %v9438_v16 = vld [vmem:[%s9910_s26 + $0x114] ss:$784 sps:$4 sm:$0xff]  }
  0x5f   : > { %3444 = vmatpush1.bf16.msra.mxu1 %v9343_v17  ;;  %3402 = vmatprep.subr.bf16.mxu0 %v9348_v18  ;;  %v9441_v17 = vld [vmem:[%s9910_s26 + $0x11c] ss:$784 sps:$4 sm:$0xff]   ;;  %v9436_v18 = vld [vmem:[%s9910_s26 + $0x110] ss:$784 sps:$4 sm:$0xff]  }
  0x60   : > { %3445 = vmatprep.subr.bf16.mxu1 %v9351_v19  ;;  %3432 = vmatprep.mubr.bf16.mxu0 %v12964_v0  ;;  %v9439_v19 = vld [vmem:[%s9910_s26 + $0x118] ss:$784 sps:$4 sm:$0xff]  }
  0x61   : > { %3475 = vmatprep.mubr.bf16.mxu1 %v12964_v0 }
  0x62   : > { %3403 = vmatpush1.bf16.msra.mxu0 %v9346_v20  ;;  %v9447_v20 = vld [vmem:[%s9910_s26 + $0x73c] ss:$784 sps:$4 sm:$0xff]  }
  0x63   : > { %3446 = vmatpush1.bf16.msra.mxu1 %v9349_v21  ;;  %3486 = vmatprep.subr.bf16.mxu0 %v9354_v22  ;;  %v10158_v21 = vld [vmem:[%s12952_s1] sm:$0xff]  }
  0x64   : > { %3529 = vmatprep.subr.bf16.mxu1 %v9357_v23  ;;  %v9442_v22 = vld [vmem:[%s9910_s26 + $0x730] ss:$784 sps:$4 sm:$0xff]   ;;  %v9445_v23 = vld [vmem:[%s9910_s26 + $0x738] ss:$784 sps:$4 sm:$0xff]  }
  0x65   : > { %9119 = vmatmul.mubr.msk.bf16.vlgmr.msra.gmra.mrb[36].mxu0 %vm2622_vm0, %v9923_v11 }
  0x66   : > { %9120 = vmatmul.mubr.msk.bf16.vlgmr.msra.gmra.mrb[36].mxu1 %vm2622_vm0, %v9923_v11  ;;  %3487 = vmatpush1.bf16.msra.mxu0 %v9352_v24  ;;  %v9450_v24 = vld [vmem:[%s9910_s26 + $0x124] ss:$784 sps:$4 sm:$0xff]  }
  0x67   : > { %3530 = vmatpush1.bf16.msra.mxu1 %v9355_v25  ;;  %3488 = vmatprep.subr.bf16.mxu0 %v9360_v26  ;;  %v9453_v25 = vld [vmem:[%s9910_s26 + $0x12c] ss:$784 sps:$4 sm:$0xff]   ;;  %v9448_v26 = vld [vmem:[%s9910_s26 + $0x120] ss:$784 sps:$4 sm:$0xff]  }
  0x68   : > { %3531 = vmatprep.subr.bf16.mxu1 %v9363_v27  ;;  %3518 = vmatprep.mubr.bf16.mxu0 %v12964_v0  ;;  %v9451_v27 = vld [vmem:[%s9910_s26 + $0x128] ss:$784 sps:$4 sm:$0xff]  }
  0x69   : > { %3561 = vmatprep.mubr.bf16.mxu1 %v12964_v0 }
  0x6a   : > { %3489 = vmatpush1.bf16.msra.mxu0 %v9358_v28  ;;  %v9456_v28 = vld [vmem:[%s9910_s26 + $0x744] ss:$784 sps:$4 sm:$0xff]  }
  0x6b   : > { %3532 = vmatpush1.bf16.msra.mxu1 %v9361_v29  ;;  %3572 = vmatprep.subr.bf16.mxu0 %v9366_v30  ;;  %v9459_v29 = vld [vmem:[%s9910_s26 + $0x74c] ss:$784 sps:$4 sm:$0xff]   ;;  %v9454_v30 = vld [vmem:[%s9910_s26 + $0x740] ss:$784 sps:$4 sm:$0xff]  }
  0x6c   : > { %3615 = vmatprep.subr.bf16.mxu1 %v9369_v31  ;;  %v9457_v31 = vld [vmem:[%s9910_s26 + $0x748] ss:$784 sps:$4 sm:$0xff]  }
  0x6d   : > { %9121 = vmatmul.mubr.msk.bf16.vlgmr.msra.gmra.mrb[40].mxu0 %vm2622_vm0, %v9923_v11 }
  0x6e   : > { %9122 = vmatmul.mubr.msk.bf16.vlgmr.msra.gmra.mrb[40].mxu1 %vm2622_vm0, %v9923_v11  ;;  %3573 = vmatpush1.bf16.msra.mxu0 %v9364_v32  ;;  %v9462_v32 = vld [vmem:[%s9910_s26 + $0x134] ss:$784 sps:$4 sm:$0xff]  }
  0x6f   : > { %3616 = vmatpush1.bf16.msra.mxu1 %v9367_v33  ;;  %3574 = vmatprep.subr.bf16.mxu0 %v9372_v34  ;;  %v9465_v33 = vld [vmem:[%s9910_s26 + $0x13c] ss:$784 sps:$4 sm:$0xff]   ;;  %v9460_v34 = vld [vmem:[%s9910_s26 + $0x130] ss:$784 sps:$4 sm:$0xff]  }
  0x70   : > { %3617 = vmatprep.subr.bf16.mxu1 %v9375_v35  ;;  %3604 = vmatprep.mubr.bf16.mxu0 %v12964_v0  ;;  %v9463_v35 = vld [vmem:[%s9910_s26 + $0x138] ss:$784 sps:$4 sm:$0xff]  }
  0x71   : > { %3647 = vmatprep.mubr.bf16.mxu1 %v12964_v0 }
  0x72   : > { %3575 = vmatpush1.bf16.msra.mxu0 %v9370_v36  ;;  %v9468_v36 = vld [vmem:[%s9910_s26 + $0x754] ss:$784 sps:$4 sm:$0xff]  }
  0x73   : > { %3618 = vmatpush1.bf16.msra.mxu1 %v9373_v37  ;;  %3658 = vmatprep.subr.bf16.mxu0 %v9378_v38  ;;  %v9471_v37 = vld [vmem:[%s9910_s26 + $0x75c] ss:$784 sps:$4 sm:$0xff]   ;;  %v9466_v38 = vld [vmem:[%s9910_s26 + $0x750] ss:$784 sps:$4 sm:$0xff]  }
  0x74   : > { %3701 = vmatprep.subr.bf16.mxu1 %v9381_v39  ;;  %v9469_v39 = vld [vmem:[%s9910_s26 + $0x758] ss:$784 sps:$4 sm:$0xff]  }
  0x75   : > { %9123 = vmatmul.mubr.msk.bf16.vlgmr.msra.gmra.mrb[44].mxu0 %vm2622_vm0, %v9923_v11 }
  0x76   : > { %9124 = vmatmul.mubr.msk.bf16.vlgmr.msra.gmra.mrb[44].mxu1 %vm2622_vm0, %v9923_v11  ;;  %3659 = vmatpush1.bf16.msra.mxu0 %v9376_v40  ;;  %v9474_v40 = vld [vmem:[%s9910_s26 + $0x144] ss:$784 sps:$4 sm:$0xff]  }
  0x77   : > { %3702 = vmatpush1.bf16.msra.mxu1 %v9379_v41  ;;  %3660 = vmatprep.subr.bf16.mxu0 %v9384_v42  ;;  %v9477_v41 = vld [vmem:[%s9910_s26 + $0x14c] ss:$784 sps:$4 sm:$0xff]   ;;  %v9472_v42 = vld [vmem:[%s9910_s26 + $0x140] ss:$784 sps:$4 sm:$0xff]  }
  0x78   : > { %3703 = vmatprep.subr.bf16.mxu1 %v9387_v43  ;;  %3690 = vmatprep.mubr.bf16.mxu0 %v12964_v0  ;;  %v9475_v43 = vld [vmem:[%s9910_s26 + $0x148] ss:$784 sps:$4 sm:$0xff]  }
  0x79   : > { %3733 = vmatprep.mubr.bf16.mxu1 %v12964_v0 }
  0x7a   : > { %3661 = vmatpush1.bf16.msra.mxu0 %v9382_v44  ;;  %v9480_v44 = vld [vmem:[%s9910_s26 + $0x764] ss:$784 sps:$4 sm:$0xff]  }
  0x7b   : > { %3704 = vmatpush1.bf16.msra.mxu1 %v9385_v45  ;;  %3744 = vmatprep.subr.bf16.mxu0 %v9390_v46  ;;  %v9483_v45 = vld [vmem:[%s9910_s26 + $0x76c] ss:$784 sps:$4 sm:$0xff]   ;;  %v9478_v46 = vld [vmem:[%s9910_s26 + $0x760] ss:$784 sps:$4 sm:$0xff]  }
  0x7c   : > { %3787 = vmatprep.subr.bf16.mxu1 %v9393_v47  ;;  %v9481_v47 = vld [vmem:[%s9910_s26 + $0x768] ss:$784 sps:$4 sm:$0xff]  }
  0x7d   : > { %9125 = vmatmul.mubr.msk.bf16.vlgmr.msra.gmra.mrb[48].mxu0 %vm2622_vm0, %v9923_v11 }
  0x7e   : > { %9126 = vmatmul.mubr.msk.bf16.vlgmr.msra.gmra.mrb[48].mxu1 %vm2622_vm0, %v9923_v11  ;;  %3745 = vmatpush1.bf16.msra.mxu0 %v9388_v48  ;;  %v9486_v48 = vld [vmem:[%s9910_s26 + $0x154] ss:$784 sps:$4 sm:$0xff]  }
  0x7f   : > { %3788 = vmatpush1.bf16.msra.mxu1 %v9391_v49  ;;  %3746 = vmatprep.subr.bf16.mxu0 %v9396_v50  ;;  %v9489_v49 = vld [vmem:[%s9910_s26 + $0x15c] ss:$784 sps:$4 sm:$0xff]   ;;  %v9484_v50 = vld [vmem:[%s9910_s26 + $0x150] ss:$784 sps:$4 sm:$0xff]  }
  0x80   : > { %3789 = vmatprep.subr.bf16.mxu1 %v9399_v51  ;;  %3776 = vmatprep.mubr.bf16.mxu0 %v12964_v0  ;;  %v9487_v51 = vld [vmem:[%s9910_s26 + $0x158] ss:$784 sps:$4 sm:$0xff]  }
  0x81   : > { %3819 = vmatprep.mubr.bf16.mxu1 %v12964_v0 }
  0x82   : > { %3747 = vmatpush1.bf16.msra.mxu0 %v9394_v52  ;;  %v9492_v52 = vld [vmem:[%s9910_s26 + $0x774] ss:$784 sps:$4 sm:$0xff]  }
  0x83   : > { %3790 = vmatpush1.bf16.msra.mxu1 %v9397_v53  ;;  %3830 = vmatprep.subr.bf16.mxu0 %v9402_v54  ;;  %v9495_v53 = vld [vmem:[%s9910_s26 + $0x77c] ss:$784 sps:$4 sm:$0xff]   ;;  %v9490_v54 = vld [vmem:[%s9910_s26 + $0x770] ss:$784 sps:$4 sm:$0xff]  }
  0x84   : > { %3873 = vmatprep.subr.bf16.mxu1 %v9405_v55  ;;  %v9493_v55 = vld [vmem:[%s9910_s26 + $0x778] ss:$784 sps:$4 sm:$0xff]  }
  0x85   : > { %9127 = vmatmul.mubr.msk.bf16.vlgmr.msra.gmra.mrb[52].mxu0 %vm2622_vm0, %v9923_v11 }
  0x86   : > { %9128 = vmatmul.mubr.msk.bf16.vlgmr.msra.gmra.mrb[52].mxu1 %vm2622_vm0, %v9923_v11  ;;  %3831 = vmatpush1.bf16.msra.mxu0 %v9400_v56  ;;  %v9498_v56 = vld [vmem:[%s9910_s26 + $0x164] ss:$784 sps:$4 sm:$0xff]  }
  0x87   : > { %3874 = vmatpush1.bf16.msra.mxu1 %v9403_v57  ;;  %3832 = vmatprep.subr.bf16.mxu0 %v9408_v58  ;;  %v9501_v57 = vld [vmem:[%s9910_s26 + $0x16c] ss:$784 sps:$4 sm:$0xff]   ;;  %v9496_v58 = vld [vmem:[%s9910_s26 + $0x160] ss:$784 sps:$4 sm:$0xff]  }
  0x88   : > { %3875 = vmatprep.subr.bf16.mxu1 %v9411_v59  ;;  %3862 = vmatprep.mubr.bf16.mxu0 %v12964_v0  ;;  %v9499_v59 = vld [vmem:[%s9910_s26 + $0x168] ss:$784 sps:$4 sm:$0xff]  }
  0x89   : > { %3905 = vmatprep.mubr.bf16.mxu1 %v12964_v0 }
  0x8a   : > { %3833 = vmatpush1.bf16.msra.mxu0 %v9406_v60  ;;  %v9504_v60 = vld [vmem:[%s9910_s26 + $0x784] ss:$784 sps:$4 sm:$0xff]  }
  0x8b   : > { %3876 = vmatpush1.bf16.msra.mxu1 %v9409_v61  ;;  %3916 = vmatprep.subr.bf16.mxu0 %v9414_v62  ;;  %v9507_v61 = vld [vmem:[%s9910_s26 + $0x78c] ss:$784 sps:$4 sm:$0xff]   ;;  %v9502_v62 = vld [vmem:[%s9910_s26 + $0x780] ss:$784 sps:$4 sm:$0xff]  }
  0x8c   : > { %3959 = vmatprep.subr.bf16.mxu1 %v9417_v63  ;;  %v9505_v63 = vld [vmem:[%s9910_s26 + $0x788] ss:$784 sps:$4 sm:$0xff]  }
  0x8d   : > { %9129 = vmatmul.mubr.msk.bf16.vlgmr.msra.gmra.mrb[56].mxu0 %vm2622_vm0, %v9923_v11 }
  0x8e   : > { %9130 = vmatmul.mubr.msk.bf16.vlgmr.msra.gmra.mrb[56].mxu1 %vm2622_vm0, %v9923_v11  ;;  %3917 = vmatpush1.bf16.msra.mxu0 %v9412_v1  ;;  %v9510_v1 = vld [vmem:[%s9910_s26 + $0x174] ss:$784 sps:$4 sm:$0xff]  }
  0x8f   : > { %3960 = vmatpush1.bf16.msra.mxu1 %v9415_v2  ;;  %3918 = vmatprep.subr.bf16.mxu0 %v9420_v3  ;;  %v9513_v2 = vld [vmem:[%s9910_s26 + $0x17c] ss:$784 sps:$4 sm:$0xff]   ;;  %v9508_v3 = vld [vmem:[%s9910_s26 + $0x170] ss:$784 sps:$4 sm:$0xff]  }
  0x90   : > { %3961 = vmatprep.subr.bf16.mxu1 %v9423_v4  ;;  %3948 = vmatprep.mubr.bf16.mxu0 %v12964_v0  ;;  %v9511_v4 = vld [vmem:[%s9910_s26 + $0x178] ss:$784 sps:$4 sm:$0xff]  }
  0x91   : > { %3991 = vmatprep.mubr.bf16.mxu1 %v12964_v0 }
  0x92   : > { %3919 = vmatpush1.bf16.msra.mxu0 %v9418_v5  ;;  %v9516_v5 = vld [vmem:[%s9910_s26 + $0x794] ss:$784 sps:$4 sm:$0xff]  }
  0x93   : > { %3962 = vmatpush1.bf16.msra.mxu1 %v9421_v6  ;;  %4002 = vmatprep.subr.bf16.mxu0 %v9426_v7  ;;  %v9519_v6 = vld [vmem:[%s9910_s26 + $0x79c] ss:$784 sps:$4 sm:$0xff]   ;;  %v9514_v7 = vld [vmem:[%s9910_s26 + $0x790] ss:$784 sps:$4 sm:$0xff]  }
  0x94   : > { %4045 = vmatprep.subr.bf16.mxu1 %v9429_v8  ;;  %v9517_v8 = vld [vmem:[%s9910_s26 + $0x798] ss:$784 sps:$4 sm:$0xff]  }
  0x95   : > { %9131 = vmatmul.mubr.msk.bf16.vlgmr.msra.gmra.mrb[60].mxu0 %vm2622_vm0, %v9923_v11 }
  0x96   : > { %9132 = vmatmul.mubr.msk.bf16.vlgmr.msra.gmra.mrb[60].mxu1 %vm2622_vm0, %v9923_v11  ;;  %4003 = vmatpush1.bf16.msra.mxu0 %v9424_v9  ;;  %v9444_v11 = vld [vmem:[%s9910_s26 + $0x734] ss:$784 sps:$4 sm:$0xff]  }
  0x97   : > { %4046 = vmatpush1.bf16.msra.mxu1 %v9427_v10  ;;  %4004 = vmatprep.subr.bf16.mxu0 %v9432_v12  ;;  %v9522_v9 = vld [vmem:[%s9910_s26 + $0x184] ss:$784 sps:$4 sm:$0xff]   ;;  %v9525_v10 = vld [vmem:[%s9910_s26 + $0x18c] ss:$784 sps:$4 sm:$0xff]   ;;  %v9520_v12 = vld [vmem:[%s9910_s26 + $0x180] ss:$784 sps:$4 sm:$0xff]  }
  0x98   : > { %4047 = vmatprep.subr.bf16.mxu1 %v9435_v13  ;;  %4034 = vmatprep.mubr.bf16.mxu0 %v12964_v0  ;;  %v9523_v13 = vld [vmem:[%s9910_s26 + $0x188] ss:$784 sps:$4 sm:$0xff]  }
  0x99   : > { %4077 = vmatprep.mubr.bf16.mxu1 %v12964_v0 }
  0x9a   : > { %4005 = vmatpush1.bf16.msra.mxu0 %v9430_v14  ;;  %v9528_v14 = vld [vmem:[%s9910_s26 + $0x7a4] ss:$784 sps:$4 sm:$0xff]  }
  0x9b   : > { %4048 = vmatpush1.bf16.msra.mxu1 %v9433_v15  ;;  %4088 = vmatprep.subr.bf16.mxu0 %v9438_v16  ;;  %v9531_v15 = vld [vmem:[%s9910_s26 + $0x7ac] ss:$784 sps:$4 sm:$0xff]   ;;  %v9526_v16 = vld [vmem:[%s9910_s26 + $0x7a0] ss:$784 sps:$4 sm:$0xff]  }
  0x9c   : > { %4131 = vmatprep.subr.bf16.mxu1 %v9441_v17  ;;  %v9529_v17 = vld [vmem:[%s9910_s26 + $0x7a8] ss:$784 sps:$4 sm:$0xff]  }
  0x9d   : > { %9133 = vmatmul.mubr.msk.bf16.vlgmr.msra.gmra.mrb[64].mxu0 %vm2622_vm0, %v10158_v21 }
  0x9e   : > { %9134 = vmatmul.mubr.msk.bf16.vlgmr.msra.gmra.mrb[64].mxu1 %vm2622_vm0, %v10158_v21  ;;  %4089 = vmatpush1.bf16.msra.mxu0 %v9436_v18  ;;  %v9534_v18 = vld [vmem:[%s9910_s26 + $0x194] ss:$784 sps:$4 sm:$0xff]  }
  0x9f   : > { %4132 = vmatpush1.bf16.msra.mxu1 %v9439_v19  ;;  %4090 = vmatprep.subr.bf16.mxu0 %v9444_v11  ;;  %v9537_v19 = vld [vmem:[%s9910_s26 + $0x19c] ss:$784 sps:$4 sm:$0xff]   ;;  %v10269_v11 = vld [vmem:[%s12954_s3] sm:$0xff] }
  0xa0   : > { %4133 = vmatprep.subr.bf16.mxu1 %v9447_v20  ;;  %4120 = vmatprep.mubr.bf16.mxu0 %v12964_v0  ;;  %v10274_v20 = vld [vmem:[%s12954_s3 + $0x8] sm:$0xff] }
  0xa1   : > { %4163 = vmatprep.mubr.bf16.mxu1 %v12964_v0 }
  0xa2   : > { %4091 = vmatpush1.bf16.msra.mxu0 %v9442_v22  ;;  %v10279_v22 = vld [vmem:[%s12954_s3 + $0x310] sm:$0xff] }
  0xa3   : > { %4134 = vmatpush1.bf16.msra.mxu1 %v9445_v23  ;;  %4174 = vmatprep.subr.bf16.mxu0 %v9450_v24  ;;  %v10284_v23 = vld [vmem:[%s12954_s3 + $0x318] sm:$0xff]  ;;  %v10289_v24 = vld [vmem:[%s12954_s3 + $0x10] sm:$0xff] }
  0xa4   : > { %4217 = vmatprep.subr.bf16.mxu1 %v9453_v25  ;;  %v9532_v25 = vld [vmem:[%s9910_s26 + $0x190] ss:$784 sps:$4 sm:$0xff]  }
  0xa5   : > { %9135 = vmatmul.mubr.msk.bf16.vlgmr.msra.gmra.mrb[68].mxu0 %vm2622_vm0, %v10158_v21 }
  0xa6   : > { %9136 = vmatmul.mubr.msk.bf16.vlgmr.msra.gmra.mrb[68].mxu1 %vm2622_vm0, %v10158_v21  ;;  %4175 = vmatpush1.bf16.msra.mxu0 %v9448_v26  ;;  %v9535_v26 = vld [vmem:[%s9910_s26 + $0x198] ss:$784 sps:$4 sm:$0xff]  }
  0xa7   : > { %4218 = vmatpush1.bf16.msra.mxu1 %v9451_v27  ;;  %4176 = vmatprep.subr.bf16.mxu0 %v9456_v28  ;;  %v10298_v27 = vld [vmem:[%s12954_s3 + $0x18] sm:$0xff]  ;;  %v10303_v28 = vld [vmem:[%s12954_s3 + $0x320] sm:$0xff] }
  0xa8   : > { %4219 = vmatprep.subr.bf16.mxu1 %v9459_v29  ;;  %4206 = vmatprep.mubr.bf16.mxu0 %v12964_v0  ;;  %v9540_v29 = vld [vmem:[%s9910_s26 + $0x7b4] ss:$784 sps:$4 sm:$0xff]  }
  0xa9   : > { %4249 = vmatprep.mubr.bf16.mxu1 %v12964_v0 }
  0xaa   : > { %4177 = vmatpush1.bf16.msra.mxu0 %v9454_v30  ;;  %v9543_v30 = vld [vmem:[%s9910_s26 + $0x7bc] ss:$784 sps:$4 sm:$0xff]  }
  0xab   : > { %4220 = vmatpush1.bf16.msra.mxu1 %v9457_v31  ;;  %4260 = vmatprep.subr.bf16.mxu0 %v9462_v32  ;;  %v10310_v31 = vld [vmem:[%s12954_s3 + $0x328] sm:$0xff]  ;;  %v10315_v32 = vld [vmem:[%s12954_s3 + $0x20] sm:$0xff] }
  0xac   : > { %4303 = vmatprep.subr.bf16.mxu1 %v9465_v33 }
  0xad   : > { %9137 = vmatmul.mubr.msk.bf16.vlgmr.msra.gmra.mrb[72].mxu0 %vm2622_vm0, %v10158_v21 }
  0xae   : > { %9138 = vmatmul.mubr.msk.bf16.vlgmr.msra.gmra.mrb[72].mxu1 %vm2622_vm0, %v10158_v21  ;;  %4261 = vmatpush1.bf16.msra.mxu0 %v9460_v34  ;;  %v10321_v34 = vld [vmem:[%s12954_s3 + $0x28] sm:$0xff] }
  0xaf   : > { %4304 = vmatpush1.bf16.msra.mxu1 %v9463_v35  ;;  %4262 = vmatprep.subr.bf16.mxu0 %v9468_v36  ;;  %v10326_v35 = vld [vmem:[%s12954_s3 + $0x330] sm:$0xff]  ;;  %v10643_v36 = vld [vmem:[%s12954_s3 + $0x3c0] sm:$0xff] }
  0xb0   : > { %4305 = vmatprep.subr.bf16.mxu1 %v9471_v37  ;;  %4292 = vmatprep.mubr.bf16.mxu0 %v12964_v0  ;;  %13000 = vst [vmem:[#allocation14_spill] sm:$0xff] %v10643_v36  ;;  %v9597_v36 = vld [vmem:[%s9910_s26 + $0x1ec] ss:$784 sps:$4 sm:$0xff]  }
  0xb1   : > { %4335 = vmatprep.mubr.bf16.mxu1 %v12964_v0 }
  0xb2   : > { %4263 = vmatpush1.bf16.msra.mxu0 %v9466_v38 }
  0xb3   : > { %4306 = vmatpush1.bf16.msra.mxu1 %v9469_v39  ;;  %4346 = vmatprep.subr.bf16.mxu0 %v9474_v40  ;;  %v10335_v40 = vld [vmem:[%s12954_s3 + $0x338] sm:$0xff] }
  0xb4   : > { %4389 = vmatprep.subr.bf16.mxu1 %v9477_v41  ;;  %v10340_v41 = vld [vmem:[%s12954_s3 + $0x30] sm:$0xff] }
  0xb5   : > { %9139 = vmatmul.mubr.msk.bf16.vlgmr.msra.gmra.mrb[76].mxu0 %vm2622_vm0, %v10158_v21 }
  0xb6   : > { %9140 = vmatmul.mubr.msk.bf16.vlgmr.msra.gmra.mrb[76].mxu1 %vm2622_vm0, %v10158_v21  ;;  %4347 = vmatpush1.bf16.msra.mxu0 %v9472_v42  ;;  %v9538_v42 = vld [vmem:[%s9910_s26 + $0x7b0] ss:$784 sps:$4 sm:$0xff]  }
  0xb7   : > { %4390 = vmatpush1.bf16.msra.mxu1 %v9475_v43  ;;  %4348 = vmatprep.subr.bf16.mxu0 %v9480_v44  ;;  %v9541_v43 = vld [vmem:[%s9910_s26 + $0x7b8] ss:$784 sps:$4 sm:$0xff]  }
  0xb8   : > { %4391 = vmatprep.subr.bf16.mxu1 %v9483_v45  ;;  %4378 = vmatprep.mubr.bf16.mxu0 %v12964_v0  ;;  %v9570_v45 = vld [vmem:[%s9910_s26 + $0x1c4] ss:$784 sps:$4 sm:$0xff]  }
  0xb9   : > { %4421 = vmatprep.mubr.bf16.mxu1 %v12964_v0 }
  0xba   : > { %4349 = vmatpush1.bf16.msra.mxu0 %v9478_v46  ;;  %v10603_v46 = vld [vmem:[%s12954_s3 + $0x3b8] sm:$0xff] }
  0xbb   : > { %4392 = vmatpush1.bf16.msra.mxu1 %v9481_v47  ;;  %4432 = vmatprep.subr.bf16.mxu0 %v9486_v48  ;;  %v10351_v48 = vld [vmem:[%s12954_s3 + $0x38] sm:$0xff]  ;;  %12997 = vst [vmem:[#allocation11_spill] sm:$0xff] %v10603_v46 }
  0xbc   : > { %4475 = vmatprep.subr.bf16.mxu1 %v9489_v49  ;;  %v9546_v49 = vld [vmem:[%s9910_s26 + $0x1a4] ss:$784 sps:$4 sm:$0xff]   ;;  %v9565_v47 = vld [vmem:[%s9910_s26 + $0x7d8] ss:$784 sps:$4 sm:$0xff]  }
  0xbd   : > { %9141 = vmatmul.mubr.msk.bf16.vlgmr.msra.gmra.mrb[80].mxu0 %vm2622_vm0, %v10158_v21 }
  0xbe   : > { %9142 = vmatmul.mubr.msk.bf16.vlgmr.msra.gmra.mrb[80].mxu1 %vm2622_vm0, %v10158_v21  ;;  %4433 = vmatpush1.bf16.msra.mxu0 %v9484_v50  ;;  %v9549_v50 = vld [vmem:[%s9910_s26 + $0x1ac] ss:$784 sps:$4 sm:$0xff]  }
  0xbf   : > { %4476 = vmatpush1.bf16.msra.mxu1 %v9487_v51  ;;  %4434 = vmatprep.subr.bf16.mxu0 %v9492_v52  ;;  %v10574_v52 = vld [vmem:[%s12954_s3 + $0xa0] sm:$0xff] }
  0xc0   : > { %4477 = vmatprep.subr.bf16.mxu1 %v9495_v53  ;;  %4464 = vmatprep.mubr.bf16.mxu0 %v12964_v0  ;;  %12994 = vst [vmem:[#allocation8_spill] sm:$0xff] %v10574_v52  ;;  %v9562_v51 = vld [vmem:[%s9910_s26 + $0x7d0] ss:$784 sps:$4 sm:$0xff]   ;;  %v10584_v53 = vld [vmem:[%s12954_s3 + $0xa8] sm:$0xff] }
  0xc1   : > { %4507 = vmatprep.mubr.bf16.mxu1 %v12964_v0  ;;  %12995 = vst [vmem:[#allocation9_spill] sm:$0xff] %v10584_v53 }
  0xc2   : > { %4435 = vmatpush1.bf16.msra.mxu0 %v9490_v54 }
  0xc3   : > { %4478 = vmatpush1.bf16.msra.mxu1 %v9493_v55  ;;  %4518 = vmatprep.subr.bf16.mxu0 %v9498_v56  ;;  %v10366_v55 = vld [vmem:[%s12954_s3 + $0x340] sm:$0xff]  ;;  %v10371_v56 = vld [vmem:[%s12954_s3 + $0x348] sm:$0xff] }
  0xc4   : > { %4561 = vmatprep.subr.bf16.mxu1 %v9501_v57  ;;  %v10376_v57 = vld [vmem:[%s12954_s3 + $0x40] sm:$0xff] }
  0xc5   : > { %9143 = vmatmul.mubr.msk.bf16.vlgmr.msra.gmra.mrb[84].mxu0 %vm2622_vm0, %v10158_v21 }
  0xc6   : > { %9144 = vmatmul.mubr.msk.bf16.vlgmr.msra.gmra.mrb[84].mxu1 %vm2622_vm0, %v10158_v21  ;;  %4519 = vmatpush1.bf16.msra.mxu0 %v9496_v58  ;;  %v9567_v58 = vld [vmem:[%s9910_s26 + $0x7dc] ss:$784 sps:$4 sm:$0xff]  }
  0xc7   : > { %4562 = vmatpush1.bf16.msra.mxu1 %v9499_v59  ;;  %4520 = vmatprep.subr.bf16.mxu0 %v9504_v60  ;;  %v10535_v60 = vpop.permute.xlu0 %649  ;;  %v9564_v59 = vld [vmem:[%s9910_s26 + $0x7d4] ss:$784 sps:$4 sm:$0xff]  }
  0xc8   : > { %4563 = vmatprep.subr.bf16.mxu1 %v9507_v61  ;;  %4550 = vmatprep.mubr.bf16.mxu0 %v12964_v0  ;;  %v10533_v61 = vld [vmem:[%s12954_s3 + $0x398] sm:$0xff] }
  0xc9   : > { %4593 = vmatprep.mubr.bf16.mxu1 %v12964_v0  ;;  %12989 = vst [vmem:[#allocation3_spill] sm:$0xff] %v10533_v61 }
  0xca   : > { %4521 = vmatpush1.bf16.msra.mxu0 %v9502_v62  ;;  %v10385_v62 = vld [vmem:[%s12954_s3 + $0x48] sm:$0xff] }
  0xcb   : > { %4564 = vmatpush1.bf16.msra.mxu1 %v9505_v63  ;;  %4604 = vmatprep.subr.bf16.mxu0 %v9510_v1  ;;  %v10501_v1 = vld [vmem:[%s12954_s3 + $0x388] sm:$0xff]  ;;  %v10589_v63 = vld [vmem:[%s12954_s3 + $0x3b0] sm:$0xff] }
  0xcc   : > { %4647 = vmatprep.subr.bf16.mxu1 %v9513_v2  ;;  %v10492_v2 = vld [vmem:[%s12954_s3 + $0x380] sm:$0xff]  ;;  %12996 = vst [vmem:[#allocation10_spill] sm:$0xff] %v10589_v63 }
  0xcd   : > { %9145 = vmatmul.mubr.msk.bf16.vlgmr.msra.gmra.mrb[88].mxu0 %vm2622_vm0, %v10158_v21 }
  0xce   : > { %9146 = vmatmul.mubr.msk.bf16.vlgmr.msra.gmra.mrb[88].mxu1 %vm2622_vm0, %v10158_v21  ;;  %4605 = vmatpush1.bf16.msra.mxu0 %v9508_v3  ;;  %v10487_v3 = vld [vmem:[%s12954_s3 + $0x78] sm:$0xff] }
  0xcf   : > { %4648 = vmatpush1.bf16.msra.mxu1 %v9511_v4  ;;  %4606 = vmatprep.subr.bf16.mxu0 %v9516_v5  ;;  %v10394_v4 = vld [vmem:[%s12954_s3 + $0x350] sm:$0xff] }
  0xd0   : > { %4649 = vmatprep.subr.bf16.mxu1 %v9519_v6  ;;  %4636 = vmatprep.mubr.bf16.mxu0 %v12964_v0  ;;  %v9544_v5 = vld [vmem:[%s9910_s26 + $0x1a0] ss:$784 sps:$4 sm:$0xff]   ;;  %v9547_v6 = vld [vmem:[%s9910_s26 + $0x1a8] ss:$784 sps:$4 sm:$0xff]  }
  0xd1   : > { %4679 = vmatprep.mubr.bf16.mxu1 %v12964_v0 }
  0xd2   : > { %4607 = vmatpush1.bf16.msra.mxu0 %v9514_v7  ;;  %v10510_v7 = vld [vmem:[%s12954_s3 + $0x80] sm:$0xff] }
  0xd3   : > { %4650 = vmatpush1.bf16.msra.mxu1 %v9517_v8  ;;  %4690 = vmatprep.subr.bf16.mxu0 %v9522_v9  ;;  %v10467_v9 = vld [vmem:[%s12954_s3 + $0x378] sm:$0xff]  ;;  %v10546_v8 = vld [vmem:[%s12954_s3 + $0x90] sm:$0xff] }
  0xd4   : > { %4733 = vmatprep.subr.bf16.mxu1 %v9525_v10  ;;  %v10472_v10 = vld [vmem:[%s12954_s3 + $0x70] sm:$0xff]  ;;  %12990 = vst [vmem:[#allocation4_spill] sm:$0xff] %v10546_v8 }
  0xd5   : > { %9147 = vmatmul.mubr.msk.bf16.vlgmr.msra.gmra.mrb[92].mxu0 %vm2622_vm0, %v10158_v21  ;;  %v9574_v8 = vld [vmem:[%s9910_s26 + $0x7e0] ss:$784 sps:$4 sm:$0xff]  }
  0xd6   : > { %9148 = vmatmul.mubr.msk.bf16.vlgmr.msra.gmra.mrb[92].mxu1 %vm2622_vm0, %v10158_v21  ;;  %4691 = vmatpush1.bf16.msra.mxu0 %v9520_v12  ;;  %v10407_v12 = vld [vmem:[%s12954_s3 + $0x358] sm:$0xff] }
  0xd7   : > { %4734 = vmatpush1.bf16.msra.mxu1 %v9523_v13  ;;  %4692 = vmatprep.subr.bf16.mxu0 %v9528_v14  ;;  %v10412_v13 = vld [vmem:[%s12954_s3 + $0x50] sm:$0xff]  ;;  %v10417_v14 = vld [vmem:[%s12954_s3 + $0x58] sm:$0xff] }
  0xd8   : > { %4735 = vmatprep.subr.bf16.mxu1 %v9531_v15  ;;  %4722 = vmatprep.mubr.bf16.mxu0 %v12964_v0  ;;  %v9552_v15 = vld [vmem:[%s9910_s26 + $0x7c4] ss:$784 sps:$4 sm:$0xff]  }
  0xd9   : > { %4765 = vmatprep.mubr.bf16.mxu1 %v12964_v0 }
  0xda   : > { %4693 = vmatpush1.bf16.msra.mxu0 %v9526_v16  ;;  %v9555_v16 = vld [vmem:[%s9910_s26 + $0x7cc] ss:$784 sps:$4 sm:$0xff]  }
  0xdb   : > { %4736 = vmatpush1.bf16.msra.mxu1 %v9529_v17  ;;  %4776 = vmatprep.subr.bf16.mxu0 %v9534_v18  ;;  %v9561_v17 = vld [vmem:[%s9910_s26 + $0x1bc] ss:$784 sps:$4 sm:$0xff]   ;;  %v9556_v18 = vld [vmem:[%s9910_s26 + $0x1b0] ss:$784 sps:$4 sm:$0xff]  }
  0xdc   : > { %4819 = vmatprep.subr.bf16.mxu1 %v9537_v19  ;;  %v9558_v19 = vld [vmem:[%s9910_s26 + $0x1b4] ss:$784 sps:$4 sm:$0xff]  }
  0xdd   : > { %9149 = vmatmul.mubr.msk.bf16.vlgmr.msra.gmra.mrb[96].mxu0 %vm2622_vm0, %v10158_v21 }
  0xde   : > { %9150 = vmatmul.mubr.msk.bf16.vlgmr.msra.gmra.mrb[96].mxu1 %vm2622_vm0, %v10158_v21  ;;  %4777 = vmatpush1.bf16.msra.mxu0 %v9532_v25  ;;  %v10437_v25 = vld [vmem:[%s12954_s3 + $0x368] sm:$0xff] }
  0xdf   : > { %4820 = vmatpush1.bf16.msra.mxu1 %v9535_v26  ;;  %4778 = vmatprep.subr.bf16.mxu0 %v9540_v29  ;;  %v10428_v26 = vld [vmem:[%s12954_s3 + $0x360] sm:$0xff]  ;;  %v9559_v29 = vld [vmem:[%s9910_s26 + $0x1b8] ss:$784 sps:$4 sm:$0xff]  }
  0xe0   : > { %4821 = vmatprep.subr.bf16.mxu1 %v9543_v30  ;;  %4808 = vmatprep.mubr.bf16.mxu0 %v12964_v0  ;;  %v10451_v30 = vld [vmem:[%s12954_s3 + $0x68] sm:$0xff] }
  0xe1   : > { %4851 = vmatprep.mubr.bf16.mxu1 %v12964_v0 }
  0xe2   : > { %4779 = vmatpush1.bf16.msra.mxu0 %v9538_v42  ;;  %v10442_v42 = vld [vmem:[%s12954_s3 + $0x60] sm:$0xff] }
  0xe3   : > { %4822 = vmatpush1.bf16.msra.mxu1 %v9541_v43  ;;  %4862 = vmatprep.subr.bf16.mxu0 %v9546_v49  ;;  %v10456_v49 = vld [vmem:[%s12954_s3 + $0x370] sm:$0xff]  ;;  %v9553_v43 = vld [vmem:[%s9910_s26 + $0x7c8] ss:$784 sps:$4 sm:$0xff]  }
  0xe4   : > { %4905 = vmatprep.subr.bf16.mxu1 %v9549_v50  ;;  %v9550_v50 = vld [vmem:[%s9910_s26 + $0x7c0] ss:$784 sps:$4 sm:$0xff]  }
  0xe5   : > { %9151 = vmatmul.mubr.msk.bf16.vlgmr.msra.gmra.mrb[100].mxu0 %vm2622_vm0, %v10158_v21 }
  0xe6   : > { %9152 = vmatmul.mubr.msk.bf16.vlgmr.msra.gmra.mrb[100].mxu1 %vm2622_vm0, %v10158_v21  ;;  %4863 = vmatpush1.bf16.msra.mxu0 %v9544_v5  ;;  %v10555_v5 = vld [vmem:[%s12954_s3 + $0x98] sm:$0xff] }
  0xe7   : > { %4906 = vmatpush1.bf16.msra.mxu1 %v9547_v6  ;;  %4864 = vmatprep.subr.bf16.mxu0 %v9552_v15  ;;  %v10515_v15 = vld [vmem:[%s12954_s3 + $0x88] sm:$0xff]  ;;  %12991 = vst [vmem:[#allocation5_spill] sm:$0xff] %v10555_v5  ;;  %v10560_v6 = vld [vmem:[%s12954_s3 + $0x3a0] sm:$0xff] }
  0xe8   : > { %4907 = vmatprep.subr.bf16.mxu1 %v9555_v16  ;;  %v10520_v16 = vld [vmem:[%s12954_s3 + $0x390] sm:$0xff]  ;;  %4894 = vmatprep.mubr.bf16.mxu0 %v12964_v0  ;;  %12992 = vst [vmem:[#allocation6_spill] sm:$0xff] %v10560_v6 }
  0xe9   : > { %12988 = vst [vmem:[#allocation2_spill] sm:$0xff] %v10520_v16  ;;  %4937 = vmatprep.mubr.bf16.mxu1 %v12964_v0 }
  0xea   : > { %4865 = vmatpush1.bf16.msra.mxu0 %v9550_v50 }
  0xeb   : > { %4908 = vmatpush1.bf16.msra.mxu1 %v9553_v43  ;;  %v10565_v43 = vld [vmem:[%s12954_s3 + $0x3a8] sm:$0xff]  ;;  %4948 = vmatprep.subr.bf16.mxu0 %v9558_v19  ;;  %v10612_v19 = vld [vmem:[%s12954_s3 + $0xb0] sm:$0xff] }
  0xec   : > { %12993 = vst [vmem:[#allocation7_spill] sm:$0xff] %v10565_v43  ;;  %4991 = vmatprep.subr.bf16.mxu1 %v9561_v17  ;;  %12998 = vst [vmem:[#allocation12_spill] sm:$0xff] %v10612_v19  ;;  %v9573_v17 = vld [vmem:[%s9910_s26 + $0x1cc] ss:$784 sps:$4 sm:$0xff]   ;;  %v9576_v43 = vld [vmem:[%s9910_s26 + $0x7e4] ss:$784 sps:$4 sm:$0xff]  }
  0xed   : > { %9153 = vmatmul.mubr.msk.bf16.vlgmr.msra.gmra.mrb[104].mxu0 %vm2622_vm0, %v10158_v21 }
  0xee   : > { %9154 = vmatmul.mubr.msk.bf16.vlgmr.msra.gmra.mrb[104].mxu1 %vm2622_vm0, %v10158_v21  ;;  %4949 = vmatpush1.bf16.msra.mxu0 %v9556_v18  ;;  %v10617_v18 = vld [vmem:[%s12954_s3 + $0xb8] sm:$0xff] }
  0xef   : > { %4992 = vmatpush1.bf16.msra.mxu1 %v9559_v29  ;;  %12999 = vst [vmem:[#allocation13_spill] sm:$0xff] %v10617_v18  ;;  %4950 = vmatprep.subr.bf16.mxu0 %v9564_v59  ;;  %v10619_v29 = vpop.permute.xlu0 %654  ;;  %v9571_v59 = vld [vmem:[%s9910_s26 + $0x1c8] ss:$784 sps:$4 sm:$0xff]  }
  0xf0   : > { %4993 = vmatprep.subr.bf16.mxu1 %v9567_v58  ;;  %v2660_v38 = vpop.f32.mrb[0].mxu0  ;;  %4980 = vmatprep.mubr.bf16.mxu0 %v12964_v0  ;;  %v9568_v58 = vld [vmem:[%s9910_s26 + $0x1c0] ss:$784 sps:$4 sm:$0xff]  }
  0xf1   : > { %v2703_v37 = vpop.f32.mrb[0].mxu1  ;;  %5023 = vmatprep.mubr.bf16.mxu1 %v12964_v0  ;;  %v2661_v54 = vadd.f32 %v2660_v38, %v10535_v60  ;;  %v2662_v53 = vpop.f32.mrb[1].mxu0  ;;  %v10652_v0 = vld [vmem:[%s12954_s3 + $0x3c8] sm:$0xff] }
  0xf2   : > { %v2704_v39 = vadd.f32 %v2703_v37, %v10535_v60  ;;  %v2705_v52 = vpop.f32.mrb[1].mxu1  ;;  %v2663_v50 = vadd.f32 %v2662_v53, %v10535_v60  ;;  %v2664_v38 = vpop.f32.mrb[2].mxu0  ;;  %4951 = vmatpush1.bf16.msra.mxu0 %v9562_v51  ;;  %13001 = vst [vmem:[#allocation15_spill] sm:$0xff] %v10652_v0 }
  0xf3   : > { %v2706_v44 = vadd.f32 %v2705_v52, %v10535_v60  ;;  %v2707_v33 = vpop.f32.mrb[2].mxu1  ;;  %4994 = vmatpush1.bf16.msra.mxu1 %v9565_v47  ;;  %v6840_v19 = vmax.f32 %v2661_v54, 0.0  ;;  %v2665_v53 = vadd.f32 %v2664_v38, %v10619_v29  ;;  %v2666_v63 = vpop.f32.mrb[3].mxu0  ;;  %5034 = vmatprep.subr.bf16.mxu0 %v9570_v45  ;;  %v9579_v47 = vld [vmem:[%s9910_s26 + $0x7ec] ss:$784 sps:$4 sm:$0xff]   ;;  %v13002_v54 = vunpack.c.l.bf16 %v10269_v11  ;;  %v10671_v45 = vld [vmem:[%s12954_s3 + $0xc0] sm:$0xff] }
  0xf4   : > { %v6842_v46 = vmax.f32 %v2704_v39, 0.0  ;;  %v2708_v52 = vadd.f32 %v2707_v33, %v10619_v29  ;;  %v2709_v51 = vpop.f32.mrb[3].mxu1  ;;  %5077 = vmatprep.subr.bf16.mxu1 %v9573_v17  ;;  %v6841_v37 = vmax.f32 %v2663_v50, 0.0  ;;  %v2667_v6 = vadd.f32 %v2666_v63, %v10619_v29  ;;  %v9577_v33 = vld [vmem:[%s9910_s26 + $0x7e8] ss:$784 sps:$4 sm:$0xff]   ;;  %13003 = vst [vmem:[#allocation16_spill] sm:$0xff] %v10671_v45 }
  0xf5   : > { %v6843_v18 = vmax.f32 %v2706_v44, 0.0  ;;  %v2710_v5 = vadd.f32 %v2709_v51, %v10619_v29  ;;  %v7820_v39 = vmul.f32 %v13002_v54, %v6840_v19  ;;  %v7036_v61 = vmax.f32 %v2665_v53, 0.0  ;;  %9155 = vmatmul.mubr.msk.bf16.vlgmr.msra.gmra.mrb[108].mxu0 %vm2622_vm0, %v10158_v21 }
  0xf6   : > { %v7038_v38 = vmax.f32 %v2708_v52, 0.0  ;;  %9156 = vmatmul.mubr.msk.bf16.vlgmr.msra.gmra.mrb[108].mxu1 %vm2622_vm0, %v10158_v21  ;;  %v13004_v63 = vunpack.c.l.bf16 %v10274_v20  ;;  %v13005_v19 = vunpack.c.h.bf16 %v10269_v11  ;;  %v7037_v53 = vmax.f32 %v2667_v6, 0.0  ;;  %5035 = vmatpush1.bf16.msra.mxu0 %v9568_v58  ;;  %v10680_v21 = vld [vmem:[%s12954_s3 + $0xc8] sm:$0xff] }
  0xf7   : > { %v7039_v52 = vmax.f32 %v2710_v5, 0.0  ;;  %5078 = vmatpush1.bf16.msra.mxu1 %v9571_v59  ;;  %v13006_v51 = vunpack.c.h.bf16 %v10274_v20  ;;  %v13007_v44 = vunpack.c.l.bf16 %v10279_v22  ;;  %5036 = vmatprep.subr.bf16.mxu0 %v9576_v43  ;;  %v9582_v5 = vld [vmem:[%s9910_s26 + $0x1d4] ss:$784 sps:$4 sm:$0xff]   ;;  %v13009_v59 = vunpack.c.h.bf16 %v10279_v22 }
  0xf8   : > { %v7822_v50 = vmul.f32 %v13004_v63, %v6842_v46  ;;  %v7821_v17 = vmul.f32 %v13005_v19, %v6841_v37  ;;  %v13008_v46 = vunpack.c.l.bf16 %v10284_v23  ;;  %5079 = vmatprep.subr.bf16.mxu1 %v9579_v47  ;;  %v13010_v63 = vunpack.c.h.bf16 %v10284_v23  ;;  %v2746_v20 = vpop.f32.mrb[4].mxu0 }
  0xf9   : > { %v7823_v54 = vmul.f32 %v13006_v51, %v6843_v18  ;;  %v8016_v16 = vmul.f32 %v13007_v44, %v7036_v61  ;;  %v8017_v37 = vmul.f32 %v13009_v59, %v7037_v53  ;;  %v2789_v18 = vpop.f32.mrb[4].mxu1  ;;  %v13011_v51 = vmov 0   ;;  %v9585_v61 = vld [vmem:[%s9910_s26 + $0x1dc] ss:$784 sps:$4 sm:$0xff]  }
  0xfa   : > { %v8018_v11 = vmul.f32 %v13008_v46, %v7038_v38  ;;  %v8212_v58 = vadd.f32 %v7821_v17, %v7820_v39  ;;  %v8019_v19 = vmul.f32 %v13010_v63, %v7039_v52  ;;  %5066 = vmatprep.mubr.bf16.mxu0 %v13011_v51  ;;  %5109 = vmatprep.mubr.bf16.mxu1 %v13011_v51  ;;  %v2748_v38 = vpop.f32.mrb[5].mxu0  ;;  %v2791_v22 = vpop.f32.mrb[5].mxu1 }
  0xfb   : > { %v2747_v47 = vadd.f32 %v2746_v20, %v10535_v60  ;;  %v2790_v39 = vadd.f32 %v2789_v18, %v10535_v60  ;;  %v8409_v53 = vadd.f32 %v8017_v37, %v8016_v16  ;;  %v2749_v52 = vadd.f32 %v2748_v38, %v10535_v60  ;;  %v2750_v59 = vpop.f32.mrb[6].mxu0  ;;  %v2793_v63 = vpop.f32.mrb[6].mxu1  ;;  %5037 = vmatpush1.bf16.msra.mxu0 %v9574_v8  ;;  %v9580_v20 = vld [vmem:[%s9910_s26 + $0x1d0] ss:$784 sps:$4 sm:$0xff]   ;;  %v9583_v16 = vld [vmem:[%s9910_s26 + $0x1d8] ss:$784 sps:$4 sm:$0xff]  }
  0xfc   : > { %v8213_v17 = vadd.f32 %v8212_v58, %v7822_v50  ;;  %v2792_v46 = vadd.f32 %v2791_v22, %v10535_v60  ;;  %v2751_v6 = vadd.f32 %v2750_v59, %v10619_v29  ;;  %v2794_v44 = vadd.f32 %v2793_v63, %v10619_v29  ;;  %5080 = vmatpush1.bf16.msra.mxu1 %v9577_v33  ;;  %v2752_v50 = vpop.f32.mrb[7].mxu0  ;;  %v2795_v58 = vpop.f32.mrb[7].mxu1  ;;  %v9588_v8 = vld [vmem:[%s9910_s26 + $0x7f4] ss:$784 sps:$4 sm:$0xff]  }
  0xfd   : > { %v6844_v43 = vmax.f32 %v2747_v47, 0.0  ;;  %v6846_v18 = vmax.f32 %v2790_v39, 0.0  ;;  %5120 = vmatprep.subr.bf16.mxu0 %v9582_v5  ;;  %v8410_v38 = vadd.f32 %v8409_v53, %v8018_v11  ;;  %v6845_v22 = vmax.f32 %v2749_v52, 0.0  ;;  %5163 = vmatprep.subr.bf16.mxu1 %v9585_v61  ;;  %v10714_v33 = vld [vmem:[%s12952_s1] sm:$0xff]   ;;  %v10723_v5 = vld [vmem:[%s12954_s3 + $0x3d0] sm:$0xff] }
  0xfe   : > { %v8214_v37 = vadd.f32 %v8213_v17, %v7823_v54  ;;  %v6847_v23 = vmax.f32 %v2792_v46, 0.0  ;;  %v13012_v47 = vunpack.c.l.bf16 %v10289_v24  ;;  %v7040_v59 = vmax.f32 %v2751_v6, 0.0  ;;  %9157 = vmatmul.mubr.msk.bf16.vlgmr.msra.gmra.mrb[112].mxu0 %vm2622_vm0, %v10714_v33  ;;  %v9591_v54 = vld [vmem:[%s9910_s26 + $0x7fc] ss:$784 sps:$4 sm:$0xff]   ;;  %v9586_v52 = vld [vmem:[%s9910_s26 + $0x7f0] ss:$784 sps:$4 sm:$0xff]  }
  0xff   : > { %v7042_v0 = vmax.f32 %v2794_v44, 0.0  ;;  %v8411_v61 = vadd.f32 %v8410_v38, %v8019_v19  ;;  %v13013_v6 = vunpack.c.l.bf16 %v10298_v27  ;;  %v13014_v44 = vunpack.c.h.bf16 %v10289_v24  ;;  %9158 = vmatmul.mubr.msk.bf16.vlgmr.msra.gmra.mrb[112].mxu1 %vm2622_vm0, %v10714_v33  ;;  %v9589_v46 = vld [vmem:[%s9910_s26 + $0x7f8] ss:$784 sps:$4 sm:$0xff]   ;;  %5121 = vmatpush1.bf16.msra.mxu0 %v9580_v20  ;;  %v9594_v24 = vld [vmem:[%s9910_s26 + $0x1e4] ss:$784 sps:$4 sm:$0xff]  }
 0x100   : > { %v7824_v39 = vmul.f32 %v13012_v47, %v6844_v43  ;;  %v2753_v53 = vadd.f32 %v2752_v50, %v10619_v29  ;;  %v13015_v47 = vunpack.c.h.bf16 %v10298_v27  ;;  %v13016_v19 = vunpack.c.l.bf16 %v10303_v28  ;;  %5164 = vmatpush1.bf16.msra.mxu1 %v9583_v16  ;;  %5122 = vmatprep.subr.bf16.mxu0 %v9588_v8  ;;  %v9600_v27 = vld [vmem:[%s9910_s26 + $0x804] ss:$784 sps:$4 sm:$0xff]  }
 0x101   : > { %v7826_v43 = vmul.f32 %v13013_v6, %v6846_v18  ;;  %v7825_v17 = vmul.f32 %v13014_v44, %v6845_v22  ;;  %v2796_v18 = vadd.f32 %v2795_v58, %v10619_v29  ;;  %v13017_v22 = vunpack.c.l.bf16 %v10310_v31  ;;  %v2832_v44 = vpop.f32.mrb[8].mxu0  ;;  %v2875_v45 = vpop.f32.mrb[8].mxu1  ;;  %5165 = vmatprep.subr.bf16.mxu1 %v9591_v54  ;;  %5152 = vmatprep.mubr.bf16.mxu0 %v13011_v51 }
 0x102   : > { %v8215_v63 = vadd.f32 %v8214_v37, %v7824_v39  ;;  %v7827_v11 = vmul.f32 %v13015_v47, %v6847_v23  ;;  %v8020_v38 = vmul.f32 %v13016_v19, %v7040_v59  ;;  %v7041_v6 = vmax.f32 %v2753_v53, 0.0  ;;  %v2834_v59 = vpop.f32.mrb[9].mxu0  ;;  %v2877_v47 = vpop.f32.mrb[9].mxu1  ;;  %5195 = vmatprep.mubr.bf16.mxu1 %v13011_v51 }
 0x103   : > { %v8022_v50 = vmul.f32 %v13017_v22, %v7042_v0  ;;  %v7043_v58 = vmax.f32 %v2796_v18, 0.0  ;;  %v2833_v20 = vadd.f32 %v2832_v44, %v10535_v60  ;;  %v13018_v0 = vunpack.c.h.bf16 %v10303_v28  ;;  %5123 = vmatpush1.bf16.msra.mxu0 %v9586_v52 }
 0x104   : > { %v8216_v23 = vadd.f32 %v8215_v63, %v7825_v17  ;;  %v8412_v39 = vadd.f32 %v8411_v61, %v8020_v38  ;;  %v2876_v8 = vadd.f32 %v2875_v45, %v10535_v60  ;;  %v2835_v53 = vadd.f32 %v2834_v59, %v10535_v60  ;;  %v2836_v17 = vpop.f32.mrb[10].mxu0  ;;  %v2879_v63 = vpop.f32.mrb[10].mxu1  ;;  %v9592_v61 = vld [vmem:[%s9910_s26 + $0x1e0] ss:$784 sps:$4 sm:$0xff]   ;;  %v9595_v38 = vld [vmem:[%s9910_s26 + $0x1e8] ss:$784 sps:$4 sm:$0xff]   ;;  %5166 = vmatpush1.bf16.msra.mxu1 %v9589_v46 }
 0x105   : > { %v8021_v16 = vmul.f32 %v13018_v0, %v7041_v6  ;;  %v2878_v19 = vadd.f32 %v2877_v47, %v10535_v60  ;;  %v13019_v54 = vunpack.c.h.bf16 %v10310_v31  ;;  %v6848_v44 = vmax.f32 %v2833_v20, 0.0  ;;  %v2838_v45 = vpop.f32.mrb[11].mxu0  ;;  %v2881_v6 = vpop.f32.mrb[11].mxu1  ;;  %5206 = vmatprep.subr.bf16.mxu0 %v9594_v24  ;;  %5249 = vmatprep.subr.bf16.mxu1 %v9597_v36  ;;  %v9603_v20 = vld [vmem:[%s9910_s26 + $0x80c] ss:$784 sps:$4 sm:$0xff]  }
 0x106   : > { %v8217_v18 = vadd.f32 %v8216_v23, %v7826_v43  ;;  %v2837_v28 = vadd.f32 %v2836_v17, %v10619_v29  ;;  %v6850_v47 = vmax.f32 %v2876_v8, 0.0  ;;  %v6849_v0 = vmax.f32 %v2835_v53, 0.0  ;;  %v10762_v43 = vld [vmem:[%s12954_s3 + $0x3d8] sm:$0xff]  ;;  %9159 = vmatmul.mubr.msk.bf16.vlgmr.msra.gmra.mrb[116].mxu0 %vm2622_vm0, %v10714_v33 }
 0x107   : > { %v8023_v22 = vmul.f32 %v13019_v54, %v7043_v58  ;;  %v8413_v59 = vadd.f32 %v8412_v39, %v8021_v16  ;;  %v6851_v37 = vmax.f32 %v2878_v19, 0.0  ;;  %v13020_v23 = vunpack.c.l.bf16 %v10315_v32  ;;  %9160 = vmatmul.mubr.msk.bf16.vlgmr.msra.gmra.mrb[116].mxu1 %vm2622_vm0, %v10714_v33  ;;  %5207 = vmatpush1.bf16.msra.mxu0 %v9592_v61 }
 0x108   : > { %v8218_v31 = vadd.f32 %v8217_v18, %v7827_v11  ;;  %v7044_v58 = vmax.f32 %v2837_v28, 0.0  ;;  %v2880_v39 = vadd.f32 %v2879_v63, %v10619_v29  ;;  %v13021_v46 = vunpack.c.l.bf16 %v10321_v34  ;;  %5250 = vmatpush1.bf16.msra.mxu1 %v9595_v38  ;;  %v2918_v28 = vpop.f32.mrb[12].mxu0  ;;  %5208 = vmatprep.subr.bf16.mxu0 %v9600_v27 }
 0x109   : > { %v7828_v52 = vmul.f32 %v13020_v23, %v6848_v44  ;;  %v8414_v16 = vadd.f32 %v8413_v59, %v8022_v50  ;;  %v13022_v8 = vunpack.c.h.bf16 %v10315_v32  ;;  %v13023_v19 = vunpack.c.h.bf16 %v10321_v34  ;;  %v9598_v50 = vld [vmem:[%s9910_s26 + $0x800] ss:$784 sps:$4 sm:$0xff]   ;;  %v9601_v32 = vld [vmem:[%s9910_s26 + $0x808] ss:$784 sps:$4 sm:$0xff]   ;;  %v2961_v59 = vpop.f32.mrb[12].mxu1  ;;  %v2920_v23 = vpop.f32.mrb[13].mxu0  ;;  %5251 = vmatprep.subr.bf16.mxu1 %v9603_v20  ;;  %5238 = vmatprep.mubr.bf16.mxu0 %v13011_v51 }
 0x10a   : > { %v7830_v24 = vmul.f32 %v13021_v46, %v6850_v47  ;;  %v13024_v18 = vunpack.c.l.bf16 %v10326_v35  ;;  %v2839_v36 = vadd.f32 %v2838_v45, %v10619_v29  ;;  %v7674_v54 = vunpack.c.l.bf16 %v10762_v43  ;;  %v9606_v47 = vld [vmem:[%s9910_s26 + $0x1f4] ss:$784 sps:$4 sm:$0xff]   ;;  %5281 = vmatprep.mubr.bf16.mxu1 %v13011_v51 }
 0x10b   : > { %v7829_v53 = vmul.f32 %v13022_v8, %v6849_v0  ;;  %v7831_v11 = vmul.f32 %v13023_v19, %v6851_v37  ;;  %v8219_v17 = vadd.f32 %v8218_v31, %v7828_v52  ;;  %v8415_v34 = vadd.f32 %v8414_v16, %v8023_v22  ;;  %v2963_v52 = vpop.f32.mrb[13].mxu1  ;;  %v9609_v22 = vld [vmem:[%s9910_s26 + $0x1fc] ss:$784 sps:$4 sm:$0xff]   ;;  %v2922_v16 = vpop.f32.mrb[14].mxu0  ;;  %5209 = vmatpush1.bf16.msra.mxu0 %v9598_v50 }
 0x10c   : > { %v8024_v63 = vmul.f32 %v13024_v18, %v7044_v58  ;;  %v7046_v37 = vmax.f32 %v2880_v39, 0.0  ;;  %v2882_v44 = vadd.f32 %v2881_v6, %v10619_v29  ;;  %v7673_v45 = vunpack.c.h.bf16 %v10723_v5  ;;  %v2965_v46 = vpop.f32.mrb[14].mxu1  ;;  %v2924_v18 = vpop.f32.mrb[15].mxu0  ;;  %5252 = vmatpush1.bf16.msra.mxu1 %v9601_v32  ;;  %5292 = vmatprep.subr.bf16.mxu0 %v9606_v47 }
 0x10d   : > { %v8220_v0 = vadd.f32 %v8219_v17, %v7829_v53  ;;  %v7045_v31 = vmax.f32 %v2839_v36, 0.0  ;;  %v2919_v61 = vadd.f32 %v2918_v28, %v10535_v60  ;;  %v7675_v6 = vunpack.c.h.bf16 %v10762_v43  ;;  %v9604_v36 = vld [vmem:[%s9910_s26 + $0x1f0] ss:$784 sps:$4 sm:$0xff]   ;;  %5335 = vmatprep.subr.bf16.mxu1 %v9609_v22 }
 0x10e   : > { %v8416_v38 = vadd.f32 %v8415_v34, %v8024_v63  ;;  %v7047_v58 = vmax.f32 %v2882_v44, 0.0  ;;  %v2962_v27 = vadd.f32 %v2961_v59, %v10535_v60  ;;  %v2921_v39 = vadd.f32 %v2920_v23, %v10535_v60  ;;  %v2967_v63 = vpop.f32.mrb[15].mxu1  ;;  %9161 = vmatmul.mubr.msk.bf16.vlgmr.msra.gmra.mrb[120].mxu0 %vm2622_vm0, %v10714_v33  ;;  %v9730_v43 = vld [vmem:[%s9910_s26 + $0x8b0] ss:$784 sps:$4 sm:$0xff]  }
 0x10f   : > { %v8221_v8 = vadd.f32 %v8220_v0, %v7830_v24  ;;  %v13025_v20 = vunpack.c.h.bf16 %v10326_v35  ;;  %v6852_v19 = vmax.f32 %v2919_v61, 0.0  ;;  %v2964_v17 = vadd.f32 %v2963_v52, %v10535_v60  ;;  %v9607_v24 = vld [vmem:[%s9910_s26 + $0x1f8] ss:$784 sps:$4 sm:$0xff]   ;;  %v9612_v35 = vld [vmem:[%s9910_s26 + $0x814] ss:$784 sps:$4 sm:$0xff]   ;;  %9162 = vmatmul.mubr.msk.bf16.vlgmr.msra.gmra.mrb[120].mxu1 %vm2622_vm0, %v10714_v33  ;;  %5293 = vmatpush1.bf16.msra.mxu0 %v9604_v36 }
 0x110   : > { %v13026_v34 = vunpack.c.l.bf16 %v10335_v40  ;;  %v6854_v28 = vmax.f32 %v2962_v27, 0.0  ;;  %v6853_v59 = vmax.f32 %v2921_v39, 0.0  ;;  %v2923_v23 = vadd.f32 %v2922_v16, %v10619_v29  ;;  %5336 = vmatpush1.bf16.msra.mxu1 %v9607_v24  ;;  %5294 = vmatprep.subr.bf16.mxu0 %v9612_v35 }
 0x111   : > { %v8025_v53 = vmul.f32 %v13025_v20, %v7045_v31  ;;  %v8222_v0 = vadd.f32 %v8221_v8, %v7831_v11  ;;  %v13027_v50 = vunpack.c.l.bf16 %v10340_v41  ;;  %v6855_v52 = vmax.f32 %v2964_v17, 0.0  ;;  %v9615_v20 = vld [vmem:[%s9910_s26 + $0x81c] ss:$784 sps:$4 sm:$0xff]   ;;  %5324 = vmatprep.mubr.bf16.mxu0 %v13011_v51  ;;  %5367 = vmatprep.mubr.bf16.mxu1 %v13011_v51 }
 0x112   : > { %v8026_v44 = vmul.f32 %v13026_v34, %v7046_v37  ;;  %v13028_v37 = vunpack.c.h.bf16 %v10335_v40  ;;  %v13029_v39 = vunpack.c.h.bf16 %v10340_v41  ;;  %v7048_v32 = vmax.f32 %v2923_v23, 0.0  ;;  %v9610_v40 = vld [vmem:[%s9910_s26 + $0x810] ss:$784 sps:$4 sm:$0xff]   ;;  %5337 = vmatprep.subr.bf16.mxu1 %v9615_v20 }
 0x113   : > { %v8417_v31 = vadd.f32 %v8416_v38, %v8025_v53  ;;  %v7832_v61 = vmul.f32 %v13027_v50, %v6852_v19  ;;  %v2966_v47 = vadd.f32 %v2965_v46, %v10619_v29  ;;  %v13030_v8 = vunpack.c.l.bf16 %v10351_v48  ;;  %v10823_v41 = vld [vmem:[%s12954_s3 + $0xd0] sm:$0xff]  ;;  %5295 = vmatpush1.bf16.msra.mxu0 %v9610_v40 }
 0x114   : > { %v8027_v27 = vmul.f32 %v13028_v37, %v7047_v58  ;;  %v7833_v16 = vmul.f32 %v13029_v39, %v6853_v59  ;;  %v2925_v22 = vadd.f32 %v2924_v18, %v10619_v29  ;;  %v9613_v58 = vld [vmem:[%s9910_s26 + $0x818] ss:$784 sps:$4 sm:$0xff]   ;;  %v13031_v46 = vunpack.c.h.bf16 %v10351_v48  ;;  %v3047_v59 = vpop.f32.mrb[16].mxu1 }
 0x115   : > { %v8418_v11 = vadd.f32 %v8417_v31, %v8026_v44  ;;  %v8223_v38 = vadd.f32 %v8222_v0, %v7832_v61  ;;  %v7834_v53 = vmul.f32 %v13030_v8, %v6854_v28  ;;  %v13032_v17 = vunpack.c.l.bf16 %v10366_v55  ;;  %v3004_v28 = vpop.f32.mrb[16].mxu0  ;;  %v3049_v48 = vpop.f32.mrb[17].mxu1  ;;  %5338 = vmatpush1.bf16.msra.mxu1 %v9613_v58 }
 0x116   : > { %v7835_v19 = vmul.f32 %v13031_v46, %v6855_v52  ;;  %v7050_v44 = vmax.f32 %v2966_v47, 0.0  ;;  %v2968_v18 = vadd.f32 %v2967_v63, %v10619_v29  ;;  %v7049_v31 = vmax.f32 %v2925_v22, 0.0  ;;  %v3006_v61 = vpop.f32.mrb[17].mxu0  ;;  %v9618_v52 = vld [vmem:[%s9910_s26 + $0x204] ss:$784 sps:$4 sm:$0xff]   ;;  %v3051_v24 = vpop.f32.mrb[18].mxu1  ;;  %9163 = vmatmul.mubr.msk.bf16.vlgmr.msra.gmra.mrb[124].mxu0 %vm2622_vm0, %v10714_v33 }
 0x117   : > { %v8028_v34 = vmul.f32 %v13032_v17, %v7048_v32  ;;  %v8419_v23 = vadd.f32 %v8418_v11, %v8027_v27  ;;  %v8224_v0 = vadd.f32 %v8223_v38, %v7833_v16  ;;  %v3005_v50 = vadd.f32 %v3004_v28, %v10535_v60  ;;  %v3008_v36 = vpop.f32.mrb[18].mxu0  ;;  %v9621_v27 = vld [vmem:[%s9910_s26 + $0x20c] ss:$784 sps:$4 sm:$0xff]   ;;  %v3053_v8 = vpop.f32.mrb[19].mxu1  ;;  %v9616_v22 = vld [vmem:[%s9910_s26 + $0x200] ss:$784 sps:$4 sm:$0xff]   ;;  %5378 = vmatprep.subr.bf16.mxu0 %v9618_v52 }
 0x118   : > { %v7051_v37 = vmax.f32 %v2968_v18, 0.0  ;;  %v3048_v39 = vadd.f32 %v3047_v59, %v10535_v60  ;;  %v3007_v63 = vadd.f32 %v3006_v61, %v10535_v60  ;;  %v7480_v16 = vunpack.c.l.bf16 %v10823_v41  ;;  %v3010_v38 = vpop.f32.mrb[19].mxu0  ;;  %5421 = vmatprep.subr.bf16.mxu1 %v9621_v27  ;;  %9164 = vmatmul.mubr.msk.bf16.vlgmr.msra.gmra.mrb[124].mxu1 %vm2622_vm0, %v10714_v33  ;;  %v9630_v52 = vld [vmem:[%s9910_s26 + $0x214] ss:$784 sps:$4 sm:$0xff]  }
 0x119   : > { %v8225_v32 = vadd.f32 %v8224_v0, %v7834_v53  ;;  %v8420_v35 = vadd.f32 %v8419_v23, %v8028_v34  ;;  %v13033_v20 = vunpack.c.h.bf16 %v10366_v55  ;;  %v6856_v11 = vmax.f32 %v3005_v50, 0.0  ;;  %v9619_v53 = vld [vmem:[%s9910_s26 + $0x208] ss:$784 sps:$4 sm:$0xff]   ;;  %v9624_v50 = vld [vmem:[%s9910_s26 + $0x824] ss:$784 sps:$4 sm:$0xff]   ;;  %5379 = vmatpush1.bf16.msra.mxu0 %v9616_v22  ;;  %5410 = vmatprep.mubr.bf16.mxu0 %v13011_v51 }
 0x11a   : > { %v13034_v46 = vunpack.c.l.bf16 %v10371_v56  ;;  %v6858_v18 = vmax.f32 %v3048_v39, 0.0  ;;  %v6857_v28 = vmax.f32 %v3007_v63, 0.0  ;;  %v3050_v59 = vadd.f32 %v3049_v48, %v10535_v60  ;;  %v9622_v63 = vld [vmem:[%s9910_s26 + $0x820] ss:$784 sps:$4 sm:$0xff]   ;;  %5422 = vmatpush1.bf16.msra.mxu1 %v9619_v53  ;;  %5380 = vmatprep.subr.bf16.mxu0 %v9624_v50 }
 0x11b   : > { %v8029_v47 = vmul.f32 %v13033_v20, %v7049_v31  ;;  %v8226_v34 = vadd.f32 %v8225_v32, %v7835_v19  ;;  %v13035_v23 = vunpack.c.l.bf16 %v10376_v57  ;;  %v3009_v31 = vadd.f32 %v3008_v36, %v10619_v29  ;;  %5453 = vmatprep.mubr.bf16.mxu1 %v13011_v51 }
 0x11c   : > { %v8030_v17 = vmul.f32 %v13034_v46, %v7050_v44  ;;  %v9627_v44 = vld [vmem:[%s9910_s26 + $0x82c] ss:$784 sps:$4 sm:$0xff]   ;;  %v13036_v61 = vunpack.c.h.bf16 %v10371_v56  ;;  %v13037_v48 = vunpack.c.h.bf16 %v10376_v57  ;;  %v6859_v58 = vmax.f32 %v3050_v59, 0.0  ;;  %v9625_v56 = vld [vmem:[%s9910_s26 + $0x828] ss:$784 sps:$4 sm:$0xff]   ;;  %v3090_v46 = vpop.f32.mrb[20].mxu0 }
 0x11d   : > { %v8421_v55 = vadd.f32 %v8420_v35, %v8029_v47  ;;  %v7836_v0 = vmul.f32 %v13035_v23, %v6856_v11  ;;  %v3052_v19 = vadd.f32 %v3051_v24, %v10619_v29  ;;  %v7052_v20 = vmax.f32 %v3009_v31, 0.0  ;;  %v10866_v57 = vld [vmem:[%s12954_s3 + $0xd8] sm:$0xff]  ;;  %5423 = vmatprep.subr.bf16.mxu1 %v9627_v44  ;;  %5381 = vmatpush1.bf16.msra.mxu0 %v9622_v63 }
 0x11e   : > { %v8031_v39 = vmul.f32 %v13036_v61, %v7051_v37  ;;  %v7837_v40 = vmul.f32 %v13037_v48, %v6857_v28  ;;  %v3011_v36 = vadd.f32 %v3010_v38, %v10619_v29  ;;  %v13038_v37 = vunpack.c.l.bf16 %v10385_v62  ;;  %5424 = vmatpush1.bf16.msra.mxu1 %v9625_v56  ;;  %5464 = vmatprep.subr.bf16.mxu0 %v9630_v52 }
 0x11f   : > { %v8422_v32 = vadd.f32 %v8421_v55, %v8030_v17  ;;  %v8227_v35 = vadd.f32 %v8226_v34, %v7836_v0  ;;  %v13039_v27 = vunpack.c.h.bf16 %v10385_v62  ;;  %v7054_v11 = vmax.f32 %v3052_v19, 0.0  ;;  %v3133_v17 = vpop.f32.mrb[20].mxu1  ;;  %v3092_v0 = vpop.f32.mrb[21].mxu0  ;;  %v9633_v62 = vld [vmem:[%s9910_s26 + $0x21c] ss:$784 sps:$4 sm:$0xff]  }
 0x120   : > { %v7838_v24 = vmul.f32 %v13038_v37, %v6858_v18  ;;  %v3054_v38 = vadd.f32 %v3053_v8, %v10619_v29  ;;  %v13040_v34 = vunpack.c.l.bf16 %v10394_v4  ;;  %v7053_v23 = vmax.f32 %v3011_v36, 0.0  ;;  %v3135_v31 = vpop.f32.mrb[21].mxu1  ;;  %v3094_v22 = vpop.f32.mrb[22].mxu0  ;;  %5507 = vmatprep.subr.bf16.mxu1 %v9633_v62  ;;  %9165 = vmatmul.mubr.msk.bf16.vlgmr.msra.gmra.mrb[128].mxu0 %vm2622_vm0, %v10714_v33  ;;  %v9637_v62 = vld [vmem:[%s9910_s26 + $0x838] ss:$784 sps:$4 sm:$0xff]  }
 0x121   : > { %v7839_v47 = vmul.f32 %v13039_v27, %v6859_v58  ;;  %v8423_v28 = vadd.f32 %v8422_v32, %v8031_v39  ;;  %v8228_v59 = vadd.f32 %v8227_v35, %v7837_v40  ;;  %v3091_v61 = vadd.f32 %v3090_v46, %v10535_v60  ;;  %v3137_v53 = vpop.f32.mrb[22].mxu1  ;;  %v3096_v19 = vpop.f32.mrb[23].mxu0  ;;  %v9628_v35 = vld [vmem:[%s9910_s26 + $0x210] ss:$784 sps:$4 sm:$0xff]   ;;  %9166 = vmatmul.mubr.msk.bf16.vlgmr.msra.gmra.mrb[128].mxu1 %vm2622_vm0, %v10714_v33 }
 0x122   : > { %v8032_v55 = vmul.f32 %v13040_v34, %v7052_v20  ;;  %v7055_v18 = vmax.f32 %v3054_v38, 0.0  ;;  %v3134_v8 = vadd.f32 %v3133_v17, %v10535_v60  ;;  %v7482_v39 = vunpack.c.l.bf16 %v10866_v57  ;;  %v3139_v32 = vpop.f32.mrb[23].mxu1  ;;  %v9639_v34 = vld [vmem:[%s9910_s26 + $0x83c] ss:$784 sps:$4 sm:$0xff]   ;;  %5465 = vmatpush1.bf16.msra.mxu0 %v9628_v35  ;;  %5496 = vmatprep.mubr.bf16.mxu0 %v13011_v51 }
 0x123   : > { %v8229_v48 = vadd.f32 %v8228_v59, %v7838_v24  ;;  %v13041_v50 = vunpack.c.h.bf16 %v10394_v4  ;;  %v3093_v58 = vadd.f32 %v3092_v0, %v10535_v60  ;;  %v13042_v20 = vunpack.c.l.bf16 %v10407_v12  ;;  %v9631_v24 = vld [vmem:[%s9910_s26 + $0x218] ss:$784 sps:$4 sm:$0xff]   ;;  %v9636_v59 = vld [vmem:[%s9910_s26 + $0x834] ss:$784 sps:$4 sm:$0xff]   ;;  %5539 = vmatprep.mubr.bf16.mxu1 %v13011_v51 }
 0x124   : > { %v8424_v40 = vadd.f32 %v8423_v28, %v8032_v55  ;;  %v6860_v37 = vmax.f32 %v3091_v61, 0.0  ;;  %v6862_v27 = vmax.f32 %v3134_v8, 0.0  ;;  %v3136_v38 = vadd.f32 %v3135_v31, %v10535_v60  ;;  %5508 = vmatpush1.bf16.msra.mxu1 %v9631_v24  ;;  %5466 = vmatprep.subr.bf16.mxu0 %v9636_v59 }
 0x125   : > { %v8033_v44 = vmul.f32 %v13041_v50, %v7053_v23  ;;  %v8034_v36 = vmul.f32 %v13042_v20, %v7054_v11  ;;  %v8230_v46 = vadd.f32 %v8229_v48, %v7839_v47  ;;  %v6861_v17 = vmax.f32 %v3093_v58, 0.0  ;;  %v3219_v50 = vpop.f32.mrb[24].mxu1  ;;  %5509 = vmatprep.subr.bf16.mxu1 %v9639_v34 }
 0x126   : > { %v3095_v28 = vadd.f32 %v3094_v22, %v10619_v29  ;;  %v13043_v11 = vunpack.c.h.bf16 %v10407_v12  ;;  %v13044_v23 = vunpack.c.l.bf16 %v10412_v13  ;;  %v6863_v63 = vmax.f32 %v3136_v38, 0.0  ;;  %v9634_v12 = vld [vmem:[%s9910_s26 + $0x830] ss:$784 sps:$4 sm:$0xff]  }
 0x127   : > { %v8425_v4 = vadd.f32 %v8424_v40, %v8033_v44  ;;  %v3138_v56 = vadd.f32 %v3137_v53, %v10619_v29  ;;  %v13045_v31 = vunpack.c.h.bf16 %v10412_v13  ;;  %v3097_v52 = vadd.f32 %v3096_v19, %v10619_v29  ;;  %v3176_v40 = vpop.f32.mrb[24].mxu0  ;;  %v9642_v44 = vld [vmem:[%s9910_s26 + $0x224] ss:$784 sps:$4 sm:$0xff]   ;;  %5467 = vmatpush1.bf16.msra.mxu0 %v9634_v12 }
 0x128   : > { %v8035_v55 = vmul.f32 %v13043_v11, %v7055_v18  ;;  %v7840_v0 = vmul.f32 %v13044_v23, %v6860_v37  ;;  %v7056_v8 = vmax.f32 %v3095_v28, 0.0  ;;  %v13046_v22 = vunpack.c.l.bf16 %v10417_v14  ;;  %v3178_v38 = vpop.f32.mrb[25].mxu0  ;;  %5510 = vmatpush1.bf16.msra.mxu1 %v9637_v62  ;;  %5550 = vmatprep.subr.bf16.mxu0 %v9642_v44  ;;  %v9646_v44 = vld [vmem:[%s9910_s26 + $0x840] ss:$784 sps:$4 sm:$0xff]  }
 0x129   : > { %v8426_v47 = vadd.f32 %v8425_v4, %v8034_v36  ;;  %v7841_v61 = vmul.f32 %v13045_v31, %v6861_v17  ;;  %v7058_v48 = vmax.f32 %v3138_v56, 0.0  ;;  %v3140_v13 = vadd.f32 %v3139_v32, %v10619_v29  ;;  %v3180_v28 = vpop.f32.mrb[26].mxu0 }
 0x12a   : > { %v8231_v18 = vadd.f32 %v8230_v46, %v7840_v0  ;;  %v7842_v53 = vmul.f32 %v13046_v22, %v6862_v27  ;;  %v13047_v19 = vunpack.c.l.bf16 %v10428_v26  ;;  %v7057_v36 = vmax.f32 %v3097_v52, 0.0  ;;  %v3221_v46 = vpop.f32.mrb[25].mxu1  ;;  %v9645_v27 = vld [vmem:[%s9910_s26 + $0x22c] ss:$784 sps:$4 sm:$0xff]   ;;  %v3182_v56 = vpop.f32.mrb[27].mxu0  ;;  %9167 = vmatmul.mubr.msk.bf16.vlgmr.msra.gmra.mrb[132].mxu0 %vm2622_vm0, %v10714_v33 }
 0x12b   : > { %v8427_v58 = vadd.f32 %v8426_v47, %v8035_v55  ;;  %v3177_v37 = vadd.f32 %v3176_v40, %v10535_v60  ;;  %v13048_v32 = vunpack.c.h.bf16 %v10417_v14  ;;  %v7059_v24 = vmax.f32 %v3140_v13, 0.0  ;;  %v3223_v11 = vpop.f32.mrb[26].mxu1  ;;  %5593 = vmatprep.subr.bf16.mxu1 %v9645_v27  ;;  %9168 = vmatmul.mubr.msk.bf16.vlgmr.msra.gmra.mrb[132].mxu1 %vm2622_vm0, %v10714_v33 }
 0x12c   : > { %v8036_v20 = vmul.f32 %v13047_v19, %v7056_v8  ;;  %v8232_v4 = vadd.f32 %v8231_v18, %v7841_v61  ;;  %v3220_v17 = vadd.f32 %v3219_v50, %v10535_v60  ;;  %v13049_v59 = vunpack.c.h.bf16 %v10428_v26  ;;  %v3225_v14 = vpop.f32.mrb[27].mxu1  ;;  %v9643_v18 = vld [vmem:[%s9910_s26 + $0x228] ss:$784 sps:$4 sm:$0xff]   ;;  %5582 = vmatprep.mubr.bf16.mxu0 %v13011_v51  ;;  %5625 = vmatprep.mubr.bf16.mxu1 %v13011_v51 }
 0x12d   : > { %v7843_v35 = vmul.f32 %v13048_v32, %v6863_v63  ;;  %v6864_v23 = vmax.f32 %v3177_v37, 0.0  ;;  %v3179_v0 = vadd.f32 %v3178_v38, %v10535_v60  ;;  %v9640_v63 = vld [vmem:[%s9910_s26 + $0x220] ss:$784 sps:$4 sm:$0xff]   ;;  %v13050_v31 = vunpack.c.l.bf16 %v10437_v25  ;;  %5594 = vmatpush1.bf16.msra.mxu1 %v9643_v18 }
 0x12e   : > { %v8428_v55 = vadd.f32 %v8427_v58, %v8036_v20  ;;  %v8037_v34 = vmul.f32 %v13049_v59, %v7057_v36  ;;  %v8233_v47 = vadd.f32 %v8232_v4, %v7842_v53  ;;  %v6866_v8 = vmax.f32 %v3220_v17, 0.0  ;;  %v9648_v53 = vld [vmem:[%s9910_s26 + $0x844] ss:$784 sps:$4 sm:$0xff]   ;;  %v9651_v58 = vld [vmem:[%s9910_s26 + $0x84c] ss:$784 sps:$4 sm:$0xff]   ;;  %5551 = vmatpush1.bf16.msra.mxu0 %v9640_v63  ;;  %v3262_v17 = vpop.f32.mrb[28].mxu0 }
 0x12f   : > { %v8038_v61 = vmul.f32 %v13050_v31, %v7058_v48  ;;  %v3222_v52 = vadd.f32 %v3221_v46, %v10535_v60  ;;  %v13051_v22 = vunpack.c.l.bf16 %v10442_v42  ;;  %v6865_v40 = vmax.f32 %v3179_v0, 0.0  ;;  %5552 = vmatprep.subr.bf16.mxu0 %v9648_v53  ;;  %5595 = vmatprep.subr.bf16.mxu1 %v9651_v58  ;;  %v9657_v31 = vld [vmem:[%s9910_s26 + $0x23c] ss:$784 sps:$4 sm:$0xff]  }
 0x130   : > { %v8429_v26 = vadd.f32 %v8428_v55, %v8037_v34  ;;  %v3181_v50 = vadd.f32 %v3180_v28, %v10619_v29  ;;  %v8234_v48 = vadd.f32 %v8233_v47, %v7843_v35  ;;  %v13052_v19 = vunpack.c.h.bf16 %v10437_v25  ;;  %v9649_v25 = vld [vmem:[%s9910_s26 + $0x848] ss:$784 sps:$4 sm:$0xff]   ;;  %v3305_v28 = vpop.f32.mrb[28].mxu1 }
 0x131   : > { %v7844_v13 = vmul.f32 %v13051_v22, %v6864_v23  ;;  %v6867_v12 = vmax.f32 %v3222_v52, 0.0  ;;  %v3224_v62 = vadd.f32 %v3223_v11, %v10619_v29  ;;  %v13053_v37 = vunpack.c.h.bf16 %v10442_v42  ;;  %v9654_v11 = vld [vmem:[%s9910_s26 + $0x234] ss:$784 sps:$4 sm:$0xff]   ;;  %v3307_v47 = vpop.f32.mrb[29].mxu1  ;;  %5596 = vmatpush1.bf16.msra.mxu1 %v9649_v25 }
 0x132   : > { %v8039_v20 = vmul.f32 %v13052_v19, %v7059_v24  ;;  %v8430_v36 = vadd.f32 %v8429_v26, %v8038_v61  ;;  %v7060_v46 = vmax.f32 %v3181_v50, 0.0  ;;  %v3183_v4 = vadd.f32 %v3182_v56, %v10619_v29  ;;  %v3264_v56 = vpop.f32.mrb[29].mxu0  ;;  %v3309_v26 = vpop.f32.mrb[30].mxu1  ;;  %5553 = vmatpush1.bf16.msra.mxu0 %v9646_v44  ;;  %5679 = vmatprep.subr.bf16.mxu1 %v9657_v31 }
 0x133   : > { %v7845_v38 = vmul.f32 %v13053_v37, %v6865_v40  ;;  %v8235_v27 = vadd.f32 %v8234_v48, %v7844_v13  ;;  %v13054_v32 = vunpack.c.l.bf16 %v10451_v30  ;;  %v7062_v24 = vmax.f32 %v3224_v62, 0.0  ;;  %v3266_v18 = vpop.f32.mrb[30].mxu0  ;;  %v9652_v48 = vld [vmem:[%s9910_s26 + $0x230] ss:$784 sps:$4 sm:$0xff]   ;;  %v9655_v37 = vld [vmem:[%s9910_s26 + $0x238] ss:$784 sps:$4 sm:$0xff]   ;;  %5636 = vmatprep.subr.bf16.mxu0 %v9654_v11 }
 0x134   : > { %v3226_v42 = vadd.f32 %v3225_v14, %v10619_v29  ;;  %v8431_v55 = vadd.f32 %v8430_v36, %v8039_v20  ;;  %v13055_v59 = vunpack.c.l.bf16 %v10456_v49  ;;  %v7061_v23 = vmax.f32 %v3183_v4, 0.0  ;;  %v3268_v58 = vpop.f32.mrb[31].mxu0  ;;  %9170 = vmatmul.mubr.msk.bf16.vlgmr.msra.gmra.mrb[136].mxu1 %vm2622_vm0, %v10714_v33  ;;  %v9658_v11 = vld [vmem:[%s9910_s26 + $0x850] ss:$784 sps:$4 sm:$0xff]  }
 0x135   : > { %v7846_v35 = vmul.f32 %v13054_v32, %v6866_v8  ;;  %v3263_v0 = vadd.f32 %v3262_v17, %v10535_v60  ;;  %v8236_v61 = vadd.f32 %v8235_v27, %v7845_v38  ;;  %v13056_v14 = vunpack.c.h.bf16 %v10451_v30  ;;  %v3311_v30 = vpop.f32.mrb[31].mxu1  ;;  %v9660_v32 = vld [vmem:[%s9910_s26 + $0x854] ss:$784 sps:$4 sm:$0xff]   ;;  %9169 = vmatmul.mubr.msk.bf16.vlgmr.msra.gmra.mrb[136].mxu0 %vm2622_vm0, %v10714_v33  ;;  %5680 = vmatpush1.bf16.msra.mxu1 %v9655_v37 }
 0x136   : > { %v8040_v34 = vmul.f32 %v13055_v59, %v7060_v46  ;;  %v7063_v8 = vmax.f32 %v3226_v42, 0.0  ;;  %v3306_v52 = vadd.f32 %v3305_v28, %v10535_v60  ;;  %v13057_v13 = vunpack.c.h.bf16 %v10456_v49  ;;  %5637 = vmatpush1.bf16.msra.mxu0 %v9652_v48  ;;  %5668 = vmatprep.mubr.bf16.mxu0 %v13011_v51 }
 0x137   : > { %v7847_v63 = vmul.f32 %v13056_v14, %v6867_v12  ;;  %v6868_v50 = vmax.f32 %v3263_v0, 0.0  ;;  %v3265_v53 = vadd.f32 %v3264_v56, %v10535_v60  ;;  %v8237_v19 = vadd.f32 %v8236_v61, %v7846_v35  ;;  %v9663_v35 = vld [vmem:[%s9910_s26 + $0x85c] ss:$784 sps:$4 sm:$0xff]   ;;  %v3348_v61 = vpop.f32.mrb[32].mxu0  ;;  %v3391_v14 = vpop.f32.mrb[32].mxu1  ;;  %5638 = vmatprep.subr.bf16.mxu0 %v9660_v32  ;;  %5711 = vmatprep.mubr.bf16.mxu1 %v13011_v51 }
 0x138   : > { %v8432_v22 = vadd.f32 %v8431_v55, %v8040_v34  ;;  %v8041_v40 = vmul.f32 %v13057_v13, %v7061_v23  ;;  %v13058_v20 = vunpack.c.l.bf16 %v10467_v9  ;;  %v6870_v62 = vmax.f32 %v3306_v52, 0.0  ;;  %v3350_v13 = vpop.f32.mrb[33].mxu0  ;;  %5681 = vmatprep.subr.bf16.mxu1 %v9663_v35 }
 0x139   : > { %v3308_v36 = vadd.f32 %v3307_v47, %v10535_v60  ;;  %v13059_v38 = vunpack.c.l.bf16 %v10472_v10  ;;  %v6869_v4 = vmax.f32 %v3265_v53, 0.0  ;;  %v3267_v27 = vadd.f32 %v3266_v18, %v10619_v29 }
 0x13a   : > { %v8042_v12 = vmul.f32 %v13058_v20, %v7062_v24  ;;  %v8433_v49 = vadd.f32 %v8432_v22, %v8041_v40  ;;  %v8238_v24 = vadd.f32 %v8237_v19, %v7847_v63  ;;  %v13060_v42 = vunpack.c.h.bf16 %v10467_v9  ;;  %v9661_v9 = vld [vmem:[%s9910_s26 + $0x858] ss:$784 sps:$4 sm:$0xff]   ;;  %v9666_v63 = vld [vmem:[%s9910_s26 + $0x244] ss:$784 sps:$4 sm:$0xff]   ;;  %v3393_v40 = vpop.f32.mrb[33].mxu1  ;;  %v3352_v20 = vpop.f32.mrb[34].mxu0  ;;  %5639 = vmatpush1.bf16.msra.mxu0 %v9658_v11 }
 0x13b   : > { %v7848_v46 = vmul.f32 %v13059_v38, %v6868_v50  ;;  %v6871_v44 = vmax.f32 %v3308_v36, 0.0  ;;  %v3310_v25 = vadd.f32 %v3309_v26, %v10619_v29  ;;  %v13061_v55 = vunpack.c.h.bf16 %v10472_v10  ;;  %v9669_v50 = vld [vmem:[%s9910_s26 + $0x24c] ss:$784 sps:$4 sm:$0xff]   ;;  %5682 = vmatpush1.bf16.msra.mxu1 %v9661_v9  ;;  %5722 = vmatprep.subr.bf16.mxu0 %v9666_v63  ;;  %v9670_v63 = vld [vmem:[%s9910_s26 + $0x860] ss:$784 sps:$4 sm:$0xff]  }
 0x13c   : > { %v8043_v17 = vmul.f32 %v13060_v42, %v7063_v8  ;;  %v8434_v28 = vadd.f32 %v8433_v49, %v8042_v12  ;;  %v7064_v34 = vmax.f32 %v3267_v27, 0.0  ;;  %v3269_v23 = vadd.f32 %v3268_v58, %v10619_v29  ;;  %v3395_v12 = vpop.f32.mrb[34].mxu1  ;;  %5765 = vmatprep.subr.bf16.mxu1 %v9669_v50 }
 0x13d   : > { %v7849_v59 = vmul.f32 %v13061_v55, %v6869_v4  ;;  %v8239_v0 = vadd.f32 %v8238_v24, %v7848_v46  ;;  %v13062_v56 = vunpack.c.l.bf16 %v10487_v3  ;;  %v7066_v31 = vmax.f32 %v3310_v25, 0.0  ;;  %v3354_v46 = vpop.f32.mrb[35].mxu0  ;;  %v9664_v4 = vld [vmem:[%s9910_s26 + $0x240] ss:$784 sps:$4 sm:$0xff]   ;;  %9171 = vmatmul.mubr.msk.bf16.vlgmr.msra.gmra.mrb[140].mxu0 %vm2622_vm0, %v10714_v33 }
 0x13e   : > { %v3312_v10 = vadd.f32 %v3311_v30, %v10619_v29  ;;  %v8435_v8 = vadd.f32 %v8434_v28, %v8043_v17  ;;  %v13063_v52 = vunpack.c.l.bf16 %v10492_v2  ;;  %v7065_v26 = vmax.f32 %v3269_v23, 0.0  ;;  %v9667_v17 = vld [vmem:[%s9910_s26 + $0x248] ss:$784 sps:$4 sm:$0xff]   ;;  %9172 = vmatmul.mubr.msk.bf16.vlgmr.msra.gmra.mrb[140].mxu1 %vm2622_vm0, %v10714_v33  ;;  %5723 = vmatpush1.bf16.msra.mxu0 %v9664_v4 }
 0x13f   : > { %v7850_v47 = vmul.f32 %v13062_v56, %v6870_v62  ;;  %v3349_v22 = vadd.f32 %v3348_v61, %v10535_v60  ;;  %v8240_v53 = vadd.f32 %v8239_v0, %v7849_v59  ;;  %v13064_v58 = vunpack.c.h.bf16 %v10487_v3  ;;  %v3397_v3 = vpop.f32.mrb[35].mxu1  ;;  %v9672_v59 = vld [vmem:[%s9910_s26 + $0x864] ss:$784 sps:$4 sm:$0xff]   ;;  %5766 = vmatpush1.bf16.msra.mxu1 %v9667_v17  ;;  %5754 = vmatprep.mubr.bf16.mxu0 %v13011_v51  ;;  %v9676_v17 = vld [vmem:[%s9910_s26 + $0x250] ss:$784 sps:$4 sm:$0xff]  }
 0x140   : > { %v8044_v18 = vmul.f32 %v13063_v52, %v7064_v34  ;;  %v7067_v48 = vmax.f32 %v3312_v10, 0.0  ;;  %v3392_v19 = vadd.f32 %v3391_v14, %v10535_v60  ;;  %v13065_v36 = vunpack.c.h.bf16 %v10492_v2  ;;  %v9675_v34 = vld [vmem:[%s9910_s26 + $0x86c] ss:$784 sps:$4 sm:$0xff]   ;;  %5724 = vmatprep.subr.bf16.mxu0 %v9672_v59  ;;  %5797 = vmatprep.mubr.bf16.mxu1 %v13011_v51 }
 0x141   : > { %v7851_v30 = vmul.f32 %v13064_v58, %v6871_v44  ;;  %v6872_v49 = vmax.f32 %v3349_v22, 0.0  ;;  %v3351_v38 = vadd.f32 %v3350_v13, %v10535_v60  ;;  %v8241_v27 = vadd.f32 %v8240_v53, %v7850_v47  ;;  %v3434_v22 = vpop.f32.mrb[36].mxu0  ;;  %v3477_v13 = vpop.f32.mrb[36].mxu1  ;;  %v13071_v53 = vld [vmem:[#allocation2_spill] sm:$0xff]  ;;  %5767 = vmatprep.subr.bf16.mxu1 %v9675_v34  ;;  %v9679_v34 = vld [vmem:[%s9910_s26 + $0x258] ss:$784 sps:$4 sm:$0xff]  }
 0x142   : > { %v8436_v62 = vadd.f32 %v8435_v8, %v8044_v18  ;;  %v8045_v37 = vmul.f32 %v13065_v36, %v7065_v26  ;;  %v13066_v32 = vunpack.c.l.bf16 %v10501_v1  ;;  %v6874_v24 = vmax.f32 %v3392_v19, 0.0  ;;  %v3436_v19 = vpop.f32.mrb[37].mxu0  ;;  %5725 = vmatpush1.bf16.msra.mxu0 %v9670_v63 }
 0x143   : > { %v3394_v42 = vadd.f32 %v3393_v40, %v10535_v60  ;;  %v13067_v44 = vunpack.c.l.bf16 %v10510_v7  ;;  %v6873_v28 = vmax.f32 %v3351_v38, 0.0  ;;  %v3353_v55 = vadd.f32 %v3352_v20, %v10619_v29  ;;  %v9678_v40 = vld [vmem:[%s9910_s26 + $0x254] ss:$784 sps:$4 sm:$0xff]   ;;  %v3479_v20 = vpop.f32.mrb[37].mxu1 }
 0x144   : > { %v8046_v35 = vmul.f32 %v13066_v32, %v7066_v31  ;;  %v8437_v2 = vadd.f32 %v8436_v62, %v8045_v37  ;;  %v8242_v23 = vadd.f32 %v8241_v27, %v7851_v30  ;;  %v13068_v0 = vunpack.c.h.bf16 %v10501_v1  ;;  %v9673_v1 = vld [vmem:[%s9910_s26 + $0x868] ss:$784 sps:$4 sm:$0xff]   ;;  %5808 = vmatprep.subr.bf16.mxu0 %v9678_v40  ;;  %v9682_v40 = vld [vmem:[%s9910_s26 + $0x870] ss:$784 sps:$4 sm:$0xff]  }
 0x145   : > { %v7852_v25 = vmul.f32 %v13067_v44, %v6872_v49  ;;  %v6875_v11 = vmax.f32 %v3394_v42, 0.0  ;;  %v3396_v9 = vadd.f32 %v3395_v12, %v10619_v29  ;;  %v13069_v31 = vunpack.c.h.bf16 %v10510_v7  ;;  %v9681_v12 = vld [vmem:[%s9910_s26 + $0x25c] ss:$784 sps:$4 sm:$0xff]   ;;  %5768 = vmatpush1.bf16.msra.mxu1 %v9673_v1 }
 0x146   : > { %v8047_v56 = vmul.f32 %v13068_v0, %v7067_v48  ;;  %v8438_v47 = vadd.f32 %v8437_v2, %v8046_v35  ;;  %v7068_v61 = vmax.f32 %v3353_v55, 0.0  ;;  %v3355_v14 = vadd.f32 %v3354_v46, %v10619_v29  ;;  %v3438_v46 = vpop.f32.mrb[38].mxu0  ;;  %v13075_v44 = vld [vmem:[#allocation3_spill] sm:$0xff]  ;;  %v13077_v0 = vld [vmem:[#allocation4_spill] sm:$0xff]  ;;  %5851 = vmatprep.subr.bf16.mxu1 %v9681_v12 }
 0x147   : > { %v7853_v10 = vmul.f32 %v13069_v31, %v6873_v28  ;;  %v8243_v8 = vadd.f32 %v8242_v23, %v7852_v25  ;;  %v13070_v52 = vunpack.c.l.bf16 %v10515_v15  ;;  %v7070_v26 = vmax.f32 %v3396_v9, 0.0  ;;  %v3440_v42 = vpop.f32.mrb[39].mxu0  ;;  %v9684_v31 = vld [vmem:[%s9910_s26 + $0x874] ss:$784 sps:$4 sm:$0xff]  }
 0x148   : > { %v3398_v7 = vadd.f32 %v3397_v3, %v10619_v29  ;;  %v8439_v50 = vadd.f32 %v8438_v47, %v8047_v56  ;;  %v13072_v58 = vunpack.c.l.bf16 %v13071_v53  ;;  %v7069_v33 = vmax.f32 %v3355_v14, 0.0  ;;  %v3481_v3 = vpop.f32.mrb[38].mxu1 }
 0x149   : > { %v7854_v18 = vmul.f32 %v13070_v52, %v6874_v24  ;;  %v3435_v48 = vadd.f32 %v3434_v22, %v10535_v60  ;;  %v8244_v62 = vadd.f32 %v8243_v8, %v7853_v10  ;;  %v13073_v36 = vunpack.c.h.bf16 %v10515_v15  ;;  %v3483_v15 = vpop.f32.mrb[39].mxu1  ;;  %v9687_v10 = vld [vmem:[%s9910_s26 + $0x87c] ss:$784 sps:$4 sm:$0xff]  }
 0x14a   : > { %v8048_v30 = vmul.f32 %v13072_v58, %v7068_v61  ;;  %v7071_v49 = vmax.f32 %v3398_v7, 0.0  ;;  %v3478_v38 = vadd.f32 %v3477_v13, %v10535_v60  ;;  %v13074_v27 = vunpack.c.h.bf16 %v13071_v53  ;;  %v11055_v13 = vld [vmem:[%s12952_s1] sm:$0xff]   ;;  %v13081_v58 = vld [vmem:[#allocation5_spill] sm:$0xff]  ;;  %v3563_v12 = vpop.f32.mrb[40].mxu1 }
 0x14b   : > { %v7855_v37 = vmul.f32 %v13073_v36, %v6875_v11  ;;  %v6876_v35 = vmax.f32 %v3435_v48, 0.0  ;;  %v3437_v24 = vadd.f32 %v3436_v19, %v10535_v60  ;;  %v8245_v2 = vadd.f32 %v8244_v62, %v7854_v18  ;;  %9173 = vmatmul.mubr.msk.bf16.vlgmr.msra.gmra.mrb[144].mxu0 %vm2622_vm0, %v11055_v13  ;;  %9174 = vmatmul.mubr.msk.bf16.vlgmr.msra.gmra.mrb[144].mxu1 %vm2622_vm0, %v11055_v13  ;;  %v9690_v62 = vld [vmem:[%s9910_s26 + $0x264] ss:$784 sps:$4 sm:$0xff]  }
 0x14c   : > { %v8440_v4 = vadd.f32 %v8439_v50, %v8048_v30  ;;  %v8049_v32 = vmul.f32 %v13074_v27, %v7069_v33  ;;  %v13076_v25 = vunpack.c.l.bf16 %v13075_v44  ;;  %v6878_v55 = vmax.f32 %v3478_v38, 0.0  ;;  %v9685_v50 = vld [vmem:[%s9910_s26 + $0x878] ss:$784 sps:$4 sm:$0xff]   ;;  %5809 = vmatpush1.bf16.msra.mxu0 %v9676_v17  ;;  %5852 = vmatpush1.bf16.msra.mxu1 %v9679_v34  ;;  %v3565_v27 = vpop.f32.mrb[41].mxu1 }
 0x14d   : > { %v3480_v59 = vadd.f32 %v3479_v20, %v10535_v60  ;;  %v13078_v56 = vunpack.c.l.bf16 %v13077_v0  ;;  %v6877_v9 = vmax.f32 %v3437_v24, 0.0  ;;  %v3439_v47 = vadd.f32 %v3438_v46, %v10619_v29  ;;  %v3520_v20 = vpop.f32.mrb[40].mxu0  ;;  %5810 = vmatprep.subr.bf16.mxu0 %v9684_v31  ;;  %5853 = vmatprep.subr.bf16.mxu1 %v9687_v10 }
 0x14e   : > { %v8050_v28 = vmul.f32 %v13076_v25, %v7070_v26  ;;  %v8441_v23 = vadd.f32 %v8440_v4, %v8049_v32  ;;  %v8246_v61 = vadd.f32 %v8245_v2, %v7855_v37  ;;  %v13079_v14 = vunpack.c.h.bf16 %v13075_v44  ;;  %v13083_v37 = vld [vmem:[#allocation6_spill] sm:$0xff]  ;;  %v3522_v4 = vpop.f32.mrb[41].mxu0  ;;  %v9693_v32 = vld [vmem:[%s9910_s26 + $0x26c] ss:$784 sps:$4 sm:$0xff]   ;;  %v3567_v44 = vpop.f32.mrb[42].mxu1  ;;  %5840 = vmatprep.mubr.bf16.mxu0 %v13011_v51  ;;  %5883 = vmatprep.mubr.bf16.mxu1 %v13011_v51 }
 0x14f   : > { %v7856_v11 = vmul.f32 %v13078_v56, %v6876_v35  ;;  %v6879_v63 = vmax.f32 %v3480_v59, 0.0  ;;  %v3482_v1 = vadd.f32 %v3481_v3, %v10619_v29  ;;  %v13080_v18 = vunpack.c.h.bf16 %v13077_v0  ;;  %v3524_v2 = vpop.f32.mrb[42].mxu0  ;;  %v3569_v0 = vpop.f32.mrb[43].mxu1 }
 0x150   : > { %v8051_v8 = vmul.f32 %v13079_v14, %v7071_v49  ;;  %v8442_v52 = vadd.f32 %v8441_v23, %v8050_v28  ;;  %v7072_v7 = vmax.f32 %v3439_v47, 0.0  ;;  %v3441_v22 = vadd.f32 %v3440_v42, %v10619_v29  ;;  %v3526_v23 = vpop.f32.mrb[43].mxu0  ;;  %5811 = vmatpush1.bf16.msra.mxu0 %v9682_v40  ;;  %5854 = vmatpush1.bf16.msra.mxu1 %v9685_v50  ;;  %v9691_v14 = vld [vmem:[%s9910_s26 + $0x268] ss:$784 sps:$4 sm:$0xff]  }
 0x151   : > { %v7857_v26 = vmul.f32 %v13080_v18, %v6877_v9  ;;  %v8247_v53 = vadd.f32 %v8246_v61, %v7856_v11  ;;  %v13082_v30 = vunpack.c.l.bf16 %v13081_v58  ;;  %v7074_v48 = vmax.f32 %v3482_v1, 0.0  ;;  %v13087_v11 = vld [vmem:[#allocation7_spill] sm:$0xff]  ;;  %v9688_v61 = vld [vmem:[%s9910_s26 + $0x260] ss:$784 sps:$4 sm:$0xff]   ;;  %5894 = vmatprep.subr.bf16.mxu0 %v9690_v62  ;;  %5937 = vmatprep.subr.bf16.mxu1 %v9693_v32  ;;  %v3649_v32 = vpop.f32.mrb[44].mxu1 }
 0x152   : > { %v3484_v19 = vadd.f32 %v3483_v15, %v10619_v29  ;;  %v8443_v36 = vadd.f32 %v8442_v52, %v8051_v8  ;;  %v13084_v49 = vunpack.c.l.bf16 %v13083_v37  ;;  %v7073_v46 = vmax.f32 %v3441_v22, 0.0  ;;  %v9699_v22 = vld [vmem:[%s9910_s26 + $0x88c] ss:$784 sps:$4 sm:$0xff]   ;;  %v9694_v62 = vld [vmem:[%s9910_s26 + $0x880] ss:$784 sps:$4 sm:$0xff]  }
 0x153   : > { %v7858_v33 = vmul.f32 %v13082_v30, %v6878_v55  ;;  %v3521_v3 = vadd.f32 %v3520_v20, %v10535_v60  ;;  %v8248_v35 = vadd.f32 %v8247_v53, %v7857_v26  ;;  %v13085_v24 = vunpack.c.h.bf16 %v13081_v58  ;;  %9175 = vmatmul.mubr.msk.bf16.vlgmr.msra.gmra.mrb[148].mxu0 %vm2622_vm0, %v11055_v13  ;;  %9176 = vmatmul.mubr.msk.bf16.vlgmr.msra.gmra.mrb[148].mxu1 %vm2622_vm0, %v11055_v13 }
 0x154   : > { %v8052_v38 = vmul.f32 %v13084_v49, %v7072_v7  ;;  %v7075_v15 = vmax.f32 %v3484_v19, 0.0  ;;  %v3564_v17 = vadd.f32 %v3563_v12, %v10535_v60  ;;  %v13086_v28 = vunpack.c.h.bf16 %v13083_v37  ;;  %v9696_v7 = vld [vmem:[%s9910_s26 + $0x884] ss:$784 sps:$4 sm:$0xff]   ;;  %v13093_v49 = vld [vmem:[#allocation9_spill] sm:$0xff]  ;;  %5895 = vmatpush1.bf16.msra.mxu0 %v9688_v61  ;;  %5938 = vmatpush1.bf16.msra.mxu1 %v9691_v14 }
 0x155   : > { %v7859_v42 = vmul.f32 %v13085_v24, %v6879_v63  ;;  %v6880_v59 = vmax.f32 %v3521_v3, 0.0  ;;  %v3523_v34 = vadd.f32 %v3522_v4, %v10535_v60  ;;  %v8249_v56 = vadd.f32 %v8248_v35, %v7858_v33  ;;  %v13089_v63 = vld [vmem:[#allocation8_spill] sm:$0xff]  ;;  %5896 = vmatprep.subr.bf16.mxu0 %v9696_v7  ;;  %5939 = vmatprep.subr.bf16.mxu1 %v9699_v22 }
 0x156   : > { %v8444_v25 = vadd.f32 %v8443_v36, %v8052_v38  ;;  %v8053_v55 = vmul.f32 %v13086_v28, %v7073_v46  ;;  %v13088_v9 = vunpack.c.l.bf16 %v13087_v11  ;;  %v6882_v31 = vmax.f32 %v3564_v17, 0.0  ;;  %v9697_v36 = vld [vmem:[%s9910_s26 + $0x888] ss:$784 sps:$4 sm:$0xff]   ;;  %v9702_v35 = vld [vmem:[%s9910_s26 + $0x274] ss:$784 sps:$4 sm:$0xff]   ;;  %v3651_v28 = vpop.f32.mrb[45].mxu1  ;;  %5926 = vmatprep.mubr.bf16.mxu0 %v13011_v51  ;;  %5969 = vmatprep.mubr.bf16.mxu1 %v13011_v51 }
 0x157   : > { %v3566_v10 = vadd.f32 %v3565_v27, %v10535_v60  ;;  %v13090_v1 = vunpack.c.l.bf16 %v13089_v63  ;;  %v6881_v18 = vmax.f32 %v3523_v34, 0.0  ;;  %v3525_v26 = vadd.f32 %v3524_v2, %v10619_v29  ;;  %v3606_v27 = vpop.f32.mrb[44].mxu0 }
 0x158   : > { %v8054_v47 = vmul.f32 %v13088_v9, %v7074_v48  ;;  %v8445_v8 = vadd.f32 %v8444_v25, %v8053_v55  ;;  %v8250_v53 = vadd.f32 %v8249_v56, %v7859_v42  ;;  %v13091_v58 = vunpack.c.h.bf16 %v13087_v11  ;;  %v13095_v42 = vld [vmem:[#allocation10_spill] sm:$0xff]  ;;  %v3608_v25 = vpop.f32.mrb[45].mxu0  ;;  %v9705_v55 = vld [vmem:[%s9910_s26 + $0x27c] ss:$784 sps:$4 sm:$0xff]   ;;  %v3653_v9 = vpop.f32.mrb[46].mxu1  ;;  %5897 = vmatpush1.bf16.msra.mxu0 %v9694_v62  ;;  %5940 = vmatpush1.bf16.msra.mxu1 %v9697_v36 }
 0x159   : > { %v7860_v52 = vmul.f32 %v13090_v1, %v6880_v59  ;;  %v6883_v50 = vmax.f32 %v3566_v10, 0.0  ;;  %v3568_v30 = vadd.f32 %v3567_v44, %v10619_v29  ;;  %v13092_v48 = vunpack.c.h.bf16 %v13089_v63  ;;  %v3610_v11 = vpop.f32.mrb[46].mxu0  ;;  %v3655_v63 = vpop.f32.mrb[47].mxu1  ;;  %5980 = vmatprep.subr.bf16.mxu0 %v9702_v35  ;;  %6023 = vmatprep.subr.bf16.mxu1 %v9705_v55  ;;  %v9706_v35 = vld [vmem:[%s9910_s26 + $0x890] ss:$784 sps:$4 sm:$0xff]  }
 0x15a   : > { %v8055_v40 = vmul.f32 %v13091_v58, %v7075_v15  ;;  %v8446_v33 = vadd.f32 %v8445_v8, %v8054_v47  ;;  %v7076_v20 = vmax.f32 %v3525_v26, 0.0  ;;  %v3527_v12 = vadd.f32 %v3526_v23, %v10619_v29  ;;  %v3612_v8 = vpop.f32.mrb[47].mxu0  ;;  %v9703_v58 = vld [vmem:[%s9910_s26 + $0x278] ss:$784 sps:$4 sm:$0xff]   ;;  %v3735_v55 = vpop.f32.mrb[48].mxu1 }
 0x15b   : > { %v7861_v19 = vmul.f32 %v13092_v48, %v6881_v18  ;;  %v8251_v37 = vadd.f32 %v8250_v53, %v7860_v52  ;;  %v13094_v38 = vunpack.c.l.bf16 %v13093_v49  ;;  %v7078_v3 = vmax.f32 %v3568_v30, 0.0  ;;  %v13099_v52 = vld [vmem:[#allocation11_spill] sm:$0xff]  ;;  %v9700_v53 = vld [vmem:[%s9910_s26 + $0x270] ss:$784 sps:$4 sm:$0xff]   ;;  %9177 = vmatmul.mubr.msk.bf16.vlgmr.msra.gmra.mrb[152].mxu0 %vm2622_vm0, %v11055_v13  ;;  %9178 = vmatmul.mubr.msk.bf16.vlgmr.msra.gmra.mrb[152].mxu1 %vm2622_vm0, %v11055_v13 }
 0x15c   : > { %v3570_v4 = vadd.f32 %v3569_v0, %v10619_v29  ;;  %v8447_v24 = vadd.f32 %v8446_v33, %v8055_v40  ;;  %v13096_v15 = vunpack.c.l.bf16 %v13095_v42  ;;  %v7077_v2 = vmax.f32 %v3527_v12, 0.0  ;;  %v9711_v12 = vld [vmem:[%s9910_s26 + $0x89c] ss:$784 sps:$4 sm:$0xff]   ;;  %5981 = vmatpush1.bf16.msra.mxu0 %v9700_v53  ;;  %6024 = vmatpush1.bf16.msra.mxu1 %v9703_v58 }
 0x15d   : > { %v7862_v46 = vmul.f32 %v13094_v38, %v6882_v31  ;;  %v3607_v44 = vadd.f32 %v3606_v27, %v10535_v60  ;;  %v8252_v59 = vadd.f32 %v8251_v37, %v7861_v19  ;;  %v13097_v34 = vunpack.c.h.bf16 %v13093_v49  ;;  %6025 = vmatprep.subr.bf16.mxu1 %v9711_v12  ;;  %6012 = vmatprep.mubr.bf16.mxu0 %v13011_v51 }
 0x15e   : > { %v8056_v17 = vmul.f32 %v13096_v15, %v7076_v20  ;;  %v7079_v0 = vmax.f32 %v3570_v4, 0.0  ;;  %v3650_v56 = vadd.f32 %v3649_v32, %v10535_v60  ;;  %v13098_v31 = vunpack.c.h.bf16 %v13095_v42  ;;  %v9708_v20 = vld [vmem:[%s9910_s26 + $0x894] ss:$784 sps:$4 sm:$0xff]   ;;  %v13105_v15 = vld [vmem:[#allocation13_spill] sm:$0xff]  ;;  %6055 = vmatprep.mubr.bf16.mxu1 %v13011_v51 }
 0x15f   : > { %v7863_v23 = vmul.f32 %v13097_v34, %v6883_v50  ;;  %v6884_v61 = vmax.f32 %v3607_v44, 0.0  ;;  %v3609_v14 = vadd.f32 %v3608_v25, %v10535_v60  ;;  %v8253_v1 = vadd.f32 %v8252_v59, %v7862_v46  ;;  %v13101_v50 = vld [vmem:[#allocation12_spill] sm:$0xff]  ;;  %5982 = vmatprep.subr.bf16.mxu0 %v9708_v20 }
 0x160   : > { %v8448_v47 = vadd.f32 %v8447_v24, %v8056_v17  ;;  %v8057_v10 = vmul.f32 %v13098_v31, %v7077_v2  ;;  %v13100_v18 = vunpack.c.l.bf16 %v13099_v52  ;;  %v6886_v7 = vmax.f32 %v3650_v56, 0.0  ;;  %v9709_v24 = vld [vmem:[%s9910_s26 + $0x898] ss:$784 sps:$4 sm:$0xff]   ;;  %v9714_v59 = vld [vmem:[%s9910_s26 + $0x284] ss:$784 sps:$4 sm:$0xff]   ;;  %v3737_v31 = vpop.f32.mrb[49].mxu1  ;;  %5983 = vmatpush1.bf16.msra.mxu0 %v9706_v35 }
 0x161   : > { %v3652_v22 = vadd.f32 %v3651_v28, %v10535_v60  ;;  %v13102_v30 = vunpack.c.l.bf16 %v13101_v50  ;;  %v6885_v48 = vmax.f32 %v3609_v14, 0.0  ;;  %v3611_v19 = vadd.f32 %v3610_v11, %v10619_v29  ;;  %v3692_v28 = vpop.f32.mrb[48].mxu0  ;;  %6026 = vmatpush1.bf16.msra.mxu1 %v9709_v24  ;;  %6066 = vmatprep.subr.bf16.mxu0 %v9714_v59  ;;  %v9718_v59 = vld [vmem:[%s9910_s26 + $0x8a0] ss:$784 sps:$4 sm:$0xff]  }
 0x162   : > { %v8058_v26 = vmul.f32 %v13100_v18, %v7078_v3  ;;  %v8449_v40 = vadd.f32 %v8448_v47, %v8057_v10  ;;  %v8254_v37 = vadd.f32 %v8253_v1, %v7863_v23  ;;  %v13103_v49 = vunpack.c.h.bf16 %v13099_v52  ;;  %v13107_v23 = vld [vmem:[#allocation14_spill] sm:$0xff]  ;;  %v3694_v47 = vpop.f32.mrb[49].mxu0  ;;  %v9717_v10 = vld [vmem:[%s9910_s26 + $0x28c] ss:$784 sps:$4 sm:$0xff]   ;;  %v3739_v18 = vpop.f32.mrb[50].mxu1 }
 0x163   : > { %v7864_v33 = vmul.f32 %v13102_v30, %v6884_v61  ;;  %v6887_v36 = vmax.f32 %v3652_v22, 0.0  ;;  %v3654_v38 = vadd.f32 %v3653_v9, %v10619_v29  ;;  %v13104_v3 = vunpack.c.h.bf16 %v13101_v50  ;;  %v3696_v52 = vpop.f32.mrb[50].mxu0  ;;  %v3741_v50 = vpop.f32.mrb[51].mxu1  ;;  %6109 = vmatprep.subr.bf16.mxu1 %v9717_v10  ;;  %9179 = vmatmul.mubr.msk.bf16.vlgmr.msra.gmra.mrb[156].mxu0 %vm2622_vm0, %v11055_v13  ;;  %v9726_v10 = vld [vmem:[%s9910_s26 + $0x294] ss:$784 sps:$4 sm:$0xff]  }
 0x164   : > { %v8059_v62 = vmul.f32 %v13103_v49, %v7079_v0  ;;  %v8450_v46 = vadd.f32 %v8449_v40, %v8058_v26  ;;  %v7080_v27 = vmax.f32 %v3611_v19, 0.0  ;;  %v3613_v32 = vadd.f32 %v3612_v8, %v10619_v29  ;;  %v3698_v40 = vpop.f32.mrb[51].mxu0  ;;  %v9715_v49 = vld [vmem:[%s9910_s26 + $0x288] ss:$784 sps:$4 sm:$0xff]   ;;  %9180 = vmatmul.mubr.msk.bf16.vlgmr.msra.gmra.mrb[156].mxu1 %vm2622_vm0, %v11055_v13  ;;  %6098 = vmatprep.mubr.bf16.mxu0 %v13011_v51 }
 0x165   : > { %v7865_v4 = vmul.f32 %v13104_v3, %v6885_v48  ;;  %v8255_v42 = vadd.f32 %v8254_v37, %v7864_v33  ;;  %v13106_v17 = vunpack.c.l.bf16 %v13105_v15  ;;  %v7082_v44 = vmax.f32 %v3654_v38, 0.0  ;;  %v13111_v33 = vld [vmem:[#allocation15_spill] sm:$0xff]  ;;  %v9712_v37 = vld [vmem:[%s9910_s26 + $0x280] ss:$784 sps:$4 sm:$0xff]   ;;  %6110 = vmatpush1.bf16.msra.mxu1 %v9715_v49  ;;  %6141 = vmatprep.mubr.bf16.mxu1 %v13011_v51 }
 0x166   : > { %v3656_v25 = vadd.f32 %v3655_v63, %v10619_v29  ;;  %v8451_v34 = vadd.f32 %v8450_v46, %v8059_v62  ;;  %v13108_v0 = vunpack.c.l.bf16 %v13107_v23  ;;  %v7081_v11 = vmax.f32 %v3613_v32, 0.0  ;;  %v9723_v32 = vld [vmem:[%s9910_s26 + $0x8ac] ss:$784 sps:$4 sm:$0xff]   ;;  %6067 = vmatpush1.bf16.msra.mxu0 %v9712_v37 }
 0x167   : > { %v7866_v2 = vmul.f32 %v13106_v17, %v6886_v7  ;;  %v3693_v9 = vadd.f32 %v3692_v28, %v10535_v60  ;;  %v8256_v61 = vadd.f32 %v8255_v42, %v7865_v4  ;;  %v13109_v14 = vunpack.c.h.bf16 %v13105_v15  ;;  %6111 = vmatprep.subr.bf16.mxu1 %v9723_v32  ;;  %v9732_v32 = vld [vmem:[%s9910_s26 + $0x8b4] ss:$784 sps:$4 sm:$0xff]  }
 0x168   : > { %v8060_v56 = vmul.f32 %v13108_v0, %v7080_v27  ;;  %v7083_v63 = vmax.f32 %v3656_v25, 0.0  ;;  %v3736_v1 = vadd.f32 %v3735_v55, %v10535_v60  ;;  %v13110_v7 = vunpack.c.h.bf16 %v13107_v23  ;;  %v9720_v27 = vld [vmem:[%s9910_s26 + $0x8a4] ss:$784 sps:$4 sm:$0xff]  }
 0x169   : > { %v7867_v8 = vmul.f32 %v13109_v14, %v6887_v36  ;;  %v6888_v53 = vmax.f32 %v3693_v9, 0.0  ;;  %v3695_v58 = vadd.f32 %v3694_v47, %v10535_v60  ;;  %v8257_v30 = vadd.f32 %v8256_v61, %v7866_v2  ;;  %v13113_v36 = vld [vmem:[#allocation16_spill] sm:$0xff]  ;;  %v3778_v47 = vpop.f32.mrb[52].mxu0  ;;  %6068 = vmatprep.subr.bf16.mxu0 %v9720_v27 }
 0x16a   : > { %v8452_v26 = vadd.f32 %v8451_v34, %v8060_v56  ;;  %v8061_v22 = vmul.f32 %v13110_v7, %v7081_v11  ;;  %v13112_v48 = vunpack.c.l.bf16 %v13111_v33  ;;  %v6890_v20 = vmax.f32 %v3736_v1, 0.0  ;;  %v9721_v34 = vld [vmem:[%s9910_s26 + $0x8a8] ss:$784 sps:$4 sm:$0xff]   ;;  %6069 = vmatpush1.bf16.msra.mxu0 %v9718_v59 }
 0x16b   : > { %v3738_v12 = vadd.f32 %v3737_v31, %v10535_v60  ;;  %v13114_v38 = vunpack.c.l.bf16 %v13113_v36  ;;  %v6889_v3 = vmax.f32 %v3695_v58, 0.0  ;;  %v3697_v4 = vadd.f32 %v3696_v52, %v10619_v29  ;;  %v3821_v31 = vpop.f32.mrb[52].mxu1  ;;  %v3780_v52 = vpop.f32.mrb[53].mxu0  ;;  %6112 = vmatpush1.bf16.msra.mxu1 %v9721_v34  ;;  %6152 = vmatprep.subr.bf16.mxu0 %v9726_v10 }
 0x16c   : > { %v8062_v19 = vmul.f32 %v13112_v48, %v7082_v44  ;;  %v8453_v62 = vadd.f32 %v8452_v26, %v8061_v22  ;;  %v8258_v42 = vadd.f32 %v8257_v30, %v7867_v8  ;;  %v13115_v15 = vunpack.c.h.bf16 %v13111_v33  ;;  %v9729_v26 = vld [vmem:[%s9910_s26 + $0x29c] ss:$784 sps:$4 sm:$0xff]  }
 0x16d   : > { %v7868_v46 = vmul.f32 %v13114_v38, %v6888_v53  ;;  %v6891_v24 = vmax.f32 %v3738_v12, 0.0  ;;  %v3740_v17 = vadd.f32 %v3739_v18, %v10619_v29  ;;  %v13116_v44 = vunpack.c.h.bf16 %v13113_v36  ;;  %v3823_v18 = vpop.f32.mrb[53].mxu1  ;;  %v9823_v36 = vld [vmem:[%s12954_s3 + $0xd0] sm:$0xff]  ;;  %6195 = vmatprep.subr.bf16.mxu1 %v9729_v26  ;;  %9181 = vmatmul.mubr.msk.bf16.vlgmr.msra.gmra.mrb[160].mxu0 %vm2622_vm0, %v11055_v13 }
 0x16e   : > { %v8063_v35 = vmul.f32 %v13115_v15, %v7083_v63  ;;  %v8454_v2 = vadd.f32 %v8453_v62, %v8062_v19  ;;  %v7084_v28 = vmax.f32 %v3697_v4, 0.0  ;;  %v3699_v55 = vadd.f32 %v3698_v40, %v10619_v29  ;;  %v3825_v30 = vpop.f32.mrb[54].mxu1  ;;  %9182 = vmatmul.mubr.msk.bf16.vlgmr.msra.gmra.mrb[160].mxu1 %vm2622_vm0, %v11055_v13  ;;  %6184 = vmatprep.mubr.bf16.mxu0 %v13011_v51 }
 0x16f   : > { %v7869_v25 = vmul.f32 %v13116_v44, %v6889_v3  ;;  %v8259_v23 = vadd.f32 %v8258_v42, %v7868_v46  ;;  %v13117_v0 = vunpack.c.l.bf16 %v10680_v21  ;;  %v7086_v11 = vmax.f32 %v3740_v17, 0.0  ;;  %v3827_v12 = vpop.f32.mrb[55].mxu1  ;;  %v9727_v46 = vld [vmem:[%s9910_s26 + $0x298] ss:$784 sps:$4 sm:$0xff]   ;;  %v9735_v42 = vld [vmem:[%s9910_s26 + $0x8bc] ss:$784 sps:$4 sm:$0xff]   ;;  %6227 = vmatprep.mubr.bf16.mxu1 %v13011_v51 }
 0x170   : > { %v3742_v9 = vadd.f32 %v3741_v50, %v10619_v29  ;;  %v8455_v61 = vadd.f32 %v8454_v2, %v8063_v35  ;;  %v13118_v14 = vunpack.c.l.bf16 %v10723_v5  ;;  %v7085_v63 = vmax.f32 %v3699_v55, 0.0  ;;  %v3782_v50 = vpop.f32.mrb[54].mxu0  ;;  %v11201_v5 = vld [vmem:[%s12954_s3 + $0x3e0] sm:$0xff]  ;;  %6196 = vmatpush1.bf16.msra.mxu1 %v9727_v46 }
 0x171   : > { %v7870_v56 = vmul.f32 %v13117_v0, %v6890_v20  ;;  %v3779_v1 = vadd.f32 %v3778_v47, %v10535_v60  ;;  %v8260_v7 = vadd.f32 %v8259_v23, %v7869_v25  ;;  %v13119_v22 = vunpack.c.h.bf16 %v10680_v21  ;;  %v3784_v21 = vpop.f32.mrb[55].mxu0  ;;  %v11233_v0 = vld [vmem:[%s12954_s3 + $0xe0] sm:$0xff]  ;;  %6197 = vmatprep.subr.bf16.mxu1 %v9735_v42 }
 0x172   : > { %v8064_v8 = vmul.f32 %v13118_v14, %v7084_v28  ;;  %v7087_v58 = vmax.f32 %v3742_v9, 0.0  ;;  %v3822_v40 = vadd.f32 %v3821_v31, %v10535_v60  ;;  %v8065_v48 = vmul.f32 %v7673_v45, %v7085_v63  ;;  %v9724_v45 = vld [vmem:[%s9910_s26 + $0x290] ss:$784 sps:$4 sm:$0xff]   ;;  %v3864_v23 = vpop.f32.mrb[56].mxu0  ;;  %v9741_v14 = vld [vmem:[%s9910_s26 + $0x2ac] ss:$784 sps:$4 sm:$0xff]  }
 0x173   : > { %v7871_v53 = vmul.f32 %v13119_v22, %v6891_v24  ;;  %v6892_v19 = vmax.f32 %v3779_v1, 0.0  ;;  %v3781_v20 = vadd.f32 %v3780_v52, %v10535_v60  ;;  %v8261_v37 = vadd.f32 %v8260_v7, %v7870_v56  ;;  %v9824_v24 = vld [vmem:[%s12954_s3 + $0xd8] sm:$0xff]  ;;  %6153 = vmatpush1.bf16.msra.mxu0 %v9724_v45  ;;  %v3907_v56 = vpop.f32.mrb[56].mxu1  ;;  %v3866_v31 = vpop.f32.mrb[57].mxu0 }
 0x174   : > { %v8456_v33 = vadd.f32 %v8455_v61, %v8064_v8  ;;  %v8066_v49 = vmul.f32 %v7674_v54, %v7086_v11  ;;  %v6894_v62 = vmax.f32 %v3822_v40, 0.0  ;;  %v7481_v38 = vunpack.c.h.bf16 %v9823_v36  ;;  %v9733_v11 = vld [vmem:[%s9910_s26 + $0x8b8] ss:$784 sps:$4 sm:$0xff]   ;;  %v3909_v10 = vpop.f32.mrb[57].mxu1  ;;  %6154 = vmatprep.subr.bf16.mxu0 %v9732_v32  ;;  %v9738_v61 = vld [vmem:[%s9910_s26 + $0x2a4] ss:$784 sps:$4 sm:$0xff]  }
 0x175   : > { %v7872_v54 = vmul.f32 %v7480_v16, %v6892_v19  ;;  %v6893_v4 = vmax.f32 %v3781_v20, 0.0  ;;  %v3824_v27 = vadd.f32 %v3823_v18, %v10535_v60  ;;  %v8262_v15 = vadd.f32 %v8261_v37, %v7871_v53  ;;  %v11219_v16 = vld [vmem:[%s12954_s3 + $0x3e8] sm:$0xff]  ;;  %v3868_v18 = vpop.f32.mrb[58].mxu0  ;;  %v3911_v26 = vpop.f32.mrb[58].mxu1  ;;  %6198 = vmatpush1.bf16.msra.mxu1 %v9733_v11 }
 0x176   : > { %v8457_v3 = vadd.f32 %v8456_v33, %v8065_v48  ;;  %v8067_v35 = vmul.f32 %v7675_v6, %v7087_v58  ;;  %v7483_v17 = vunpack.c.h.bf16 %v9824_v24  ;;  %v3783_v41 = vadd.f32 %v3782_v50, %v10619_v29  ;;  %v11249_v40 = vld [vmem:[%s12954_s3 + $0xe8] sm:$0xff]  ;;  %v3870_v50 = vpop.f32.mrb[59].mxu0  ;;  %6281 = vmatprep.subr.bf16.mxu1 %v9741_v14 }
 0x177   : > { %v7873_v44 = vmul.f32 %v7481_v38, %v6893_v4  ;;  %v6895_v25 = vmax.f32 %v3824_v27, 0.0  ;;  %v7676_v28 = vunpack.c.l.bf16 %v11201_v5  ;;  %v8263_v6 = vadd.f32 %v8262_v15, %v7872_v54  ;;  %6155 = vmatpush1.bf16.msra.mxu0 %v9730_v43  ;;  %v11260_v38 = vld [vmem:[%s12954_s3 + $0x3f0] sm:$0xff]  ;;  %v9747_v45 = vld [vmem:[%s9910_s26 + $0x8cc] ss:$784 sps:$4 sm:$0xff]   ;;  %v9745_v24 = vld [vmem:[%s9910_s26 + $0x8c8] ss:$784 sps:$4 sm:$0xff]  }
 0x178   : > { %v8458_v2 = vadd.f32 %v8457_v3, %v8066_v49  ;;  %v7874_v55 = vmul.f32 %v7482_v39, %v6894_v62  ;;  %v7088_v59 = vmax.f32 %v3783_v41, 0.0  ;;  %v3826_v34 = vadd.f32 %v3825_v30, %v10619_v29  ;;  %v11251_v30 = vpop.f32.mrb[59].mxu1  ;;  %6238 = vmatprep.subr.bf16.mxu0 %v9738_v61  ;;  %9184 = vmatmul.mubr.msk.bf16.vlgmr.msra.gmra.mrb[164].mxu1 %vm2622_vm0, %v11055_v13  ;;  %v9750_v43 = vld [vmem:[%s9910_s26 + $0x2b4] ss:$784 sps:$4 sm:$0xff]  }
 0x179   : > { %v7678_v47 = vunpack.c.l.bf16 %v11219_v16  ;;  %v3785_v57 = vadd.f32 %v3784_v21, %v10619_v29  ;;  %v7677_v39 = vunpack.c.h.bf16 %v11201_v5  ;;  %v8264_v8 = vadd.f32 %v8263_v6, %v7873_v44  ;;  %v9736_v21 = vld [vmem:[%s9910_s26 + $0x2a0] ss:$784 sps:$4 sm:$0xff]   ;;  %v9744_v5 = vld [vmem:[%s9910_s26 + $0x8c4] ss:$784 sps:$4 sm:$0xff]   ;;  %v11279_v44 = vld [vmem:[%s12954_s3 + $0x3f8] sm:$0xff]  ;;  %6313 = vmatprep.mubr.bf16.mxu1 %v13011_v51 }
 0x17a   : > { %v8459_v9 = vadd.f32 %v8458_v2, %v8067_v35  ;;  %v8068_v63 = vmul.f32 %v7676_v28, %v7088_v59  ;;  %v7090_v1 = vmax.f32 %v3826_v34, 0.0  ;;  %v3828_v52 = vadd.f32 %v3827_v12, %v10619_v29  ;;  %v9739_v12 = vld [vmem:[%s9910_s26 + $0x2a8] ss:$784 sps:$4 sm:$0xff]   ;;  %9183 = vmatmul.mubr.msk.bf16.vlgmr.msra.gmra.mrb[164].mxu0 %vm2622_vm0, %v11055_v13  ;;  %v9742_v35 = vld [vmem:[%s9910_s26 + $0x8c0] ss:$784 sps:$4 sm:$0xff]   ;;  %v3993_v28 = vpop.f32.mrb[60].mxu1 }
 0x17b   : > { %v7875_v7 = vmul.f32 %v7483_v17, %v6895_v25  ;;  %v7089_v22 = vmax.f32 %v3785_v57, 0.0  ;;  %v3865_v53 = vadd.f32 %v3864_v23, %v10535_v60  ;;  %v7484_v58 = vunpack.c.l.bf16 %v11233_v0  ;;  %6239 = vmatpush1.bf16.msra.mxu0 %v9736_v21  ;;  %6282 = vmatpush1.bf16.msra.mxu1 %v9739_v12  ;;  %v3950_v25 = vpop.f32.mrb[60].mxu0 }
 0x17c   : > { %v8265_v33 = vadd.f32 %v8264_v8, %v7874_v55  ;;  %v8460_v48 = vadd.f32 %v8459_v9, %v8068_v63  ;;  %v7091_v19 = vmax.f32 %v3828_v52, 0.0  ;;  %v7679_v20 = vunpack.c.h.bf16 %v11219_v16  ;;  %v3952_v23 = vpop.f32.mrb[61].mxu0  ;;  %6240 = vmatprep.subr.bf16.mxu0 %v9744_v5  ;;  %6283 = vmatprep.subr.bf16.mxu1 %v9747_v45  ;;  %v11319_v45 = vld [vmem:[%s12954_s3 + $0x400] sm:$0xff] }
 0x17d   : > { %v8070_v37 = vmul.f32 %v7678_v47, %v7090_v1  ;;  %v8069_v49 = vmul.f32 %v7677_v39, %v7089_v22  ;;  %v6896_v62 = vmax.f32 %v3865_v53, 0.0  ;;  %v3908_v36 = vadd.f32 %v3907_v56, %v10535_v60  ;;  %v9753_v56 = vld [vmem:[%s9910_s26 + $0x2bc] ss:$784 sps:$4 sm:$0xff]   ;;  %v11288_v39 = vld [vmem:[%s12954_s3 + $0xf0] sm:$0xff]  ;;  %6270 = vmatprep.mubr.bf16.mxu0 %v13011_v51 }
 0x17e   : > { %v8266_v46 = vadd.f32 %v8265_v33, %v7875_v7  ;;  %v7486_v3 = vunpack.c.l.bf16 %v11249_v40  ;;  %v3867_v54 = vadd.f32 %v3866_v31, %v10535_v60  ;;  %v7485_v4 = vunpack.c.h.bf16 %v11233_v0  ;;  %v3995_v0 = vpop.f32.mrb[61].mxu1  ;;  %v3954_v31 = vpop.f32.mrb[62].mxu0  ;;  %v9748_v53 = vld [vmem:[%s9910_s26 + $0x2b0] ss:$784 sps:$4 sm:$0xff]  }
 0x17f   : > { %v8461_v27 = vadd.f32 %v8460_v48, %v8069_v49  ;;  %v7876_v32 = vmul.f32 %v7484_v58, %v6896_v62  ;;  %v6898_v42 = vmax.f32 %v3908_v36, 0.0  ;;  %v3910_v15 = vadd.f32 %v3909_v10, %v10535_v60  ;;  %v11290_v10 = vpop.f32.mrb[62].mxu1  ;;  %v11297_v1 = vpop.f32.mrb[63].mxu0  ;;  %6241 = vmatpush1.bf16.msra.mxu0 %v9742_v35  ;;  %6284 = vmatpush1.bf16.msra.mxu1 %v9745_v24  ;;  %v9751_v58 = vld [vmem:[%s9910_s26 + $0x2b8] ss:$784 sps:$4 sm:$0xff]  }
 0x180   : > { %v8071_v17 = vmul.f32 %v7679_v20, %v7091_v19  ;;  %v6897_v41 = vmax.f32 %v3867_v54, 0.0  ;;  %v3869_v16 = vadd.f32 %v3868_v18, %v10619_v29  ;;  %v7680_v2 = vunpack.c.l.bf16 %v11260_v38  ;;  %v11299_v52 = vpop.f32.mrb[63].mxu1  ;;  %v11310_v19 = vld [vmem:[%s12954_s3 + $0xf8] sm:$0xff]  ;;  %6324 = vmatprep.subr.bf16.mxu0 %v9750_v43  ;;  %6367 = vmatprep.subr.bf16.mxu1 %v9753_v56  ;;  %v9756_v20 = vld [vmem:[%s9910_s26 + $0x8d4] ss:$784 sps:$4 sm:$0xff]  }
 0x181   : > { %v8462_v6 = vadd.f32 %v8461_v27, %v8070_v37  ;;  %v8267_v55 = vadd.f32 %v8266_v46, %v7876_v32  ;;  %v6899_v59 = vmax.f32 %v3910_v15, 0.0  ;;  %v7487_v34 = vunpack.c.h.bf16 %v11249_v40  ;;  %v9754_v46 = vld [vmem:[%s9910_s26 + $0x8d0] ss:$784 sps:$4 sm:$0xff]   ;;  %v4036_v32 = vpop.f32.mrb[64].mxu0  ;;  %v9757_v15 = vld [vmem:[%s9910_s26 + $0x8d8] ss:$784 sps:$4 sm:$0xff]  }
 0x182   : > { %v7878_v11 = vmul.f32 %v7486_v3, %v6898_v42  ;;  %v7877_v9 = vmul.f32 %v7485_v4, %v6897_v41  ;;  %v7092_v47 = vmax.f32 %v3869_v16, 0.0  ;;  %v3912_v57 = vadd.f32 %v3911_v26, %v10619_v29  ;;  %9185 = vmatmul.mubr.msk.bf16.vlgmr.msra.gmra.mrb[168].mxu0 %vm2622_vm0, %v11055_v13  ;;  %9186 = vmatmul.mubr.msk.bf16.vlgmr.msra.gmra.mrb[168].mxu1 %vm2622_vm0, %v11055_v13  ;;  %v11329_v42 = vpop.f32.mrb[64].mxu1  ;;  %v9762_v35 = vld [vmem:[%s9910_s26 + $0x2c4] ss:$784 sps:$4 sm:$0xff]  }
 0x183   : > { %v8463_v61 = vadd.f32 %v8462_v6, %v8071_v17  ;;  %v7682_v14 = vunpack.c.l.bf16 %v11279_v44  ;;  %v3871_v8 = vadd.f32 %v3870_v50, %v10619_v29  ;;  %v7681_v63 = vunpack.c.h.bf16 %v11260_v38  ;;  %6325 = vmatpush1.bf16.msra.mxu0 %v9748_v53  ;;  %6368 = vmatpush1.bf16.msra.mxu1 %v9751_v58  ;;  %v9771_v58 = vld [vmem:[%s9910_s26 + $0x8ec] ss:$784 sps:$4 sm:$0xff]  }
 0x184   : > { %v8268_v18 = vadd.f32 %v8267_v55, %v7877_v9  ;;  %v8072_v26 = vmul.f32 %v7680_v2, %v7092_v47  ;;  %v7094_v7 = vmax.f32 %v3912_v57, 0.0  ;;  %v3914_v22 = vadd.f32 %v11251_v30, %v10619_v29  ;;  %v9759_v30 = vld [vmem:[%s9910_s26 + $0x8dc] ss:$784 sps:$4 sm:$0xff]   ;;  %v11334_v2 = vpop.f32.mrb[65].mxu0  ;;  %6326 = vmatprep.subr.bf16.mxu0 %v9756_v20  ;;  %6356 = vmatprep.mubr.bf16.mxu0 %v13011_v51 }
 0x185   : > { %v7879_v40 = vmul.f32 %v7487_v34, %v6899_v59  ;;  %v7093_v50 = vmax.f32 %v3871_v8, 0.0  ;;  %v3951_v33 = vadd.f32 %v3950_v25, %v10535_v60  ;;  %v7488_v48 = vunpack.c.l.bf16 %v11288_v39  ;;  %6369 = vmatprep.subr.bf16.mxu1 %v9759_v30  ;;  %v9765_v25 = vld [vmem:[%s9910_s26 + $0x2cc] ss:$784 sps:$4 sm:$0xff]   ;;  %v11346_v34 = vpop.f32.mrb[66].mxu0  ;;  %6399 = vmatprep.mubr.bf16.mxu1 %v13011_v51  ;;  %v11362_v8 = vld [vmem:[%s12954_s3 + $0x100] sm:$0xff] }
 0x186   : > { %v8269_v21 = vadd.f32 %v8268_v18, %v7878_v11  ;;  %v8464_v12 = vadd.f32 %v8463_v61, %v8072_v26  ;;  %v7095_v37 = vmax.f32 %v3914_v22, 0.0  ;;  %v7683_v49 = vunpack.c.h.bf16 %v11279_v44  ;;  %v11336_v44 = vpop.f32.mrb[65].mxu1  ;;  %v11344_v59 = vld [vmem:[%s12954_s3 + $0x408] sm:$0xff]  ;;  %v11353_v47 = vpop.f32.mrb[67].mxu0 }
 0x187   : > { %v8074_v62 = vmul.f32 %v7682_v14, %v7094_v7  ;;  %v8073_v36 = vmul.f32 %v7681_v63, %v7093_v50  ;;  %v6900_v38 = vmax.f32 %v3951_v33, 0.0  ;;  %v3994_v5 = vadd.f32 %v3993_v28, %v10535_v60  ;;  %6327 = vmatpush1.bf16.msra.mxu0 %v9754_v46  ;;  %6370 = vmatpush1.bf16.msra.mxu1 %v9757_v15  ;;  %v9760_v63 = vld [vmem:[%s9910_s26 + $0x2c0] ss:$784 sps:$4 sm:$0xff]   ;;  %v9763_v18 = vld [vmem:[%s9910_s26 + $0x2c8] ss:$784 sps:$4 sm:$0xff]  }
 0x188   : > { %v8270_v3 = vadd.f32 %v8269_v21, %v7879_v40  ;;  %v7490_v54 = vunpack.c.l.bf16 %v11310_v19  ;;  %v3953_v4 = vadd.f32 %v3952_v23, %v10535_v60  ;;  %v7489_v27 = vunpack.c.h.bf16 %v11288_v39  ;;  %v11348_v23 = vpop.f32.mrb[66].mxu1  ;;  %6410 = vmatprep.subr.bf16.mxu0 %v9762_v35  ;;  %6453 = vmatprep.subr.bf16.mxu1 %v9765_v25  ;;  %v11379_v21 = vld [vmem:[%s12954_s3 + $0x108] sm:$0xff] }
 0x189   : > { %v8465_v24 = vadd.f32 %v8464_v12, %v8073_v36  ;;  %v7880_v17 = vmul.f32 %v7488_v48, %v6900_v38  ;;  %v6902_v41 = vmax.f32 %v3994_v5, 0.0  ;;  %v3996_v16 = vadd.f32 %v3995_v0, %v10535_v60  ;;  %v11355_v57 = vpop.f32.mrb[67].mxu1  ;;  %v9766_v12 = vld [vmem:[%s9910_s26 + $0x8e0] ss:$784 sps:$4 sm:$0xff]   ;;  %v11388_v38 = vpop.f32.mrb[68].mxu0 }
 0x18a   : > { %v8075_v28 = vmul.f32 %v7683_v49, %v7095_v37  ;;  %v6901_v43 = vmax.f32 %v3953_v4, 0.0  ;;  %v3955_v6 = vadd.f32 %v3954_v31, %v10619_v29  ;;  %v7684_v55 = vunpack.c.l.bf16 %v11319_v45  ;;  %9187 = vmatmul.mubr.msk.bf16.vlgmr.msra.gmra.mrb[172].mxu0 %vm2622_vm0, %v11055_v13  ;;  %9188 = vmatmul.mubr.msk.bf16.vlgmr.msra.gmra.mrb[172].mxu1 %vm2622_vm0, %v11055_v13  ;;  %v11390_v5 = vpop.f32.mrb[68].mxu1  ;;  %v9777_v35 = vld [vmem:[%s9910_s26 + $0x2dc] ss:$784 sps:$4 sm:$0xff]  }
 0x18b   : > { %v8466_v0 = vadd.f32 %v8465_v24, %v8074_v62  ;;  %v8271_v56 = vadd.f32 %v8270_v3, %v7880_v17  ;;  %v6903_v11 = vmax.f32 %v3996_v16, 0.0  ;;  %v7491_v9 = vunpack.c.h.bf16 %v11310_v19  ;;  %6411 = vmatpush1.bf16.msra.mxu0 %v9760_v63  ;;  %6454 = vmatpush1.bf16.msra.mxu1 %v9763_v18  ;;  %v11402_v15 = vpop.f32.mrb[69].mxu1  ;;  %v9783_v18 = vld [vmem:[%s9910_s26 + $0x8fc] ss:$784 sps:$4 sm:$0xff]  }
 0x18c   : > { %v7882_v39 = vmul.f32 %v7490_v54, %v6902_v41  ;;  %v7881_v31 = vmul.f32 %v7489_v27, %v6901_v43  ;;  %v7096_v61 = vmax.f32 %v3955_v6, 0.0  ;;  %v3998_v14 = vadd.f32 %v11290_v10, %v10619_v29  ;;  %v9768_v10 = vld [vmem:[%s9910_s26 + $0x8e4] ss:$784 sps:$4 sm:$0xff]   ;;  %6455 = vmatprep.subr.bf16.mxu1 %v9771_v58  ;;  %v11411_v25 = vpop.f32.mrb[70].mxu1  ;;  %6442 = vmatprep.mubr.bf16.mxu0 %v13011_v51 }
 0x18d   : > { %v8467_v26 = vadd.f32 %v8466_v0, %v8075_v28  ;;  %v7686_v7 = vunpack.c.l.bf16 %v11344_v59  ;;  %v3957_v22 = vadd.f32 %v11297_v1, %v10619_v29  ;;  %v7685_v53 = vunpack.c.h.bf16 %v11319_v45  ;;  %v9774_v45 = vld [vmem:[%s9910_s26 + $0x2d4] ss:$784 sps:$4 sm:$0xff]   ;;  %6412 = vmatprep.subr.bf16.mxu0 %v9768_v10  ;;  %6485 = vmatprep.mubr.bf16.mxu1 %v13011_v51 }
 0x18e   : > { %v8272_v40 = vadd.f32 %v8271_v56, %v7881_v31  ;;  %v8076_v50 = vmul.f32 %v7684_v55, %v7096_v61  ;;  %v7098_v33 = vmax.f32 %v3998_v14, 0.0  ;;  %v4000_v48 = vadd.f32 %v11299_v52, %v10619_v29  ;;  %v9769_v52 = vld [vmem:[%s9910_s26 + $0x8e8] ss:$784 sps:$4 sm:$0xff]   ;;  %v11398_v27 = vld [vmem:[%s12954_s3 + $0x410] sm:$0xff] }
 0x18f   : > { %v7883_v19 = vmul.f32 %v7491_v9, %v6903_v11  ;;  %v7097_v20 = vmax.f32 %v3957_v22, 0.0  ;;  %v4037_v30 = vadd.f32 %v4036_v32, %v10535_v60  ;;  %v7492_v1 = vunpack.c.l.bf16 %v11362_v8  ;;  %v11400_v32 = vpop.f32.mrb[69].mxu0  ;;  %6413 = vmatpush1.bf16.msra.mxu0 %v9766_v12  ;;  %6456 = vmatpush1.bf16.msra.mxu1 %v9769_v52  ;;  %v9775_v31 = vld [vmem:[%s9910_s26 + $0x2d8] ss:$784 sps:$4 sm:$0xff]   ;;  %v11439_v10 = vld [vmem:[%s12954_s3 + $0x110] sm:$0xff] }
 0x190   : > { %v8273_v37 = vadd.f32 %v8272_v40, %v7882_v39  ;;  %v8468_v49 = vadd.f32 %v8467_v26, %v8076_v50  ;;  %v7099_v62 = vmax.f32 %v4000_v48, 0.0  ;;  %v7687_v36 = vunpack.c.h.bf16 %v11344_v59  ;;  %v11409_v16 = vpop.f32.mrb[70].mxu0  ;;  %v11427_v39 = vld [vmem:[%s12954_s3 + $0x418] sm:$0xff]  ;;  %6496 = vmatprep.subr.bf16.mxu0 %v9774_v45  ;;  %6539 = vmatprep.subr.bf16.mxu1 %v9777_v35  ;;  %v9786_v12 = vld [vmem:[%s9910_s26 + $0x2e4] ss:$784 sps:$4 sm:$0xff]  }
 0x191   : > { %v8078_v46 = vmul.f32 %v7686_v7, %v7098_v33  ;;  %v8077_v3 = vmul.f32 %v7685_v53, %v7097_v20  ;;  %v6904_v54 = vmax.f32 %v4037_v30, 0.0  ;;  %v4080_v4 = vadd.f32 %v11329_v42, %v10535_v60  ;;  %v11417_v59 = vpop.f32.mrb[71].mxu0  ;;  %v9781_v48 = vld [vmem:[%s9910_s26 + $0x8f8] ss:$784 sps:$4 sm:$0xff]   ;;  %v9789_v45 = vld [vmem:[%s9910_s26 + $0x2ec] ss:$784 sps:$4 sm:$0xff]  }
 0x192   : > { %v8274_v24 = vadd.f32 %v8273_v37, %v7883_v19  ;;  %v7494_v17 = vunpack.c.l.bf16 %v11379_v21  ;;  %v4039_v41 = vadd.f32 %v11334_v2, %v10535_v60  ;;  %v7493_v42 = vunpack.c.h.bf16 %v11362_v8  ;;  %v11419_v2 = vpop.f32.mrb[71].mxu1  ;;  %9189 = vmatmul.mubr.msk.bf16.vlgmr.msra.gmra.mrb[176].mxu0 %vm2622_vm0, %v11055_v13  ;;  %9190 = vmatmul.mubr.msk.bf16.vlgmr.msra.gmra.mrb[176].mxu1 %vm2622_vm0, %v11055_v13 }
 0x193   : > { %v8469_v28 = vadd.f32 %v8468_v49, %v8077_v3  ;;  %v7884_v43 = vmul.f32 %v7492_v1, %v6904_v54  ;;  %v6906_v6 = vmax.f32 %v4080_v4, 0.0  ;;  %v4082_v55 = vadd.f32 %v11336_v44, %v10535_v60  ;;  %v9772_v44 = vld [vmem:[%s9910_s26 + $0x2d0] ss:$784 sps:$4 sm:$0xff]   ;;  %6540 = vmatpush1.bf16.msra.mxu1 %v9775_v31  ;;  %6528 = vmatprep.mubr.bf16.mxu0 %v13011_v51 }
 0x194   : > { %v8079_v0 = vmul.f32 %v7687_v36, %v7099_v62  ;;  %v6905_v56 = vmax.f32 %v4039_v41, 0.0  ;;  %v4041_v11 = vadd.f32 %v11346_v34, %v10619_v29  ;;  %v7688_v9 = vunpack.c.l.bf16 %v11398_v27  ;;  %v9780_v34 = vld [vmem:[%s9910_s26 + $0x8f4] ss:$784 sps:$4 sm:$0xff]   ;;  %6497 = vmatpush1.bf16.msra.mxu0 %v9772_v44  ;;  %v11464_v62 = vld [vmem:[%s12954_s3 + $0x118] sm:$0xff]  ;;  %6541 = vmatprep.subr.bf16.mxu1 %v9783_v18  ;;  %v11505_v18 = vld [vmem:[%s12954_s3 + $0x428] sm:$0xff] }
 0x195   : > { %v8470_v61 = vadd.f32 %v8469_v28, %v8078_v46  ;;  %v8275_v14 = vadd.f32 %v8274_v24, %v7884_v43  ;;  %v6907_v8 = vmax.f32 %v4082_v55, 0.0  ;;  %v7495_v63 = vunpack.c.h.bf16 %v11379_v21  ;;  %v11455_v21 = vpop.f32.mrb[72].mxu1  ;;  %6498 = vmatprep.subr.bf16.mxu0 %v9780_v34  ;;  %6571 = vmatprep.mubr.bf16.mxu1 %v13011_v51 }
 0x196   : > { %v7886_v26 = vmul.f32 %v7494_v17, %v6906_v6  ;;  %v7885_v7 = vmul.f32 %v7493_v42, %v6905_v56  ;;  %v7100_v22 = vmax.f32 %v4041_v11, 0.0  ;;  %v4084_v53 = vadd.f32 %v11348_v23, %v10619_v29  ;;  %v9778_v23 = vld [vmem:[%s9910_s26 + $0x8f0] ss:$784 sps:$4 sm:$0xff]   ;;  %v11468_v36 = vpop.f32.mrb[73].mxu1  ;;  %v9787_v11 = vld [vmem:[%s9910_s26 + $0x2e8] ss:$784 sps:$4 sm:$0xff]  }
 0x197   : > { %v8471_v58 = vadd.f32 %v8470_v61, %v8079_v0  ;;  %v7690_v40 = vunpack.c.l.bf16 %v11427_v39  ;;  %v4043_v50 = vadd.f32 %v11353_v47, %v10619_v29  ;;  %v7689_v33 = vunpack.c.h.bf16 %v11398_v27  ;;  %v11453_v47 = vpop.f32.mrb[72].mxu0  ;;  %v11474_v27 = vpop.f32.mrb[74].mxu1  ;;  %v11483_v42 = vld [vmem:[%s12954_s3 + $0x420] sm:$0xff]  ;;  %6542 = vmatpush1.bf16.msra.mxu1 %v9781_v48 }
 0x198   : > { %v8276_v19 = vadd.f32 %v8275_v14, %v7885_v7  ;;  %v8080_v20 = vmul.f32 %v7688_v9, %v7100_v22  ;;  %v7102_v30 = vmax.f32 %v4084_v53, 0.0  ;;  %v4086_v1 = vadd.f32 %v11355_v57, %v10619_v29  ;;  %v11466_v57 = vpop.f32.mrb[73].mxu0  ;;  %v11487_v43 = vpop.f32.mrb[75].mxu1  ;;  %6499 = vmatpush1.bf16.msra.mxu0 %v9778_v23  ;;  %6625 = vmatprep.subr.bf16.mxu1 %v9789_v45  ;;  %v9792_v61 = vld [vmem:[%s9910_s26 + $0x904] ss:$784 sps:$4 sm:$0xff]  }
 0x199   : > { %v7887_v52 = vmul.f32 %v7495_v63, %v6907_v8  ;;  %v7101_v37 = vmax.f32 %v4043_v50, 0.0  ;;  %v4123_v13 = vadd.f32 %v11388_v38, %v10535_v60  ;;  %v7496_v49 = vunpack.c.l.bf16 %v11439_v10  ;;  %v11472_v38 = vpop.f32.mrb[74].mxu0  ;;  %6582 = vmatprep.subr.bf16.mxu0 %v9786_v12  ;;  %v9795_v14 = vld [vmem:[%s9910_s26 + $0x90c] ss:$784 sps:$4 sm:$0xff]   ;;  %v11511_v53 = vld [vmem:[%s12952_s1] sm:$0xff]   ;;  %v11527_v48 = vpop.f32.mrb[76].mxu1 }
 0x19a   : > { %v8277_v46 = vadd.f32 %v8276_v19, %v7886_v26  ;;  %v8472_v3 = vadd.f32 %v8471_v58, %v8080_v20  ;;  %v7103_v54 = vmax.f32 %v4086_v1, 0.0  ;;  %v7691_v4 = vunpack.c.h.bf16 %v11427_v39  ;;  %v11485_v28 = vpop.f32.mrb[75].mxu0  ;;  %9192 = vmatmul.mubr.msk.bf16.vlgmr.msra.gmra.mrb[180].mxu1 %vm2622_vm0, %v11511_v53  ;;  %v9793_v19 = vld [vmem:[%s9910_s26 + $0x908] ss:$784 sps:$4 sm:$0xff]  }
 0x19b   : > { %v8082_v35 = vmul.f32 %v7690_v40, %v7102_v30  ;;  %v8081_v24 = vmul.f32 %v7689_v33, %v7101_v37  ;;  %v6908_v17 = vmax.f32 %v4123_v13, 0.0  ;;  %v4166_v41 = vadd.f32 %v11390_v5, %v10535_v60  ;;  %v9784_v5 = vld [vmem:[%s9910_s26 + $0x2e0] ss:$784 sps:$4 sm:$0xff]   ;;  %9191 = vmatmul.mubr.msk.bf16.vlgmr.msra.gmra.mrb[180].mxu0 %vm2622_vm0, %v11511_v53  ;;  %6626 = vmatpush1.bf16.msra.mxu1 %v9787_v11  ;;  %v11525_v23 = vpop.f32.mrb[76].mxu0  ;;  %v9798_v37 = vld [vmem:[%s9910_s26 + $0x2f4] ss:$784 sps:$4 sm:$0xff]  }
 0x19c   : > { %v8278_v6 = vadd.f32 %v8277_v46, %v7887_v52  ;;  %v7498_v55 = vunpack.c.l.bf16 %v11464_v62  ;;  %v4125_v0 = vadd.f32 %v11400_v32, %v10535_v60  ;;  %v7497_v56 = vunpack.c.h.bf16 %v11439_v10  ;;  %v11523_v33 = vld [vmem:[%s12954_s3 + $0x120] sm:$0xff]  ;;  %6583 = vmatpush1.bf16.msra.mxu0 %v9784_v5  ;;  %v11534_v12 = vpop.f32.mrb[77].mxu0  ;;  %v11536_v52 = vpop.f32.mrb[77].mxu1  ;;  %6627 = vmatprep.subr.bf16.mxu1 %v9795_v14  ;;  %v9801_v13 = vld [vmem:[%s9910_s26 + $0x2fc] ss:$784 sps:$4 sm:$0xff]  }
 0x19d   : > { %v8473_v9 = vadd.f32 %v8472_v3, %v8081_v24  ;;  %v7888_v39 = vmul.f32 %v7496_v49, %v6908_v17  ;;  %v6910_v44 = vmax.f32 %v4166_v41, 0.0  ;;  %v4168_v31 = vadd.f32 %v11402_v15, %v10535_v60  ;;  %6584 = vmatprep.subr.bf16.mxu0 %v9792_v61  ;;  %v11542_v3 = vpop.f32.mrb[78].mxu0  ;;  %6614 = vmatprep.mubr.bf16.mxu0 %v13011_v51  ;;  %v9807_v61 = vld [vmem:[%s9910_s26 + $0x91c] ss:$784 sps:$4 sm:$0xff]  }
 0x19e   : > { %v8083_v8 = vmul.f32 %v7691_v4, %v7103_v54  ;;  %v6909_v63 = vmax.f32 %v4125_v0, 0.0  ;;  %v4127_v32 = vadd.f32 %v11409_v16, %v10619_v29  ;;  %v7692_v34 = vunpack.c.l.bf16 %v11483_v42  ;;  %v9790_v16 = vld [vmem:[%s9910_s26 + $0x900] ss:$784 sps:$4 sm:$0xff]   ;;  %v11544_v54 = vpop.f32.mrb[78].mxu1  ;;  %6657 = vmatprep.mubr.bf16.mxu1 %v13011_v51  ;;  %v11556_v17 = vpop.f32.mrb[79].mxu0 }
 0x19f   : > { %v8474_v26 = vadd.f32 %v8473_v9, %v8082_v35  ;;  %v8279_v7 = vadd.f32 %v8278_v6, %v7888_v39  ;;  %v6911_v15 = vmax.f32 %v4168_v31, 0.0  ;;  %v7499_v22 = vunpack.c.h.bf16 %v11464_v62  ;;  %v11558_v41 = vpop.f32.mrb[79].mxu1  ;;  %6628 = vmatpush1.bf16.msra.mxu1 %v9793_v19  ;;  %v9804_v31 = vld [vmem:[%s9910_s26 + $0x914] ss:$784 sps:$4 sm:$0xff]  }
 0x1a0   : > { %v7890_v10 = vmul.f32 %v7498_v55, %v6910_v44  ;;  %v7889_v58 = vmul.f32 %v7497_v56, %v6909_v63  ;;  %v7104_v40 = vmax.f32 %v4127_v32, 0.0  ;;  %v4170_v50 = vadd.f32 %v11411_v25, %v10619_v29  ;;  %6585 = vmatpush1.bf16.msra.mxu0 %v9790_v16  ;;  %v9799_v56 = vld [vmem:[%s9910_s26 + $0x2f8] ss:$784 sps:$4 sm:$0xff]   ;;  %v11568_v44 = vld [vmem:[%s12954_s3 + $0x430] sm:$0xff]  ;;  %6711 = vmatprep.subr.bf16.mxu1 %v9801_v13 }
 0x1a1   : > { %v8475_v20 = vadd.f32 %v8474_v26, %v8083_v8  ;;  %v7694_v30 = vunpack.c.l.bf16 %v11505_v18  ;;  %v4129_v1 = vadd.f32 %v11417_v59, %v10619_v29  ;;  %v7693_v25 = vunpack.c.h.bf16 %v11483_v42  ;;  %6668 = vmatprep.subr.bf16.mxu0 %v9798_v37 }
 0x1a2   : > { %v8280_v49 = vadd.f32 %v8279_v7, %v7889_v58  ;;  %v8084_v62 = vmul.f32 %v7692_v34, %v7104_v40  ;;  %v7106_v45 = vmax.f32 %v4170_v50, 0.0  ;;  %v4172_v46 = vadd.f32 %v11419_v2, %v10619_v29  ;;  %v11554_v2 = vld [vmem:[%s12954_s3 + $0x128] sm:$0xff]  ;;  %9194 = vmatmul.mubr.msk.bf16.vlgmr.msra.gmra.mrb[184].mxu1 %vm2622_vm0, %v11511_v53  ;;  %v9802_v7 = vld [vmem:[%s9910_s26 + $0x910] ss:$784 sps:$4 sm:$0xff]   ;;  %v11592_v58 = vpop.f32.mrb[80].mxu0  ;;  %v11594_v40 = vpop.f32.mrb[80].mxu1 }
 0x1a3   : > { %v7891_v59 = vmul.f32 %v7499_v22, %v6911_v15  ;;  %v7105_v4 = vmax.f32 %v4129_v1, 0.0  ;;  %v4209_v35 = vadd.f32 %v11453_v47, %v10535_v60  ;;  %v7500_v24 = vunpack.c.l.bf16 %v11523_v33  ;;  %v9796_v47 = vld [vmem:[%s9910_s26 + $0x2f0] ss:$784 sps:$4 sm:$0xff]   ;;  %9193 = vmatmul.mubr.msk.bf16.vlgmr.msra.gmra.mrb[184].mxu0 %vm2622_vm0, %v11511_v53  ;;  %v9805_v15 = vld [vmem:[%s9910_s26 + $0x918] ss:$784 sps:$4 sm:$0xff]   ;;  %6712 = vmatpush1.bf16.msra.mxu1 %v9799_v56  ;;  %v11600_v1 = vpop.f32.mrb[81].mxu1 }
 0x1a4   : > { %v8281_v42 = vadd.f32 %v8280_v49, %v7890_v10  ;;  %v8476_v6 = vadd.f32 %v8475_v20, %v8084_v62  ;;  %v7107_v55 = vmax.f32 %v4172_v46, 0.0  ;;  %v7695_v0 = vunpack.c.h.bf16 %v11505_v18  ;;  %6669 = vmatpush1.bf16.msra.mxu0 %v9796_v47  ;;  %v9810_v50 = vld [vmem:[%s9910_s26 + $0x304] ss:$784 sps:$4 sm:$0xff]   ;;  %6713 = vmatprep.subr.bf16.mxu1 %v9807_v61  ;;  %v9808_v56 = vld [vmem:[%s9910_s26 + $0x300] ss:$784 sps:$4 sm:$0xff]  }
 0x1a5   : > { %v8086_v5 = vmul.f32 %v7694_v30, %v7106_v45  ;;  %v8085_v11 = vmul.f32 %v7693_v25, %v7105_v4  ;;  %v6912_v9 = vmax.f32 %v4209_v35, 0.0  ;;  %v4252_v39 = vadd.f32 %v11455_v21, %v10535_v60  ;;  %v11598_v30 = vpop.f32.mrb[81].mxu0  ;;  %6670 = vmatprep.subr.bf16.mxu0 %v9804_v31  ;;  %v9813_v25 = vld [vmem:[%s9910_s26 + $0x30c] ss:$784 sps:$4 sm:$0xff]   ;;  %v11608_v45 = vld [vmem:[%s12954_s3 + $0x130] sm:$0xff]  ;;  %6700 = vmatprep.mubr.bf16.mxu0 %v13011_v51 }
 0x1a6   : > { %v8282_v14 = vadd.f32 %v8281_v42, %v7891_v59  ;;  %v7502_v8 = vunpack.c.l.bf16 %v11554_v2  ;;  %v4211_v63 = vadd.f32 %v11466_v57, %v10535_v60  ;;  %v7501_v32 = vunpack.c.h.bf16 %v11523_v33  ;;  %v11610_v46 = vpop.f32.mrb[82].mxu0  ;;  %v11612_v59 = vpop.f32.mrb[82].mxu1  ;;  %6743 = vmatprep.mubr.bf16.mxu1 %v13011_v51  ;;  %v9816_v31 = vld [vmem:[%s9910_s26 + $0x924] ss:$784 sps:$4 sm:$0xff]  }
 0x1a7   : > { %v8477_v21 = vadd.f32 %v8476_v6, %v8085_v11  ;;  %v7892_v34 = vmul.f32 %v7500_v24, %v6912_v9  ;;  %v6914_v18 = vmax.f32 %v4252_v39, 0.0  ;;  %v4254_v26 = vadd.f32 %v11468_v36, %v10535_v60  ;;  %v11590_v36 = vld [vmem:[%s12954_s3 + $0x438] sm:$0xff]  ;;  %v11622_v42 = vpop.f32.mrb[83].mxu1  ;;  %6714 = vmatpush1.bf16.msra.mxu1 %v9805_v15 }
 0x1a8   : > { %v8087_v22 = vmul.f32 %v7695_v0, %v7107_v55  ;;  %v6913_v16 = vmax.f32 %v4211_v63, 0.0  ;;  %v4213_v57 = vadd.f32 %v11472_v38, %v10619_v29  ;;  %v7696_v10 = vunpack.c.l.bf16 %v11568_v44  ;;  %6671 = vmatpush1.bf16.msra.mxu0 %v9802_v7  ;;  %6797 = vmatprep.subr.bf16.mxu1 %v9813_v25 }
 0x1a9   : > { %v8478_v33 = vadd.f32 %v8477_v21, %v8086_v5  ;;  %v8283_v19 = vadd.f32 %v8282_v14, %v7892_v34  ;;  %v6915_v20 = vmax.f32 %v4254_v26, 0.0  ;;  %v7503_v38 = vunpack.c.h.bf16 %v11554_v2  ;;  %v11620_v2 = vpop.f32.mrb[83].mxu0  ;;  %v9811_v5 = vld [vmem:[%s9910_s26 + $0x308] ss:$784 sps:$4 sm:$0xff]   ;;  %6754 = vmatprep.subr.bf16.mxu0 %v9810_v50 }
 0x1aa   : > { %v7894_v37 = vmul.f32 %v7502_v8, %v6914_v18  ;;  %v7893_v13 = vmul.f32 %v7501_v32, %v6913_v16  ;;  %v7108_v49 = vmax.f32 %v4213_v57, 0.0  ;;  %v4256_v62 = vadd.f32 %v11474_v27, %v10619_v29  ;;  %v11644_v18 = vld [vmem:[%s12954_s3 + $0x440] sm:$0xff]  ;;  %9196 = vmatmul.mubr.msk.bf16.vlgmr.msra.gmra.mrb[188].mxu1 %vm2622_vm0, %v11511_v53  ;;  %v11656_v16 = vpop.f32.mrb[84].mxu1 }
 0x1ab   : > { %v8479_v4 = vadd.f32 %v8478_v33, %v8087_v22  ;;  %v7698_v35 = vunpack.c.l.bf16 %v11590_v36  ;;  %v4215_v27 = vadd.f32 %v11485_v28, %v10619_v29  ;;  %v7697_v24 = vunpack.c.h.bf16 %v11568_v44  ;;  %v11634_v44 = vld [vmem:[%s12954_s3 + $0x138] sm:$0xff]  ;;  %9195 = vmatmul.mubr.msk.bf16.vlgmr.msra.gmra.mrb[188].mxu0 %vm2622_vm0, %v11511_v53  ;;  %6798 = vmatpush1.bf16.msra.mxu1 %v9811_v5  ;;  %v9814_v57 = vld [vmem:[%s9910_s26 + $0x920] ss:$784 sps:$4 sm:$0xff]  }
 0x1ac   : > { %v8284_v6 = vadd.f32 %v8283_v19, %v7893_v13  ;;  %v8088_v55 = vmul.f32 %v7696_v10, %v7108_v49  ;;  %v7110_v0 = vmax.f32 %v4256_v62, 0.0  ;;  %v4258_v47 = vadd.f32 %v11487_v43, %v10619_v29  ;;  %v9819_v43 = vld [vmem:[%s9910_s26 + $0x92c] ss:$784 sps:$4 sm:$0xff]   ;;  %6755 = vmatpush1.bf16.msra.mxu0 %v9808_v56  ;;  %v9817_v10 = vld [vmem:[%s9910_s26 + $0x928] ss:$784 sps:$4 sm:$0xff]   ;;  %6786 = vmatprep.mubr.bf16.mxu0 %v13011_v51  ;;  %v7272_v56 = vld [vmem:[%s12954_s3 + $0x140] sm:$0xff] }
 0x1ad   : > { %v7895_v11 = vmul.f32 %v7503_v38, %v6915_v20  ;;  %v7109_v28 = vmax.f32 %v4215_v27, 0.0  ;;  %v4295_v9 = vadd.f32 %v11525_v23, %v10535_v60  ;;  %v7504_v39 = vunpack.c.l.bf16 %v11608_v45  ;;  %v11664_v38 = vpop.f32.mrb[85].mxu1  ;;  %6756 = vmatprep.subr.bf16.mxu0 %v9816_v31  ;;  %6799 = vmatprep.subr.bf16.mxu1 %v9819_v43  ;;  %v7369_v49 = vld [vmem:[%s12954_s3 + $0x448] sm:$0xff] }
 0x1ae   : > { %v8285_v61 = vadd.f32 %v8284_v6, %v7894_v37  ;;  %v8480_v14 = vadd.f32 %v8479_v4, %v8088_v55  ;;  %v7111_v8 = vmax.f32 %v4258_v47, 0.0  ;;  %v7699_v63 = vunpack.c.h.bf16 %v11590_v36  ;;  %6829 = vmatprep.mubr.bf16.mxu1 %v13011_v51 }
 0x1af   : > { %v8090_v32 = vmul.f32 %v7698_v35, %v7110_v0  ;;  %v8089_v23 = vmul.f32 %v7697_v24, %v7109_v28  ;;  %v6916_v21 = vmax.f32 %v4295_v9, 0.0  ;;  %v4338_v34 = vadd.f32 %v11527_v48, %v10535_v60  ;;  %v11654_v48 = vpop.f32.mrb[84].mxu0  ;;  %6800 = vmatpush1.bf16.msra.mxu1 %v9817_v10 }
 0x1b0   : > { %v8286_v26 = vadd.f32 %v8285_v61, %v7895_v11  ;;  %v7506_v7 = vunpack.c.l.bf16 %v11634_v44  ;;  %v4297_v15 = vadd.f32 %v11534_v12, %v10535_v60  ;;  %v7505_v22 = vunpack.c.h.bf16 %v11608_v45  ;;  %v11662_v20 = vpop.f32.mrb[85].mxu0  ;;  %6757 = vmatpush1.bf16.msra.mxu0 %v9814_v57 }
 0x1b1   : > { %v8481_v36 = vadd.f32 %v8480_v14, %v8089_v23  ;;  %v7896_v50 = vmul.f32 %v7504_v39, %v6916_v21  ;;  %v6918_v33 = vmax.f32 %v4338_v34, 0.0  ;;  %v4340_v19 = vadd.f32 %v11536_v52, %v10535_v60  ;;  %v11672_v62 = vpop.f32.mrb[86].mxu0  ;;  %v11674_v52 = vpop.f32.mrb[86].mxu1 }
 0x1b2   : > { %v8091_v12 = vmul.f32 %v7699_v63, %v7111_v8  ;;  %v6917_v25 = vmax.f32 %v4297_v15, 0.0  ;;  %v4299_v37 = vadd.f32 %v11542_v3, %v10619_v29  ;;  %v7700_v13 = vunpack.c.l.bf16 %v11644_v18  ;;  %v11679_v3 = vpop.f32.mrb[87].mxu0  ;;  %v11681_v24 = vpop.f32.mrb[87].mxu1  ;;  %v7273_v8 = vld [vmem:[%s12954_s3 + $0x148] sm:$0xff]  ;;  %9198 = vmatmul.mubr.msk.bf16.vlgmr.msra.gmra.mrb[192].mxu1 %vm2622_vm0, %v11511_v53 }
 0x1b3   : > { %v8482_v45 = vadd.f32 %v8481_v36, %v8090_v32  ;;  %v8287_v4 = vadd.f32 %v8286_v26, %v7896_v50  ;;  %v6919_v35 = vmax.f32 %v4340_v19, 0.0  ;;  %v7507_v27 = vunpack.c.h.bf16 %v11634_v44  ;;  %9197 = vmatmul.mubr.msk.bf16.vlgmr.msra.gmra.mrb[192].mxu0 %vm2622_vm0, %v11511_v53  ;;  %v11702_v23 = vpop.f32.mrb[88].mxu0  ;;  %v11704_v21 = vpop.f32.mrb[88].mxu1 }
 0x1b4   : > { %v7898_v6 = vmul.f32 %v7506_v7, %v6918_v33  ;;  %v7897_v55 = vmul.f32 %v7505_v22, %v6917_v25  ;;  %v7112_v0 = vmax.f32 %v4299_v37, 0.0  ;;  %v4342_v47 = vadd.f32 %v11544_v54, %v10619_v29  ;;  %v7370_v7 = vld [vmem:[%s12954_s3 + $0x450] sm:$0xff]  ;;  %v11711_v15 = vpop.f32.mrb[89].mxu0  ;;  %v11713_v53 = vpop.f32.mrb[89].mxu1 }
 0x1b5   : > { %v8483_v51 = vadd.f32 %v8482_v45, %v8091_v12  ;;  %v7702_v5 = vunpack.c.l.bf16 %v7369_v49  ;;  %v4301_v11 = vadd.f32 %v11556_v17, %v10619_v29  ;;  %v7701_v28 = vunpack.c.h.bf16 %v11644_v18  ;;  %v11717_v50 = vpop.f32.mrb[90].mxu0  ;;  %v11719_v33 = vpop.f32.mrb[90].mxu1 }
 0x1b6   : > { %v8288_v9 = vadd.f32 %v8287_v4, %v7897_v55  ;;  %v8092_v39 = vmul.f32 %v7700_v13, %v7112_v0  ;;  %v7114_v44 = vmax.f32 %v4342_v47, 0.0  ;;  %v4344_v31 = vadd.f32 %v11558_v41, %v10619_v29  ;;  %v11723_v37 = vpop.f32.mrb[91].mxu0  ;;  %v11725_v13 = vpop.f32.mrb[91].mxu1 }
 0x1b7   : > { %v7899_v54 = vmul.f32 %v7507_v27, %v6919_v35  ;;  %v7113_v43 = vmax.f32 %v4301_v11, 0.0  ;;  %v4381_v61 = vadd.f32 %v11592_v58, %v10535_v60  ;;  %v7508_v14 = vunpack.c.l.bf16 %v7272_v56  ;;  %v7371_v35 = vld [vmem:[%s12954_s3 + $0x458] sm:$0xff] }
 0x1b8   : > { %v8289_v17 = vadd.f32 %v8288_v9, %v7898_v6  ;;  %v8484_v63 = vadd.f32 %v8483_v51, %v8092_v39  ;;  %v7115_v32 = vmax.f32 %v4344_v31, 0.0  ;;  %v7703_v41 = vunpack.c.h.bf16 %v7369_v49 }
 0x1b9   : > { %v8094_v58 = vmul.f32 %v7702_v5, %v7114_v44  ;;  %v8093_v34 = vmul.f32 %v7701_v28, %v7113_v43  ;;  %v6920_v18 = vmax.f32 %v4381_v61, 0.0  ;;  %v4424_v26 = vadd.f32 %v11594_v40, %v10535_v60  ;;  %v7274_v5 = vld [vmem:[%s12954_s3 + $0x150] sm:$0xff]  ;;  %v11741_v43 = vpop.f32.mrb[92].mxu0  ;;  %v11743_v61 = vpop.f32.mrb[92].mxu1 }
 0x1ba   : > { %v8290_v22 = vadd.f32 %v8289_v17, %v7899_v54  ;;  %v7510_v57 = vunpack.c.l.bf16 %v7273_v8  ;;  %v4383_v10 = vadd.f32 %v11598_v30, %v10535_v60  ;;  %v7509_v36 = vunpack.c.h.bf16 %v7272_v56 }
 0x1bb   : > { %v8485_v19 = vadd.f32 %v8484_v63, %v8093_v34  ;;  %v7900_v40 = vmul.f32 %v7508_v14, %v6920_v18  ;;  %v6922_v12 = vmax.f32 %v4424_v26, 0.0  ;;  %v4426_v25 = vadd.f32 %v11600_v1, %v10535_v60  ;;  %v11750_v63 = vpop.f32.mrb[93].mxu0 }
 0x1bc   : > { %v8095_v49 = vmul.f32 %v7703_v41, %v7115_v32  ;;  %v6921_v45 = vmax.f32 %v4383_v10, 0.0  ;;  %v4385_v30 = vadd.f32 %v11610_v46, %v10619_v29  ;;  %v7704_v4 = vunpack.c.l.bf16 %v7370_v7  ;;  %v11752_v32 = vpop.f32.mrb[93].mxu1  ;;  %v11754_v18 = vpop.f32.mrb[94].mxu0  ;;  %v7372_v10 = vld [vmem:[%s12954_s3 + $0x460] sm:$0xff] }
 0x1bd   : > { %v8486_v27 = vadd.f32 %v8485_v19, %v8094_v58  ;;  %v8291_v6 = vadd.f32 %v8290_v22, %v7900_v40  ;;  %v6923_v55 = vmax.f32 %v4426_v25, 0.0  ;;  %v7511_v0 = vunpack.c.h.bf16 %v7273_v8  ;;  %v11756_v26 = vpop.f32.mrb[94].mxu1 }
 0x1be   : > { %v7902_v47 = vmul.f32 %v7510_v57, %v6922_v12  ;;  %v7901_v1 = vmul.f32 %v7509_v36, %v6921_v45  ;;  %v7116_v56 = vmax.f32 %v4385_v30, 0.0  ;;  %v4428_v51 = vadd.f32 %v11612_v59, %v10619_v29  ;;  %v11763_v36 = vpop.f32.mrb[95].mxu0  ;;  %v11765_v19 = vpop.f32.mrb[95].mxu1 }
 0x1bf   : > { %v8487_v46 = vadd.f32 %v8486_v27, %v8095_v49  ;;  %v7706_v11 = vunpack.c.l.bf16 %v7371_v35  ;;  %v4387_v28 = vadd.f32 %v11620_v2, %v10619_v29  ;;  %v7705_v9 = vunpack.c.h.bf16 %v7370_v7  ;;  %v7275_v2 = vld [vmem:[%s12954_s3 + $0x158] sm:$0xff] }
 0x1c0   : > { %v8292_v39 = vadd.f32 %v8291_v6, %v7901_v1  ;;  %v8096_v44 = vmul.f32 %v7704_v4, %v7116_v56  ;;  %v7118_v31 = vmax.f32 %v4428_v51, 0.0  ;;  %v4430_v54 = vadd.f32 %v11622_v42, %v10619_v29 }
 0x1c1   : > { %v7903_v59 = vmul.f32 %v7511_v0, %v6923_v55  ;;  %v7117_v14 = vmax.f32 %v4387_v28, 0.0  ;;  %v4467_v8 = vadd.f32 %v11654_v48, %v10535_v60  ;;  %v7512_v17 = vunpack.c.l.bf16 %v7274_v5  ;;  %v7373_v0 = vld [vmem:[%s12954_s3 + $0x468] sm:$0xff]  ;;  %v11783_v28 = vpop.f32.mrb[96].mxu1 }
 0x1c2   : > { %v8293_v41 = vadd.f32 %v8292_v39, %v7902_v47  ;;  %v8488_v42 = vadd.f32 %v8487_v46, %v8096_v44  ;;  %v7119_v58 = vmax.f32 %v4430_v54, 0.0  ;;  %v7707_v34 = vunpack.c.h.bf16 %v7371_v35 }
 0x1c3   : > { %v8098_v7 = vmul.f32 %v7706_v11, %v7118_v31  ;;  %v8097_v22 = vmul.f32 %v7705_v9, %v7117_v14  ;;  %v6924_v48 = vmax.f32 %v4467_v8, 0.0  ;;  %v4510_v57 = vadd.f32 %v11656_v16, %v10535_v60  ;;  %v7276_v11 = vld [vmem:[%s12954_s3 + $0x160] sm:$0xff] }
 0x1c4   : > { %v8294_v40 = vadd.f32 %v8293_v41, %v7903_v59  ;;  %v7514_v12 = vunpack.c.l.bf16 %v7275_v2  ;;  %v4469_v25 = vadd.f32 %v11662_v20, %v10535_v60  ;;  %v7513_v49 = vunpack.c.h.bf16 %v7274_v5  ;;  %v11789_v59 = vpop.f32.mrb[97].mxu1 }
 0x1c5   : > { %v8489_v45 = vadd.f32 %v8488_v42, %v8097_v22  ;;  %v7904_v30 = vmul.f32 %v7512_v17, %v6924_v48  ;;  %v6926_v4 = vmax.f32 %v4510_v57, 0.0  ;;  %v4512_v16 = vadd.f32 %v11664_v38, %v10535_v60  ;;  %v11795_v41 = vpop.f32.mrb[98].mxu1 }
 0x1c6   : > { %v8099_v35 = vmul.f32 %v7707_v34, %v7119_v58  ;;  %v6925_v27 = vmax.f32 %v4469_v25, 0.0  ;;  %v4471_v6 = vadd.f32 %v11672_v62, %v10619_v29  ;;  %v7708_v55 = vunpack.c.l.bf16 %v7372_v10  ;;  %v11781_v62 = vpop.f32.mrb[96].mxu0  ;;  %v11804_v48 = vpop.f32.mrb[99].mxu1 }
 0x1c7   : > { %v8490_v47 = vadd.f32 %v8489_v45, %v8098_v7  ;;  %v8295_v1 = vadd.f32 %v8294_v40, %v7904_v30  ;;  %v6927_v20 = vmax.f32 %v4512_v16, 0.0  ;;  %v7515_v56 = vunpack.c.h.bf16 %v7275_v2  ;;  %v11787_v54 = vpop.f32.mrb[97].mxu0  ;;  %v7277_v7 = vld [vmem:[%s12954_s3 + $0x168] sm:$0xff] }
 0x1c8   : > { %v7906_v51 = vmul.f32 %v7514_v12, %v6926_v4  ;;  %v7905_v5 = vmul.f32 %v7513_v49, %v6925_v27  ;;  %v7120_v46 = vmax.f32 %v4471_v6, 0.0  ;;  %v4514_v38 = vadd.f32 %v11674_v52, %v10619_v29  ;;  %v11793_v2 = vpop.f32.mrb[98].mxu0 }
 0x1c9   : > { %v8491_v9 = vadd.f32 %v8490_v47, %v8099_v35  ;;  %v7710_v39 = vunpack.c.l.bf16 %v7373_v0  ;;  %v4473_v44 = vadd.f32 %v11679_v3, %v10619_v29  ;;  %v7709_v31 = vunpack.c.h.bf16 %v7372_v10  ;;  %v11802_v22 = vpop.f32.mrb[99].mxu0 }
 0x1ca   : > { %v8296_v14 = vadd.f32 %v8295_v1, %v7905_v5  ;;  %v8100_v52 = vmul.f32 %v7708_v55, %v7120_v46  ;;  %v7122_v8 = vmax.f32 %v4514_v38, 0.0  ;;  %v4516_v17 = vadd.f32 %v11681_v24, %v10619_v29 }
 0x1cb   : > { %v7907_v42 = vmul.f32 %v7515_v56, %v6927_v20  ;;  %v7121_v58 = vmax.f32 %v4473_v44, 0.0  ;;  %v4553_v3 = vadd.f32 %v11702_v23, %v10535_v60  ;;  %v7516_v34 = vunpack.c.l.bf16 %v7276_v11  ;;  %v7374_v23 = vld [vmem:[%s12954_s3 + $0x470] sm:$0xff]  ;;  %v7375_v56 = vld [vmem:[%s12954_s3 + $0x478] sm:$0xff] }
 0x1cc   : > { %v8297_v57 = vadd.f32 %v8296_v14, %v7906_v51  ;;  %v8492_v24 = vadd.f32 %v8491_v9, %v8100_v52  ;;  %v7123_v10 = vmax.f32 %v4516_v17, 0.0  ;;  %v7711_v40 = vunpack.c.h.bf16 %v7373_v0  ;;  %v11820_v51 = vpop.f32.mrb[100].mxu0  ;;  %v7278_v14 = vld [vmem:[%s12954_s3 + $0x170] sm:$0xff] }
 0x1cd   : > { %v8102_v12 = vmul.f32 %v7710_v39, %v7122_v8  ;;  %v8101_v25 = vmul.f32 %v7709_v31, %v7121_v58  ;;  %v6928_v49 = vmax.f32 %v4553_v3, 0.0  ;;  %v4596_v45 = vadd.f32 %v11704_v21, %v10535_v60  ;;  %v11824_v9 = vpop.f32.mrb[101].mxu0 }
 0x1ce   : > { %v8298_v30 = vadd.f32 %v8297_v57, %v7907_v42  ;;  %v7518_v4 = vunpack.c.l.bf16 %v7277_v7  ;;  %v4555_v16 = vadd.f32 %v11711_v15, %v10535_v60  ;;  %v7517_v35 = vunpack.c.h.bf16 %v7276_v11  ;;  %v11822_v15 = vpop.f32.mrb[100].mxu1  ;;  %v11833_v52 = vpop.f32.mrb[102].mxu0 }
 0x1cf   : > { %v8493_v27 = vadd.f32 %v8492_v24, %v8101_v25  ;;  %v7908_v6 = vmul.f32 %v7516_v34, %v6928_v49  ;;  %v6930_v55 = vmax.f32 %v4596_v45, 0.0  ;;  %v4598_v0 = vadd.f32 %v11713_v53, %v10535_v60  ;;  %v11826_v53 = vpop.f32.mrb[101].mxu1  ;;  %v11839_v34 = vpop.f32.mrb[103].mxu0 }
 0x1d0   : > { %v8103_v47 = vmul.f32 %v7711_v40, %v7123_v10  ;;  %v6929_v1 = vmax.f32 %v4555_v16, 0.0  ;;  %v4557_v21 = vadd.f32 %v11717_v50, %v10619_v29  ;;  %v7712_v20 = vunpack.c.l.bf16 %v7374_v23  ;;  %v11835_v8 = vpop.f32.mrb[102].mxu1 }
 0x1d1   : > { %v8494_v5 = vadd.f32 %v8493_v27, %v8102_v12  ;;  %v8299_v46 = vadd.f32 %v8298_v30, %v7908_v6  ;;  %v6931_v38 = vmax.f32 %v4598_v0, 0.0  ;;  %v7519_v11 = vunpack.c.h.bf16 %v7277_v7  ;;  %v11841_v7 = vpop.f32.mrb[103].mxu1  ;;  %v7376_v6 = vld [vmem:[%s12954_s3 + $0x480] sm:$0xff] }
 0x1d2   : > { %v7910_v39 = vmul.f32 %v7518_v4, %v6930_v55  ;;  %v7909_v44 = vmul.f32 %v7517_v35, %v6929_v1  ;;  %v7124_v50 = vmax.f32 %v4557_v21, 0.0  ;;  %v4600_v31 = vadd.f32 %v11719_v33, %v10619_v29  ;;  %v11857_v1 = vpop.f32.mrb[104].mxu0  ;;  %v11859_v21 = vpop.f32.mrb[104].mxu1 }
 0x1d3   : > { %v8495_v17 = vadd.f32 %v8494_v5, %v8103_v47  ;;  %v7714_v42 = vunpack.c.l.bf16 %v7375_v56  ;;  %v4559_v58 = vadd.f32 %v11723_v37, %v10619_v29  ;;  %v7713_v3 = vunpack.c.h.bf16 %v7374_v23  ;;  %v7279_v37 = vld [vmem:[%s12954_s3 + $0x178] sm:$0xff] }
 0x1d4   : > { %v8300_v57 = vadd.f32 %v8299_v46, %v7909_v44  ;;  %v8104_v33 = vmul.f32 %v7712_v20, %v7124_v50  ;;  %v7126_v24 = vmax.f32 %v4600_v31, 0.0  ;;  %v4602_v10 = vadd.f32 %v11725_v13, %v10619_v29  ;;  %v11863_v46 = vpop.f32.mrb[105].mxu0  ;;  %v7377_v50 = vld [vmem:[%s12954_s3 + $0x488] sm:$0xff] }
 0x1d5   : > { %v7911_v40 = vmul.f32 %v7519_v11, %v6931_v38  ;;  %v7125_v12 = vmax.f32 %v4559_v58, 0.0  ;;  %v4639_v25 = vadd.f32 %v11741_v43, %v10535_v60  ;;  %v7520_v49 = vunpack.c.l.bf16 %v7278_v14  ;;  %v11865_v38 = vpop.f32.mrb[105].mxu1  ;;  %v11872_v31 = vpop.f32.mrb[106].mxu0 }
 0x1d6   : > { %v8301_v45 = vadd.f32 %v8300_v57, %v7910_v39  ;;  %v8496_v23 = vadd.f32 %v8495_v17, %v8104_v33  ;;  %v7127_v30 = vmax.f32 %v4602_v10, 0.0  ;;  %v7715_v4 = vunpack.c.h.bf16 %v7375_v56 }
 0x1d7   : > { %v8106_v16 = vmul.f32 %v7714_v42, %v7126_v24  ;;  %v8105_v35 = vmul.f32 %v7713_v3, %v7125_v12  ;;  %v6932_v27 = vmax.f32 %v4639_v25, 0.0  ;;  %v4682_v13 = vadd.f32 %v11743_v61, %v10535_v60  ;;  %v11876_v3 = vpop.f32.mrb[107].mxu0 }
 0x1d8   : > { %v8302_v43 = vadd.f32 %v8301_v45, %v7911_v40  ;;  %v7522_v55 = vunpack.c.l.bf16 %v7279_v37  ;;  %v4641_v0 = vadd.f32 %v11750_v63, %v10535_v60  ;;  %v7521_v47 = vunpack.c.h.bf16 %v7278_v14  ;;  %v11874_v14 = vpop.f32.mrb[106].mxu1  ;;  %v7280_v40 = vld [vmem:[%s12954_s3 + $0x180] sm:$0xff] }
 0x1d9   : > { %v8497_v20 = vadd.f32 %v8496_v23, %v8105_v35  ;;  %v7912_v56 = vmul.f32 %v7520_v49, %v6932_v27  ;;  %v6934_v5 = vmax.f32 %v4682_v13, 0.0  ;;  %v4684_v61 = vadd.f32 %v11752_v32, %v10535_v60  ;;  %v11878_v57 = vpop.f32.mrb[107].mxu1  ;;  %v7281_v13 = vld [vmem:[%s12954_s3 + $0x188] sm:$0xff] }
 0x1da   : > { %v8107_v11 = vmul.f32 %v7715_v4, %v7127_v30  ;;  %v6933_v39 = vmax.f32 %v4641_v0, 0.0  ;;  %v4643_v63 = vadd.f32 %v11754_v18, %v10619_v29  ;;  %v7716_v44 = vunpack.c.l.bf16 %v7376_v6  ;;  %v11894_v0 = vpop.f32.mrb[108].mxu0 }
 0x1db   : > { %v8498_v17 = vadd.f32 %v8497_v20, %v8106_v16  ;;  %v8303_v32 = vadd.f32 %v8302_v43, %v7912_v56  ;;  %v6935_v42 = vmax.f32 %v4684_v61, 0.0  ;;  %v7523_v58 = vunpack.c.h.bf16 %v7279_v37  ;;  %v11903_v61 = vpop.f32.mrb[109].mxu0 }
 0x1dc   : > { %v7914_v33 = vmul.f32 %v7522_v55, %v6934_v5  ;;  %v7913_v24 = vmul.f32 %v7521_v47, %v6933_v39  ;;  %v7128_v18 = vmax.f32 %v4643_v63, 0.0  ;;  %v4686_v10 = vadd.f32 %v11756_v26, %v10619_v29  ;;  %v11896_v47 = vpop.f32.mrb[108].mxu1 }
 0x1dd   : > { %v8499_v12 = vadd.f32 %v8498_v17, %v8107_v11  ;;  %v7718_v25 = vunpack.c.l.bf16 %v7377_v50  ;;  %v4645_v49 = vadd.f32 %v11763_v36, %v10619_v29  ;;  %v7717_v37 = vunpack.c.h.bf16 %v7376_v6  ;;  %v11905_v11 = vpop.f32.mrb[109].mxu1  ;;  %v11909_v17 = vpop.f32.mrb[110].mxu0 }
 0x1de   : > { %v8304_v45 = vadd.f32 %v8303_v32, %v7913_v24  ;;  %v8108_v23 = vmul.f32 %v7716_v44, %v7128_v18  ;;  %v7130_v30 = vmax.f32 %v4686_v10, 0.0  ;;  %v4688_v4 = vadd.f32 %v11765_v19, %v10619_v29  ;;  %v11911_v32 = vpop.f32.mrb[110].mxu1  ;;  %v11915_v24 = vpop.f32.mrb[111].mxu0 }
 0x1df   : > { %v7915_v16 = vmul.f32 %v7523_v58, %v6935_v42  ;;  %v7129_v35 = vmax.f32 %v4645_v49, 0.0  ;;  %v4725_v26 = vadd.f32 %v11781_v62, %v10535_v60  ;;  %v7524_v27 = vunpack.c.l.bf16 %v7280_v40  ;;  %v7378_v62 = vld [vmem:[%s12954_s3 + $0x490] sm:$0xff]  ;;  %v11917_v18 = vpop.f32.mrb[111].mxu1 }
 0x1e0   : > { %v8305_v43 = vadd.f32 %v8304_v45, %v7914_v33  ;;  %v8500_v55 = vadd.f32 %v8499_v12, %v8108_v23  ;;  %v7131_v36 = vmax.f32 %v4688_v4, 0.0  ;;  %v7719_v6 = vunpack.c.h.bf16 %v7377_v50 }
 0x1e1   : > { %v8110_v20 = vmul.f32 %v7718_v25, %v7130_v30  ;;  %v8109_v19 = vmul.f32 %v7717_v37, %v7129_v35  ;;  %v6936_v56 = vmax.f32 %v4725_v26, 0.0  ;;  %v4768_v5 = vadd.f32 %v11783_v28, %v10535_v60  ;;  %v7379_v25 = vld [vmem:[%s12954_s3 + $0x498] sm:$0xff]  ;;  %v7282_v35 = vld [vmem:[%s12954_s3 + $0x190] sm:$0xff] }
 0x1e2   : > { %v8306_v39 = vadd.f32 %v8305_v43, %v7915_v16  ;;  %v7526_v63 = vunpack.c.l.bf16 %v7281_v13  ;;  %v4727_v44 = vadd.f32 %v11787_v54, %v10535_v60  ;;  %v7525_v50 = vunpack.c.h.bf16 %v7280_v40 }
 0x1e3   : > { %v8501_v42 = vadd.f32 %v8500_v55, %v8109_v19  ;;  %v7916_v28 = vmul.f32 %v7524_v27, %v6936_v56  ;;  %v6938_v58 = vmax.f32 %v4768_v5, 0.0  ;;  %v4770_v33 = vadd.f32 %v11789_v59, %v10535_v60 }
 0x1e4   : > { %v8111_v10 = vmul.f32 %v7719_v6, %v7131_v36  ;;  %v6937_v12 = vmax.f32 %v4727_v44, 0.0  ;;  %v4729_v54 = vadd.f32 %v11793_v2, %v10619_v29  ;;  %v7720_v40 = vunpack.c.l.bf16 %v7378_v62 }
 0x1e5   : > { %v8502_v49 = vadd.f32 %v8501_v42, %v8110_v20  ;;  %v8307_v37 = vadd.f32 %v8306_v39, %v7916_v28  ;;  %v6939_v45 = vmax.f32 %v4770_v33, 0.0  ;;  %v7527_v23 = vunpack.c.h.bf16 %v7281_v13  ;;  %v11933_v20 = vpop.f32.mrb[112].mxu0  ;;  %v7283_v39 = vld [vmem:[%s12954_s3 + $0x198] sm:$0xff] }
 0x1e6   : > { %v7918_v30 = vmul.f32 %v7526_v63, %v6938_v58  ;;  %v7917_v59 = vmul.f32 %v7525_v50, %v6937_v12  ;;  %v7132_v4 = vmax.f32 %v4729_v54, 0.0  ;;  %v4772_v16 = vadd.f32 %v11795_v41, %v10619_v29  ;;  %v7380_v12 = vld [vmem:[%s12954_s3 + $0x4a0] sm:$0xff] }
 0x1e7   : > { %v8503_v2 = vadd.f32 %v8502_v49, %v8111_v10  ;;  %v7722_v26 = vunpack.c.l.bf16 %v7379_v25  ;;  %v4731_v27 = vadd.f32 %v11802_v22, %v10619_v29  ;;  %v7721_v43 = vunpack.c.h.bf16 %v7378_v62  ;;  %v11940_v22 = vpop.f32.mrb[112].mxu1  ;;  %v11942_v62 = vpop.f32.mrb[113].mxu0 }
 0x1e8   : > { %v8308_v55 = vadd.f32 %v8307_v37, %v7917_v59  ;;  %v8112_v36 = vmul.f32 %v7720_v40, %v7132_v4  ;;  %v7134_v6 = vmax.f32 %v4772_v16, 0.0  ;;  %v4774_v13 = vadd.f32 %v11804_v48, %v10619_v29  ;;  %v11944_v42 = vpop.f32.mrb[113].mxu1  ;;  %v11946_v28 = vpop.f32.mrb[114].mxu0 }
 0x1e9   : > { %v7919_v19 = vmul.f32 %v7527_v23, %v6939_v45  ;;  %v7133_v41 = vmax.f32 %v4731_v27, 0.0  ;;  %v4811_v56 = vadd.f32 %v11820_v51, %v10535_v60  ;;  %v7528_v5 = vunpack.c.l.bf16 %v7282_v35  ;;  %v11953_v54 = vpop.f32.mrb[114].mxu1  ;;  %v11955_v40 = vpop.f32.mrb[115].mxu0 }
 0x1ea   : > { %v8309_v63 = vadd.f32 %v8308_v55, %v7918_v30  ;;  %v8504_v44 = vadd.f32 %v8503_v2, %v8112_v36  ;;  %v7135_v50 = vmax.f32 %v4774_v13, 0.0  ;;  %v7723_v48 = vunpack.c.h.bf16 %v7379_v25  ;;  %v11959_v23 = vpop.f32.mrb[115].mxu1 }
 0x1eb   : > { %v8114_v58 = vmul.f32 %v7722_v26, %v7134_v6  ;;  %v8113_v33 = vmul.f32 %v7721_v43, %v7133_v41  ;;  %v6940_v51 = vmax.f32 %v4811_v56, 0.0  ;;  %v4854_v10 = vadd.f32 %v11822_v15, %v10535_v60  ;;  %v7381_v43 = vld [vmem:[%s12954_s3 + $0x4a8] sm:$0xff]  ;;  %v7284_v41 = vld [vmem:[%s12954_s3 + $0x1a0] sm:$0xff] }
 0x1ec   : > { %v8310_v49 = vadd.f32 %v8309_v63, %v7919_v19  ;;  %v7530_v25 = vunpack.c.l.bf16 %v7283_v39  ;;  %v4813_v37 = vadd.f32 %v11824_v9, %v10535_v60  ;;  %v7529_v45 = vunpack.c.h.bf16 %v7282_v35 }
 0x1ed   : > { %v8505_v30 = vadd.f32 %v8504_v44, %v8113_v33  ;;  %v7920_v59 = vmul.f32 %v7528_v5, %v6940_v51  ;;  %v6942_v4 = vmax.f32 %v4854_v10, 0.0  ;;  %v4856_v15 = vadd.f32 %v11826_v53, %v10535_v60  ;;  %v11975_v44 = vpop.f32.mrb[116].mxu0  ;;  %v11979_v33 = vpop.f32.mrb[116].mxu1 }
 0x1ee   : > { %v8115_v16 = vmul.f32 %v7723_v48, %v7135_v50  ;;  %v6941_v2 = vmax.f32 %v4813_v37, 0.0  ;;  %v4815_v26 = vadd.f32 %v11833_v52, %v10619_v29  ;;  %v7724_v27 = vunpack.c.l.bf16 %v7380_v12 }
 0x1ef   : > { %v8506_v9 = vadd.f32 %v8505_v30, %v8114_v58  ;;  %v8311_v35 = vadd.f32 %v8310_v49, %v7920_v59  ;;  %v6943_v55 = vmax.f32 %v4856_v15, 0.0  ;;  %v7531_v36 = vunpack.c.h.bf16 %v7283_v39 }
 0x1f0   : > { %v7922_v6 = vmul.f32 %v7530_v25, %v6942_v4  ;;  %v7921_v13 = vmul.f32 %v7529_v45, %v6941_v2  ;;  %v7136_v19 = vmax.f32 %v4815_v26, 0.0  ;;  %v4858_v53 = vadd.f32 %v11835_v8, %v10619_v29  ;;  %v11981_v8 = vpop.f32.mrb[117].mxu0 }
 0x1f1   : > { %v8507_v52 = vadd.f32 %v8506_v9, %v8115_v16  ;;  %v7726_v56 = vunpack.c.l.bf16 %v7381_v43  ;;  %v4817_v5 = vadd.f32 %v11839_v34, %v10619_v29  ;;  %v7725_v63 = vunpack.c.h.bf16 %v7380_v12  ;;  %v7285_v34 = vld [vmem:[%s12954_s3 + $0x1a8] sm:$0xff]  ;;  %v11988_v12 = vpop.f32.mrb[117].mxu1  ;;  %v11990_v37 = vpop.f32.mrb[118].mxu0 }
 0x1f2   : > { %v8312_v50 = vadd.f32 %v8311_v35, %v7921_v13  ;;  %v8116_v39 = vmul.f32 %v7724_v27, %v7136_v19  ;;  %v7138_v48 = vmax.f32 %v4858_v53, 0.0  ;;  %v4860_v58 = vadd.f32 %v11841_v7, %v10619_v29  ;;  %v11992_v4 = vpop.f32.mrb[118].mxu1  ;;  %v11994_v15 = vpop.f32.mrb[119].mxu0  ;;  %v7382_v27 = vld [vmem:[%s12954_s3 + $0x4b0] sm:$0xff] }
 0x1f3   : > { %v7923_v51 = vmul.f32 %v7531_v36, %v6943_v55  ;;  %v7137_v10 = vmax.f32 %v4817_v5, 0.0  ;;  %v4897_v49 = vadd.f32 %v11857_v1, %v10535_v60  ;;  %v7532_v25 = vunpack.c.l.bf16 %v7284_v41  ;;  %v12001_v9 = vpop.f32.mrb[119].mxu1 }
 0x1f4   : > { %v8313_v45 = vadd.f32 %v8312_v50, %v7922_v6  ;;  %v8508_v7 = vadd.f32 %v8507_v52, %v8116_v39  ;;  %v7139_v30 = vmax.f32 %v4860_v58, 0.0  ;;  %v7727_v59 = vunpack.c.h.bf16 %v7381_v43 }
 0x1f5   : > { %v8118_v16 = vmul.f32 %v7726_v56, %v7138_v48  ;;  %v8117_v2 = vmul.f32 %v7725_v63, %v7137_v10  ;;  %v6944_v1 = vmax.f32 %v4897_v49, 0.0  ;;  %v4940_v26 = vadd.f32 %v11859_v21, %v10535_v60  ;;  %v7383_v63 = vld [vmem:[%s12954_s3 + $0x4b8] sm:$0xff]  ;;  %v12012_v48 = vpop.f32.mrb[120].mxu0  ;;  %v12019_v49 = vpop.f32.mrb[120].mxu1 }
 0x1f6   : > { %v8314_v35 = vadd.f32 %v8313_v45, %v7923_v51  ;;  %v7534_v55 = vunpack.c.l.bf16 %v7285_v34  ;;  %v4899_v43 = vadd.f32 %v11863_v46, %v10535_v60  ;;  %v7533_v36 = vunpack.c.h.bf16 %v7284_v41 }
 0x1f7   : > { %v8509_v6 = vadd.f32 %v8508_v7, %v8117_v2  ;;  %v7924_v13 = vmul.f32 %v7532_v25, %v6944_v1  ;;  %v6946_v19 = vmax.f32 %v4940_v26, 0.0  ;;  %v4942_v53 = vadd.f32 %v11865_v38, %v10535_v60  ;;  %v12021_v25 = vpop.f32.mrb[121].mxu0 }
 0x1f8   : > { %v8119_v52 = vmul.f32 %v7727_v59, %v7139_v30  ;;  %v6945_v21 = vmax.f32 %v4899_v43, 0.0  ;;  %v4901_v56 = vadd.f32 %v11872_v31, %v10619_v29  ;;  %v7728_v5 = vunpack.c.l.bf16 %v7382_v27  ;;  %v7286_v31 = vld [vmem:[%s12954_s3 + $0x1b0] sm:$0xff]  ;;  %v12025_v59 = vpop.f32.mrb[121].mxu1 }
 0x1f9   : > { %v8510_v50 = vadd.f32 %v8509_v6, %v8118_v16  ;;  %v8315_v39 = vadd.f32 %v8314_v35, %v7924_v13  ;;  %v6947_v46 = vmax.f32 %v4942_v53, 0.0  ;;  %v7535_v41 = vunpack.c.h.bf16 %v7285_v34  ;;  %v12027_v16 = vpop.f32.mrb[122].mxu0  ;;  %v12031_v35 = vpop.f32.mrb[122].mxu1  ;;  %v7287_v6 = vld [vmem:[%s12954_s3 + $0x1b8] sm:$0xff] }
 0x1fa   : > { %v7926_v58 = vmul.f32 %v7534_v55, %v6946_v19  ;;  %v7925_v51 = vmul.f32 %v7533_v36, %v6945_v21  ;;  %v7140_v10 = vmax.f32 %v4901_v56, 0.0  ;;  %v4944_v38 = vadd.f32 %v11874_v14, %v10619_v29  ;;  %v12033_v55 = vpop.f32.mrb[123].mxu0  ;;  %v12040_v13 = vpop.f32.mrb[123].mxu1 }
 0x1fb   : > { %v8511_v45 = vadd.f32 %v8510_v50, %v8119_v52  ;;  %v7730_v7 = vunpack.c.l.bf16 %v7383_v63  ;;  %v4903_v34 = vadd.f32 %v11876_v3, %v10619_v29  ;;  %v7729_v30 = vunpack.c.h.bf16 %v7382_v27 }
 0x1fc   : > { %v8316_v2 = vadd.f32 %v8315_v39, %v7925_v51  ;;  %v8120_v14 = vmul.f32 %v7728_v5, %v7140_v10  ;;  %v7142_v1 = vmax.f32 %v4944_v38, 0.0  ;;  %v4946_v26 = vadd.f32 %v11878_v57, %v10619_v29 }
 0x1fd   : > { %v7927_v43 = vmul.f32 %v7535_v41, %v6947_v46  ;;  %v7141_v36 = vmax.f32 %v4903_v34, 0.0  ;;  %v4983_v3 = vadd.f32 %v11894_v0, %v10535_v60  ;;  %v7536_v27 = vunpack.c.l.bf16 %v7286_v31  ;;  %v7384_v0 = vld [vmem:[%s12954_s3 + $0x4c0] sm:$0xff] }
 0x1fe   : > { %v8317_v19 = vadd.f32 %v8316_v2, %v7926_v58  ;;  %v8512_v53 = vadd.f32 %v8511_v45, %v8120_v14  ;;  %v7143_v52 = vmax.f32 %v4946_v26, 0.0  ;;  %v7731_v57 = vunpack.c.h.bf16 %v7383_v63  ;;  %v12056_v2 = vpop.f32.mrb[124].mxu0 }
 0x1ff   : > { %v8122_v21 = vmul.f32 %v7730_v7, %v7142_v1  ;;  %v8121_v56 = vmul.f32 %v7729_v30, %v7141_v36  ;;  %v6948_v5 = vmax.f32 %v4983_v3, 0.0  ;;  %v5026_v50 = vadd.f32 %v11896_v47, %v10535_v60  ;;  %v7385_v30 = vld [vmem:[%s12954_s3 + $0x4c8] sm:$0xff] }
 0x200   : > { %v8318_v39 = vadd.f32 %v8317_v19, %v7927_v43  ;;  %v7538_v46 = vunpack.c.l.bf16 %v7287_v6  ;;  %v4985_v41 = vadd.f32 %v11903_v61, %v10535_v60  ;;  %v7537_v51 = vunpack.c.h.bf16 %v7286_v31  ;;  %v12058_v61 = vpop.f32.mrb[124].mxu1  ;;  %v12060_v43 = vpop.f32.mrb[125].mxu0  ;;  %v7288_v19 = vld [vmem:[%s12954_s3 + $0x1c0] sm:$0xff] }
 0x201   : > { %v8513_v58 = vadd.f32 %v8512_v53, %v8121_v56  ;;  %v7928_v10 = vmul.f32 %v7536_v27, %v6948_v5  ;;  %v6950_v38 = vmax.f32 %v5026_v50, 0.0  ;;  %v5028_v63 = vadd.f32 %v11905_v11, %v10535_v60  ;;  %v12062_v11 = vpop.f32.mrb[125].mxu1  ;;  %v12069_v53 = vpop.f32.mrb[126].mxu0 }
 0x202   : > { %v8123_v45 = vmul.f32 %v7731_v57, %v7143_v52  ;;  %v6949_v7 = vmax.f32 %v4985_v41, 0.0  ;;  %v4987_v47 = vadd.f32 %v11909_v17, %v10619_v29  ;;  %v7732_v34 = vunpack.c.l.bf16 %v7384_v0  ;;  %v12071_v52 = vpop.f32.mrb[126].mxu1  ;;  %v12075_v5 = vpop.f32.mrb[127].mxu0 }
 0x203   : > { %v8514_v31 = vadd.f32 %v8513_v58, %v8122_v21  ;;  %v8319_v14 = vadd.f32 %v8318_v39, %v7928_v10  ;;  %v6951_v1 = vmax.f32 %v5028_v63, 0.0  ;;  %v7539_v26 = vunpack.c.h.bf16 %v7287_v6  ;;  %v12077_v50 = vpop.f32.mrb[127].mxu1 }
 0x204   : > { %v7930_v36 = vmul.f32 %v7538_v46, %v6950_v38  ;;  %v7929_v3 = vmul.f32 %v7537_v51, %v6949_v7  ;;  %v7144_v17 = vmax.f32 %v4987_v47, 0.0  ;;  %v5030_v27 = vadd.f32 %v11911_v32, %v10619_v29 }
 0x205   : > { %v8515_v57 = vadd.f32 %v8514_v31, %v8123_v45  ;;  %v7734_v6 = vunpack.c.l.bf16 %v7385_v30  ;;  %v4989_v21 = vadd.f32 %v11915_v24, %v10619_v29  ;;  %v7733_v56 = vunpack.c.h.bf16 %v7384_v0  ;;  %v7289_v24 = vld [vmem:[%s12954_s3 + $0x1c8] sm:$0xff] }
 0x206   : > { %v8320_v39 = vadd.f32 %v8319_v14, %v7929_v3  ;;  %v8124_v32 = vmul.f32 %v7732_v34, %v7144_v17  ;;  %v7146_v46 = vmax.f32 %v5030_v27, 0.0  ;;  %v5032_v41 = vadd.f32 %v11917_v18, %v10619_v29  ;;  %v7386_v14 = vld [vmem:[%s12954_s3 + $0x4d0] sm:$0xff]  ;;  %v12095_v17 = vpop.f32.mrb[128].mxu1 }
 0x207   : > { %v7931_v51 = vmul.f32 %v7539_v26, %v6951_v1  ;;  %v7145_v58 = vmax.f32 %v4989_v21, 0.0  ;;  %v5069_v10 = vadd.f32 %v11933_v20, %v10535_v60  ;;  %v7540_v38 = vunpack.c.l.bf16 %v7288_v19  ;;  %v12101_v21 = vpop.f32.mrb[129].mxu1 }
 0x208   : > { %v8321_v0 = vadd.f32 %v8320_v39, %v7930_v36  ;;  %v8516_v63 = vadd.f32 %v8515_v57, %v8124_v32  ;;  %v7147_v45 = vmax.f32 %v5032_v41, 0.0  ;;  %v7735_v7 = vunpack.c.h.bf16 %v7385_v30  ;;  %v12093_v36 = vpop.f32.mrb[128].mxu0  ;;  %v7387_v32 = vld [vmem:[%s12954_s3 + $0x4d8] sm:$0xff]  ;;  %v12110_v41 = vpop.f32.mrb[130].mxu1 }
 0x209   : > { %v8126_v47 = vmul.f32 %v7734_v6, %v7146_v46  ;;  %v8125_v34 = vmul.f32 %v7733_v56, %v7145_v58  ;;  %v6952_v31 = vmax.f32 %v5069_v10, 0.0  ;;  %v5112_v18 = vadd.f32 %v11940_v22, %v10535_v60  ;;  %v12099_v6 = vpop.f32.mrb[129].mxu0 }
 0x20a   : > { %v8322_v20 = vadd.f32 %v8321_v0, %v7931_v51  ;;  %v7542_v1 = vunpack.c.l.bf16 %v7289_v24  ;;  %v5071_v26 = vadd.f32 %v11942_v62, %v10535_v60  ;;  %v7541_v3 = vunpack.c.h.bf16 %v7288_v19  ;;  %v12108_v46 = vpop.f32.mrb[130].mxu0  ;;  %v12114_v0 = vpop.f32.mrb[131].mxu1 }
 0x20b   : > { %v8517_v30 = vadd.f32 %v8516_v63, %v8125_v34  ;;  %v7932_v27 = vmul.f32 %v7540_v38, %v6952_v31  ;;  %v6954_v57 = vmax.f32 %v5112_v18, 0.0  ;;  %v5114_v22 = vadd.f32 %v11944_v42, %v10535_v60  ;;  %v12112_v38 = vpop.f32.mrb[131].mxu0  ;;  %v7290_v34 = vld [vmem:[%s12954_s3 + $0x1d0] sm:$0xff] }
 0x20c   : > { %v8127_v56 = vmul.f32 %v7735_v7, %v7147_v45  ;;  %v6953_v39 = vmax.f32 %v5071_v26, 0.0  ;;  %v5073_v62 = vadd.f32 %v11946_v28, %v10619_v29  ;;  %v7736_v19 = vunpack.c.l.bf16 %v7386_v14 }
 0x20d   : > { %v8518_v51 = vadd.f32 %v8517_v30, %v8126_v47  ;;  %v8323_v42 = vadd.f32 %v8322_v20, %v7932_v27  ;;  %v6955_v58 = vmax.f32 %v5114_v22, 0.0  ;;  %v7543_v10 = vunpack.c.h.bf16 %v7289_v24  ;;  %v7291_v22 = vld [vmem:[%s12954_s3 + $0x1d8] sm:$0xff] }
 0x20e   : > { %v7934_v63 = vmul.f32 %v7542_v1, %v6954_v57  ;;  %v7933_v45 = vmul.f32 %v7541_v3, %v6953_v39  ;;  %v7148_v28 = vmax.f32 %v5073_v62, 0.0  ;;  %v5116_v7 = vadd.f32 %v11953_v54, %v10619_v29  ;;  %v12130_v62 = vpop.f32.mrb[132].mxu0 }
 0x20f   : > { %v8519_v31 = vadd.f32 %v8518_v51, %v8127_v56  ;;  %v7738_v18 = vunpack.c.l.bf16 %v7387_v32  ;;  %v5075_v47 = vadd.f32 %v11955_v40, %v10619_v29  ;;  %v7737_v24 = vunpack.c.h.bf16 %v7386_v14 }
 0x210   : > { %v8324_v20 = vadd.f32 %v8323_v42, %v7933_v45  ;;  %v8128_v26 = vmul.f32 %v7736_v19, %v7148_v28  ;;  %v7150_v30 = vmax.f32 %v5116_v7, 0.0  ;;  %v5118_v1 = vadd.f32 %v11959_v23, %v10619_v29  ;;  %v12132_v19 = vpop.f32.mrb[132].mxu1 }
 0x211   : > { %v7935_v3 = vmul.f32 %v7543_v10, %v6955_v58  ;;  %v7149_v27 = vmax.f32 %v5075_v47, 0.0  ;;  %v5155_v54 = vadd.f32 %v11975_v44, %v10535_v60  ;;  %v7544_v57 = vunpack.c.l.bf16 %v7290_v34  ;;  %v7388_v44 = vld [vmem:[%s12954_s3 + $0x4e0] sm:$0xff]  ;;  %v12139_v10 = vpop.f32.mrb[133].mxu0 }
 0x212   : > { %v8325_v56 = vadd.f32 %v8324_v20, %v7934_v63  ;;  %v8520_v39 = vadd.f32 %v8519_v31, %v8128_v26  ;;  %v7151_v40 = vmax.f32 %v5118_v1, 0.0  ;;  %v7739_v14 = vunpack.c.h.bf16 %v7387_v32  ;;  %v12141_v63 = vpop.f32.mrb[133].mxu1  ;;  %v12145_v31 = vpop.f32.mrb[134].mxu0 }
 0x213   : > { %v8130_v51 = vmul.f32 %v7738_v18, %v7150_v30  ;;  %v8129_v23 = vmul.f32 %v7737_v24, %v7149_v27  ;;  %v6956_v42 = vmax.f32 %v5155_v54, 0.0  ;;  %v5198_v58 = vadd.f32 %v11979_v33, %v10535_v60  ;;  %v12147_v18 = vpop.f32.mrb[134].mxu1  ;;  %v12151_v26 = vpop.f32.mrb[135].mxu0  ;;  %v7389_v27 = vld [vmem:[%s12954_s3 + $0x4e8] sm:$0xff] }
 0x214   : > { %v8326_v45 = vadd.f32 %v8325_v56, %v7935_v3  ;;  %v7546_v32 = vunpack.c.l.bf16 %v7291_v22  ;;  %v5157_v28 = vadd.f32 %v11981_v8, %v10535_v60  ;;  %v7545_v7 = vunpack.c.h.bf16 %v7290_v34  ;;  %v12153_v30 = vpop.f32.mrb[135].mxu1 }
 0x215   : > { %v8521_v47 = vadd.f32 %v8520_v39, %v8129_v23  ;;  %v7936_v33 = vmul.f32 %v7544_v57, %v6956_v42  ;;  %v6958_v24 = vmax.f32 %v5198_v58, 0.0  ;;  %v5200_v20 = vadd.f32 %v11988_v12, %v10535_v60  ;;  %13120 = vst [vmem:[#allocation2_spill] sm:$0xff] %v12153_v30 }
 0x216   : > { %v8131_v1 = vmul.f32 %v7739_v14, %v7151_v40  ;;  %v6957_v3 = vmax.f32 %v5157_v28, 0.0  ;;  %v5159_v8 = vadd.f32 %v11990_v37, %v10619_v29  ;;  %v7740_v34 = vunpack.c.l.bf16 %v7388_v44  ;;  %v7292_v40 = vld [vmem:[%s12954_s3 + $0x1e0] sm:$0xff] }
 0x217   : > { %v8522_v54 = vadd.f32 %v8521_v47, %v8130_v51  ;;  %v8327_v57 = vadd.f32 %v8326_v45, %v7936_v33  ;;  %v6959_v56 = vmax.f32 %v5200_v20, 0.0  ;;  %v7547_v39 = vunpack.c.h.bf16 %v7291_v22 }
 0x218   : > { %v7938_v23 = vmul.f32 %v7546_v32, %v6958_v24  ;;  %v7937_v12 = vmul.f32 %v7545_v7, %v6957_v3  ;;  %v7152_v42 = vmax.f32 %v5159_v8, 0.0  ;;  %v5202_v58 = vadd.f32 %v11992_v4, %v10619_v29  ;;  %v12169_v32 = vpop.f32.mrb[136].mxu0  ;;  %v12171_v7 = vpop.f32.mrb[136].mxu1 }
 0x219   : > { %v8523_v37 = vadd.f32 %v8522_v54, %v8131_v1  ;;  %v7742_v14 = vunpack.c.l.bf16 %v7389_v27  ;;  %v5161_v28 = vadd.f32 %v11994_v15, %v10619_v29  ;;  %v7741_v30 = vunpack.c.h.bf16 %v7388_v44  ;;  %v7293_v15 = vld [vmem:[%s12954_s3 + $0x1e8] sm:$0xff]  ;;  %v12178_v44 = vpop.f32.mrb[137].mxu0  ;;  %v12180_v1 = vpop.f32.mrb[137].mxu1 }
 0x21a   : > { %v8328_v51 = vadd.f32 %v8327_v57, %v7937_v12  ;;  %v8132_v45 = vmul.f32 %v7740_v34, %v7152_v42  ;;  %v7154_v47 = vmax.f32 %v5202_v58, 0.0  ;;  %v5204_v22 = vadd.f32 %v12001_v9, %v10619_v29  ;;  %v12182_v54 = vpop.f32.mrb[138].mxu0  ;;  %v12184_v57 = vpop.f32.mrb[138].mxu1  ;;  %v7390_v42 = vld [vmem:[%s12954_s3 + $0x4f0] sm:$0xff] }
 0x21b   : > { %v7939_v4 = vmul.f32 %v7547_v39, %v6959_v56  ;;  %v7153_v33 = vmax.f32 %v5161_v28, 0.0  ;;  %v5241_v24 = vadd.f32 %v12012_v48, %v10535_v60  ;;  %v7548_v20 = vunpack.c.l.bf16 %v7292_v40  ;;  %v12191_v58 = vpop.f32.mrb[139].mxu0 }
 0x21c   : > { %v8329_v3 = vadd.f32 %v8328_v51, %v7938_v23  ;;  %v8524_v9 = vadd.f32 %v8523_v37, %v8132_v45  ;;  %v7155_v8 = vmax.f32 %v5204_v22, 0.0  ;;  %v7743_v34 = vunpack.c.h.bf16 %v7389_v27  ;;  %v12193_v23 = vpop.f32.mrb[139].mxu1 }
 0x21d   : > { %v8134_v56 = vmul.f32 %v7742_v14, %v7154_v47  ;;  %v8133_v39 = vmul.f32 %v7741_v30, %v7153_v33  ;;  %v6960_v48 = vmax.f32 %v5241_v24, 0.0  ;;  %v5284_v12 = vadd.f32 %v12019_v49, %v10535_v60  ;;  %13121 = vst [vmem:[#allocation3_spill] sm:$0xff] %v12193_v23 }
 0x21e   : > { %v8330_v37 = vadd.f32 %v8329_v3, %v7939_v4  ;;  %v7550_v27 = vunpack.c.l.bf16 %v7293_v15  ;;  %v5243_v28 = vadd.f32 %v12021_v25, %v10535_v60  ;;  %v7549_v51 = vunpack.c.h.bf16 %v7292_v40  ;;  %v7391_v4 = vld [vmem:[%s12954_s3 + $0x4f8] sm:$0xff] }
 0x21f   : > { %v8525_v14 = vadd.f32 %v8524_v9, %v8133_v39  ;;  %v7940_v30 = vmul.f32 %v7548_v20, %v6960_v48  ;;  %v6962_v45 = vmax.f32 %v5284_v12, 0.0  ;;  %v5286_v49 = vadd.f32 %v12025_v59, %v10535_v60 }
 0x220   : > { %v8135_v47 = vmul.f32 %v7743_v34, %v7155_v8  ;;  %v6961_v22 = vmax.f32 %v5243_v28, 0.0  ;;  %v5245_v33 = vadd.f32 %v12027_v16, %v10619_v29  ;;  %v7744_v24 = vunpack.c.l.bf16 %v7390_v42  ;;  %v7294_v8 = vld [vmem:[%s12954_s3 + $0x1f0] sm:$0xff]  ;;  %v12209_v16 = vpop.f32.mrb[140].mxu0  ;;  %v12211_v34 = vpop.f32.mrb[140].mxu1 }
 0x221   : > { %v8526_v3 = vadd.f32 %v8525_v14, %v8134_v56  ;;  %v8331_v23 = vadd.f32 %v8330_v37, %v7940_v30  ;;  %v6963_v25 = vmax.f32 %v5286_v49, 0.0  ;;  %v7551_v40 = vunpack.c.h.bf16 %v7293_v15  ;;  %v12215_v37 = vpop.f32.mrb[141].mxu0 }
 0x222   : > { %v7942_v9 = vmul.f32 %v7550_v27, %v6962_v45  ;;  %v7941_v20 = vmul.f32 %v7549_v51, %v6961_v22  ;;  %v7156_v39 = vmax.f32 %v5245_v33, 0.0  ;;  %v5288_v59 = vadd.f32 %v12031_v35, %v10619_v29  ;;  %v12217_v27 = vpop.f32.mrb[141].mxu1  ;;  %v12221_v30 = vpop.f32.mrb[142].mxu0  ;;  %v7295_v22 = vld [vmem:[%s12954_s3 + $0x1f8] sm:$0xff] }
 0x223   : > { %v8527_v48 = vadd.f32 %v8526_v3, %v8135_v47  ;;  %v7746_v12 = vunpack.c.l.bf16 %v7391_v4  ;;  %v5247_v56 = vadd.f32 %v12033_v55, %v10619_v29  ;;  %v7745_v15 = vunpack.c.h.bf16 %v7390_v42  ;;  %v12223_v45 = vpop.f32.mrb[142].mxu1 }
 0x224   : > { %v8332_v28 = vadd.f32 %v8331_v23, %v7941_v20  ;;  %v8136_v35 = vmul.f32 %v7744_v24, %v7156_v39  ;;  %v7158_v51 = vmax.f32 %v5288_v59, 0.0  ;;  %v5290_v14 = vadd.f32 %v12040_v13, %v10619_v29  ;;  %13122 = vst [vmem:[#allocation4_spill] sm:$0xff] %v12223_v45  ;;  %v12230_v23 = vpop.f32.mrb[143].mxu0  ;;  %v12232_v33 = vpop.f32.mrb[143].mxu1 }
 0x225   : > { %v7943_v49 = vmul.f32 %v7551_v40, %v6963_v25  ;;  %v7157_v47 = vmax.f32 %v5247_v56, 0.0  ;;  %v5327_v55 = vadd.f32 %v12056_v2, %v10535_v60  ;;  %v7552_v42 = vunpack.c.l.bf16 %v7294_v8  ;;  %13123 = vst [vmem:[#allocation5_spill] sm:$0xff] %v12230_v23  ;;  %13124 = vst [vmem:[#allocation6_spill] sm:$0xff] %v12232_v33  ;;  %v7392_v2 = vld [vmem:[%s12954_s3 + $0x500] sm:$0xff] }
 0x226   : > { %v8333_v24 = vadd.f32 %v8332_v28, %v7942_v9  ;;  %v8528_v13 = vadd.f32 %v8527_v48, %v8136_v35  ;;  %v7159_v3 = vmax.f32 %v5290_v14, 0.0  ;;  %v7747_v20 = vunpack.c.h.bf16 %v7391_v4  ;;  %v12248_v14 = vpop.f32.mrb[144].mxu0 }
 0x227   : > { %v8138_v39 = vmul.f32 %v7746_v12, %v7158_v51  ;;  %v8137_v59 = vmul.f32 %v7745_v15, %v7157_v47  ;;  %v6964_v25 = vmax.f32 %v5327_v55, 0.0  ;;  %v5370_v40 = vadd.f32 %v12058_v61, %v10535_v60  ;;  %v7393_v51 = vld [vmem:[%s12954_s3 + $0x508] sm:$0xff] }
 0x228   : > { %v8334_v56 = vadd.f32 %v8333_v24, %v7943_v49  ;;  %v7554_v45 = vunpack.c.l.bf16 %v7295_v22  ;;  %v5329_v23 = vadd.f32 %v12060_v43, %v10535_v60  ;;  %v7553_v33 = vunpack.c.h.bf16 %v7294_v8  ;;  %v12250_v43 = vpop.f32.mrb[144].mxu1 }
 0x229   : > { %v8529_v9 = vadd.f32 %v8528_v13, %v8137_v59  ;;  %v7944_v48 = vmul.f32 %v7552_v42, %v6964_v25  ;;  %v6966_v28 = vmax.f32 %v5370_v40, 0.0  ;;  %v5372_v4 = vadd.f32 %v12062_v11, %v10535_v60  ;;  %v12252_v42 = vpop.f32.mrb[145].mxu0  ;;  %v12254_v11 = vpop.f32.mrb[145].mxu1 }
 0x22a   : > { %v8139_v12 = vmul.f32 %v7747_v20, %v7159_v3  ;;  %v6965_v15 = vmax.f32 %v5329_v23, 0.0  ;;  %v5331_v61 = vadd.f32 %v12069_v53, %v10619_v29  ;;  %v7748_v35 = vunpack.c.l.bf16 %v7392_v2  ;;  %v7296_v3 = vld [vmem:[%s12954_s3 + $0x200] sm:$0xff]  ;;  %v12261_v20 = vpop.f32.mrb[146].mxu0 }
 0x22b   : > { %v8530_v8 = vadd.f32 %v8529_v9, %v8138_v39  ;;  %v8335_v49 = vadd.f32 %v8334_v56, %v7944_v48  ;;  %v6967_v47 = vmax.f32 %v5372_v4, 0.0  ;;  %v7555_v55 = vunpack.c.h.bf16 %v7295_v22  ;;  %v12263_v39 = vpop.f32.mrb[146].mxu1 }
 0x22c   : > { %v7946_v23 = vmul.f32 %v7554_v45, %v6966_v28  ;;  %v7945_v24 = vmul.f32 %v7553_v33, %v6965_v15  ;;  %v7160_v53 = vmax.f32 %v5331_v61, 0.0  ;;  %v5374_v13 = vadd.f32 %v12071_v52, %v10619_v29  ;;  %v12267_v45 = vpop.f32.mrb[147].mxu0  ;;  %v12269_v33 = vpop.f32.mrb[147].mxu1 }
 0x22d   : > { %v8531_v59 = vadd.f32 %v8530_v8, %v8139_v12  ;;  %v7750_v22 = vunpack.c.l.bf16 %v7393_v51  ;;  %v5333_v25 = vadd.f32 %v12075_v5, %v10619_v29  ;;  %v7749_v40 = vunpack.c.h.bf16 %v7392_v2  ;;  %13125 = vst [vmem:[#allocation7_spill] sm:$0xff] %v12269_v33  ;;  %v7297_v5 = vld [vmem:[%s12954_s3 + $0x208] sm:$0xff] }
 0x22e   : > { %v8336_v56 = vadd.f32 %v8335_v49, %v7945_v24  ;;  %v8140_v52 = vmul.f32 %v7748_v35, %v7160_v53  ;;  %v7162_v9 = vmax.f32 %v5374_v13, 0.0  ;;  %v5376_v48 = vadd.f32 %v12077_v50, %v10619_v29 }
 0x22f   : > { %v7947_v28 = vmul.f32 %v7555_v55, %v6967_v47  ;;  %v7161_v4 = vmax.f32 %v5333_v25, 0.0  ;;  %v5413_v12 = vadd.f32 %v12093_v36, %v10535_v60  ;;  %v7556_v15 = vunpack.c.l.bf16 %v7296_v3  ;;  %v7394_v47 = vld [vmem:[%s12954_s3 + $0x510] sm:$0xff] }
 0x230   : > { %v8337_v2 = vadd.f32 %v8336_v56, %v7946_v23  ;;  %v8532_v61 = vadd.f32 %v8531_v59, %v8140_v52  ;;  %v7163_v8 = vmax.f32 %v5376_v48, 0.0  ;;  %v7751_v33 = vunpack.c.h.bf16 %v7393_v51  ;;  %v12285_v23 = vpop.f32.mrb[148].mxu0  ;;  %v12287_v59 = vpop.f32.mrb[148].mxu1  ;;  %v7395_v48 = vld [vmem:[%s12954_s3 + $0x518] sm:$0xff] }
 0x231   : > { %v8142_v49 = vmul.f32 %v7750_v22, %v7162_v9  ;;  %v8141_v35 = vmul.f32 %v7749_v40, %v7161_v4  ;;  %v6968_v24 = vmax.f32 %v5413_v12, 0.0  ;;  %v5456_v50 = vadd.f32 %v12095_v17, %v10535_v60  ;;  %v12291_v40 = vpop.f32.mrb[149].mxu0  ;;  %v12293_v56 = vpop.f32.mrb[149].mxu1 }
 0x232   : > { %v8338_v36 = vadd.f32 %v8337_v2, %v7947_v28  ;;  %v7558_v55 = vunpack.c.l.bf16 %v7297_v5  ;;  %v5415_v53 = vadd.f32 %v12099_v6, %v10535_v60  ;;  %v7557_v13 = vunpack.c.h.bf16 %v7296_v3  ;;  %v12300_v28 = vpop.f32.mrb[150].mxu0  ;;  %v12302_v4 = vpop.f32.mrb[150].mxu1 }
 0x233   : > { %v8533_v51 = vadd.f32 %v8532_v61, %v8141_v35  ;;  %v7948_v22 = vmul.f32 %v7556_v15, %v6968_v24  ;;  %v6970_v25 = vmax.f32 %v5456_v50, 0.0  ;;  %v5458_v17 = vadd.f32 %v12101_v21, %v10535_v60  ;;  %13126 = vst [vmem:[#allocation8_spill] sm:$0xff] %v12302_v4  ;;  %v12304_v61 = vpop.f32.mrb[151].mxu0  ;;  %v7298_v50 = vld [vmem:[%s12954_s3 + $0x210] sm:$0xff] }
 0x234   : > { %v8143_v52 = vmul.f32 %v7751_v33, %v7163_v8  ;;  %v6969_v9 = vmax.f32 %v5415_v53, 0.0  ;;  %v5417_v6 = vadd.f32 %v12108_v46, %v10619_v29  ;;  %v7752_v3 = vunpack.c.l.bf16 %v7394_v47  ;;  %v12306_v33 = vpop.f32.mrb[151].mxu1 }
 0x235   : > { %v8534_v12 = vadd.f32 %v8533_v51, %v8142_v49  ;;  %v8339_v21 = vadd.f32 %v8338_v36, %v7948_v22  ;;  %v6971_v15 = vmax.f32 %v5458_v17, 0.0  ;;  %v7559_v2 = vunpack.c.h.bf16 %v7297_v5 }
 0x236   : > { %v7950_v8 = vmul.f32 %v7558_v55, %v6970_v25  ;;  %v7949_v35 = vmul.f32 %v7557_v13, %v6969_v9  ;;  %v7164_v46 = vmax.f32 %v5417_v6, 0.0  ;;  %v5460_v24 = vadd.f32 %v12110_v41, %v10619_v29 }
 0x237   : > { %v8535_v53 = vadd.f32 %v8534_v12, %v8143_v52  ;;  %v7754_v4 = vunpack.c.l.bf16 %v7395_v48  ;;  %v5419_v49 = vadd.f32 %v12112_v38, %v10619_v29  ;;  %v7753_v5 = vunpack.c.h.bf16 %v7394_v47  ;;  %v7299_v52 = vld [vmem:[%s12954_s3 + $0x218] sm:$0xff]  ;;  %v12322_v12 = vpop.f32.mrb[152].mxu0 }
 0x238   : > { %v8340_v36 = vadd.f32 %v8339_v21, %v7949_v35  ;;  %v8144_v51 = vmul.f32 %v7752_v3, %v7164_v46  ;;  %v7166_v22 = vmax.f32 %v5460_v24, 0.0  ;;  %v5462_v55 = vadd.f32 %v12114_v0, %v10619_v29  ;;  %v12324_v3 = vpop.f32.mrb[152].mxu1  ;;  %v12331_v35 = vpop.f32.mrb[153].mxu0 }
 0x239   : > { %v7951_v13 = vmul.f32 %v7559_v2, %v6971_v15  ;;  %v7165_v25 = vmax.f32 %v5419_v49, 0.0  ;;  %v5499_v41 = vadd.f32 %v12130_v62, %v10535_v60  ;;  %v7560_v17 = vunpack.c.l.bf16 %v7298_v50  ;;  %v7396_v62 = vld [vmem:[%s12954_s3 + $0x520] sm:$0xff] }
 0x23a   : > { %v8341_v9 = vadd.f32 %v8340_v36, %v7950_v8  ;;  %v8536_v6 = vadd.f32 %v8535_v53, %v8144_v51  ;;  %v7167_v38 = vmax.f32 %v5462_v55, 0.0  ;;  %v7755_v47 = vunpack.c.h.bf16 %v7395_v48  ;;  %v12333_v8 = vpop.f32.mrb[153].mxu1 }
 0x23b   : > { %v8146_v21 = vmul.f32 %v7754_v4, %v7166_v22  ;;  %v8145_v0 = vmul.f32 %v7753_v5, %v7165_v25  ;;  %v6972_v15 = vmax.f32 %v5499_v41, 0.0  ;;  %v5542_v2 = vadd.f32 %v12132_v19, %v10535_v60  ;;  %v12337_v4 = vpop.f32.mrb[154].mxu0  ;;  %v12339_v49 = vpop.f32.mrb[154].mxu1  ;;  %v7397_v41 = vld [vmem:[%s12954_s3 + $0x528] sm:$0xff] }
 0x23c   : > { %v8342_v46 = vadd.f32 %v8341_v9, %v7951_v13  ;;  %v7562_v48 = vunpack.c.l.bf16 %v7299_v52  ;;  %v5501_v24 = vadd.f32 %v12139_v10, %v10535_v60  ;;  %v7561_v53 = vunpack.c.h.bf16 %v7298_v50  ;;  %v12343_v22 = vpop.f32.mrb[155].mxu0  ;;  %v12345_v55 = vpop.f32.mrb[155].mxu1 }
 0x23d   : > { %v8537_v5 = vadd.f32 %v8536_v6, %v8145_v0  ;;  %v7952_v19 = vmul.f32 %v7560_v17, %v6972_v15  ;;  %v6974_v36 = vmax.f32 %v5542_v2, 0.0  ;;  %v5544_v51 = vadd.f32 %v12141_v63, %v10535_v60  ;;  %13127 = vst [vmem:[#allocation9_spill] sm:$0xff] %v12343_v22  ;;  %13128 = vst [vmem:[#allocation10_spill] sm:$0xff] %v12345_v55 }
 0x23e   : > { %v8147_v13 = vmul.f32 %v7755_v47, %v7167_v38  ;;  %v6973_v25 = vmax.f32 %v5501_v24, 0.0  ;;  %v5503_v10 = vadd.f32 %v12145_v31, %v10619_v29  ;;  %v7756_v50 = vunpack.c.l.bf16 %v7396_v62  ;;  %v7300_v38 = vld [vmem:[%s12954_s3 + $0x220] sm:$0xff] }
 0x23f   : > { %v8538_v9 = vadd.f32 %v8537_v5, %v8146_v21  ;;  %v8343_v17 = vadd.f32 %v8342_v46, %v7952_v19  ;;  %v6975_v6 = vmax.f32 %v5544_v51, 0.0  ;;  %v7563_v0 = vunpack.c.h.bf16 %v7299_v52  ;;  %v13129_v52 = vld [vmem:[#allocation2_spill] sm:$0xff]  ;;  %v12363_v19 = vpop.f32.mrb[156].mxu1 }
 0x240   : > { %v7954_v15 = vmul.f32 %v7562_v48, %v6974_v36  ;;  %v7953_v63 = vmul.f32 %v7561_v53, %v6973_v25  ;;  %v7168_v2 = vmax.f32 %v5503_v10, 0.0  ;;  %v5546_v55 = vadd.f32 %v12147_v18, %v10619_v29  ;;  %v12361_v53 = vpop.f32.mrb[156].mxu0 }
 0x241   : > { %v8539_v31 = vadd.f32 %v8538_v9, %v8147_v13  ;;  %v7758_v47 = vunpack.c.l.bf16 %v7397_v41  ;;  %v5505_v24 = vadd.f32 %v12151_v26, %v10619_v29  ;;  %v7757_v22 = vunpack.c.h.bf16 %v7396_v62  ;;  %v7301_v26 = vld [vmem:[%s12954_s3 + $0x228] sm:$0xff]  ;;  %v12370_v62 = vpop.f32.mrb[157].mxu0 }
 0x242   : > { %v8344_v21 = vadd.f32 %v8343_v17, %v7953_v63  ;;  %v8148_v46 = vmul.f32 %v7756_v50, %v7168_v2  ;;  %v7170_v5 = vmax.f32 %v5546_v55, 0.0  ;;  %v5548_v48 = vadd.f32 %v13129_v52, %v10619_v29  ;;  %v12372_v55 = vpop.f32.mrb[157].mxu1  ;;  %v12374_v17 = vpop.f32.mrb[158].mxu0 }
 0x243   : > { %v7955_v18 = vmul.f32 %v7563_v0, %v6975_v6  ;;  %v7169_v36 = vmax.f32 %v5505_v24, 0.0  ;;  %v5585_v51 = vadd.f32 %v12169_v32, %v10535_v60  ;;  %v7564_v13 = vunpack.c.l.bf16 %v7300_v38  ;;  %v12376_v6 = vpop.f32.mrb[158].mxu1  ;;  %v7398_v24 = vld [vmem:[%s12954_s3 + $0x530] sm:$0xff]  ;;  %v12383_v52 = vpop.f32.mrb[159].mxu0 }
 0x244   : > { %v8345_v25 = vadd.f32 %v8344_v21, %v7954_v15  ;;  %v8540_v10 = vadd.f32 %v8539_v31, %v8148_v46  ;;  %v7171_v50 = vmax.f32 %v5548_v48, 0.0  ;;  %v7759_v9 = vunpack.c.h.bf16 %v7397_v41  ;;  %13130 = vst [vmem:[#allocation11_spill] sm:$0xff] %v12383_v52  ;;  %v12385_v15 = vpop.f32.mrb[159].mxu1 }
 0x245   : > { %v8150_v0 = vmul.f32 %v7758_v47, %v7170_v5  ;;  %v8149_v63 = vmul.f32 %v7757_v22, %v7169_v36  ;;  %v6976_v32 = vmax.f32 %v5585_v51, 0.0  ;;  %v5628_v2 = vadd.f32 %v12171_v7, %v10535_v60  ;;  %13131 = vst [vmem:[#allocation12_spill] sm:$0xff] %v12385_v15 }
 0x246   : > { %v8346_v31 = vadd.f32 %v8345_v25, %v7955_v18  ;;  %v7566_v41 = vunpack.c.l.bf16 %v7301_v26  ;;  %v5587_v21 = vadd.f32 %v12178_v44, %v10535_v60  ;;  %v7565_v46 = vunpack.c.h.bf16 %v7300_v38  ;;  %v7399_v18 = vld [vmem:[%s12954_s3 + $0x538] sm:$0xff] }
 0x247   : > { %v8541_v47 = vadd.f32 %v8540_v10, %v8149_v63  ;;  %v7956_v22 = vmul.f32 %v7564_v13, %v6976_v32  ;;  %v6978_v5 = vmax.f32 %v5628_v2, 0.0  ;;  %v5630_v7 = vadd.f32 %v12180_v1, %v10535_v60 }
 0x248   : > { %v8151_v48 = vmul.f32 %v7759_v9, %v7171_v50  ;;  %v6977_v36 = vmax.f32 %v5587_v21, 0.0  ;;  %v5589_v51 = vadd.f32 %v12182_v54, %v10619_v29  ;;  %v7760_v52 = vunpack.c.l.bf16 %v7398_v24  ;;  %v7302_v50 = vld [vmem:[%s12954_s3 + $0x230] sm:$0xff]  ;;  %v12401_v54 = vpop.f32.mrb[160].mxu0  ;;  %v12403_v9 = vpop.f32.mrb[160].mxu1 }
 0x249   : > { %v8542_v25 = vadd.f32 %v8541_v47, %v8150_v0  ;;  %v8347_v15 = vadd.f32 %v8346_v31, %v7956_v22  ;;  %v6979_v44 = vmax.f32 %v5630_v7, 0.0  ;;  %v7567_v38 = vunpack.c.h.bf16 %v7301_v26  ;;  %v12407_v31 = vpop.f32.mrb[161].mxu0  ;;  %v13132_v47 = vld [vmem:[#allocation3_spill] sm:$0xff] }
 0x24a   : > { %v7958_v10 = vmul.f32 %v7566_v41, %v6978_v5  ;;  %v7957_v13 = vmul.f32 %v7565_v46, %v6977_v36  ;;  %v7172_v63 = vmax.f32 %v5589_v51, 0.0  ;;  %v5632_v1 = vadd.f32 %v12184_v57, %v10619_v29  ;;  %v12409_v41 = vpop.f32.mrb[161].mxu1  ;;  %v12413_v5 = vpop.f32.mrb[162].mxu0  ;;  %v7303_v51 = vld [vmem:[%s12954_s3 + $0x238] sm:$0xff] }
 0x24b   : > { %v8543_v32 = vadd.f32 %v8542_v25, %v8151_v48  ;;  %v7762_v2 = vunpack.c.l.bf16 %v7399_v18  ;;  %v5591_v0 = vadd.f32 %v12191_v58, %v10619_v29  ;;  %v7761_v26 = vunpack.c.h.bf16 %v7398_v24  ;;  %13133 = vst [vmem:[#allocation13_spill] sm:$0xff] %v12413_v5  ;;  %v12415_v7 = vpop.f32.mrb[162].mxu1 }
 0x24c   : > { %v8348_v21 = vadd.f32 %v8347_v15, %v7957_v13  ;;  %v8152_v57 = vmul.f32 %v7760_v52, %v7172_v63  ;;  %v7174_v46 = vmax.f32 %v5632_v1, 0.0  ;;  %v5634_v22 = vadd.f32 %v13132_v47, %v10619_v29  ;;  %13134 = vst [vmem:[#allocation14_spill] sm:$0xff] %v12415_v7  ;;  %v12422_v15 = vpop.f32.mrb[163].mxu0  ;;  %v12424_v52 = vpop.f32.mrb[163].mxu1 }
 0x24d   : > { %v7959_v48 = vmul.f32 %v7567_v38, %v6979_v44  ;;  %v7173_v36 = vmax.f32 %v5591_v0, 0.0  ;;  %v5671_v58 = vadd.f32 %v12209_v16, %v10535_v60  ;;  %v7568_v24 = vunpack.c.l.bf16 %v7302_v50  ;;  %13135 = vst [vmem:[#allocation15_spill] sm:$0xff] %v12422_v15  ;;  %13136 = vst [vmem:[#allocation16_spill] sm:$0xff] %v12424_v52  ;;  %v7400_v16 = vld [vmem:[%s12954_s3 + $0x540] sm:$0xff] }
 0x24e   : > { %v8349_v25 = vadd.f32 %v8348_v21, %v7958_v10  ;;  %v8544_v13 = vadd.f32 %v8543_v32, %v8152_v57  ;;  %v7175_v63 = vmax.f32 %v5634_v22, 0.0  ;;  %v7763_v1 = vunpack.c.h.bf16 %v7399_v18  ;;  %v12440_v22 = vpop.f32.mrb[164].mxu0 }
 0x24f   : > { %v8154_v47 = vmul.f32 %v7762_v2, %v7174_v46  ;;  %v8153_v7 = vmul.f32 %v7761_v26, %v7173_v36  ;;  %v6980_v44 = vmax.f32 %v5671_v58, 0.0  ;;  %v5714_v38 = vadd.f32 %v12211_v34, %v10535_v60  ;;  %v7401_v46 = vld [vmem:[%s12954_s3 + $0x548] sm:$0xff]  ;;  %v12444_v58 = vpop.f32.mrb[165].mxu0 }
 0x250   : > { %v8350_v0 = vadd.f32 %v8349_v25, %v7959_v48  ;;  %v7570_v5 = vunpack.c.l.bf16 %v7303_v51  ;;  %v5673_v15 = vadd.f32 %v12215_v37, %v10535_v60  ;;  %v7569_v52 = vunpack.c.h.bf16 %v7302_v50  ;;  %v12442_v37 = vpop.f32.mrb[164].mxu1  ;;  %v13137_v25 = vld [vmem:[#allocation4_spill] sm:$0xff] }
 0x251   : > { %v8545_v10 = vadd.f32 %v8544_v13, %v8153_v7  ;;  %v7960_v32 = vmul.f32 %v7568_v24, %v6980_v44  ;;  %v6982_v21 = vmax.f32 %v5714_v38, 0.0  ;;  %v5716_v18 = vadd.f32 %v12217_v27, %v10535_v60  ;;  %v12446_v27 = vpop.f32.mrb[165].mxu1  ;;  %v13140_v38 = vld [vmem:[#allocation5_spill] sm:$0xff] }
 0x252   : > { %v8155_v2 = vmul.f32 %v7763_v1, %v7175_v63  ;;  %v6981_v26 = vmax.f32 %v5673_v15, 0.0  ;;  %v5675_v34 = vadd.f32 %v12221_v30, %v10619_v29  ;;  %v7764_v57 = vunpack.c.l.bf16 %v7400_v16  ;;  %v7304_v63 = vld [vmem:[%s12954_s3 + $0x240] sm:$0xff]  ;;  %v12453_v1 = vpop.f32.mrb[166].mxu0 }
 0x253   : > { %v8546_v50 = vadd.f32 %v8545_v10, %v8154_v47  ;;  %v8351_v7 = vadd.f32 %v8350_v0, %v7960_v32  ;;  %v6983_v48 = vmax.f32 %v5716_v18, 0.0  ;;  %v7571_v36 = vunpack.c.h.bf16 %v7303_v51  ;;  %13138 = vst [vmem:[#allocation2_spill] sm:$0xff] %v12453_v1  ;;  %v12455_v47 = vpop.f32.mrb[166].mxu1 }
 0x254   : > { %v7962_v24 = vmul.f32 %v7570_v5, %v6982_v21  ;;  %v7961_v15 = vmul.f32 %v7569_v52, %v6981_v26  ;;  %v7176_v30 = vmax.f32 %v5675_v34, 0.0  ;;  %v5718_v13 = vadd.f32 %v13137_v25, %v10619_v29  ;;  %13139 = vst [vmem:[#allocation3_spill] sm:$0xff] %v12455_v47  ;;  %v12459_v5 = vpop.f32.mrb[167].mxu0  ;;  %v12461_v52 = vpop.f32.mrb[167].mxu1  ;;  %v13143_v26 = vld [vmem:[#allocation6_spill] sm:$0xff] }
 0x255   : > { %v8547_v44 = vadd.f32 %v8546_v50, %v8155_v2  ;;  %v7766_v51 = vunpack.c.l.bf16 %v7401_v46  ;;  %v5677_v0 = vadd.f32 %v13140_v38, %v10619_v29  ;;  %v7765_v10 = vunpack.c.h.bf16 %v7400_v16  ;;  %13141 = vst [vmem:[#allocation4_spill] sm:$0xff] %v12459_v5  ;;  %13142 = vst [vmem:[#allocation5_spill] sm:$0xff] %v12461_v52  ;;  %v7305_v16 = vld [vmem:[%s12954_s3 + $0x248] sm:$0xff] }
 0x256   : > { %v8352_v32 = vadd.f32 %v8351_v7, %v7961_v15  ;;  %v8156_v21 = vmul.f32 %v7764_v57, %v7176_v30  ;;  %v7178_v18 = vmax.f32 %v5718_v13, 0.0  ;;  %v5720_v34 = vadd.f32 %v13143_v26, %v10619_v29  ;;  %v7403_v26 = vld [vmem:[%s12954_s3 + $0x558] sm:$0xff] }
 0x257   : > { %v7963_v25 = vmul.f32 %v7571_v36, %v6983_v48  ;;  %v7177_v1 = vmax.f32 %v5677_v0, 0.0  ;;  %v5757_v2 = vadd.f32 %v12248_v14, %v10535_v60  ;;  %v7572_v50 = vunpack.c.l.bf16 %v7304_v63  ;;  %v7402_v48 = vld [vmem:[%s12954_s3 + $0x550] sm:$0xff] }
 0x258   : > { %v8353_v38 = vadd.f32 %v8352_v32, %v7962_v24  ;;  %v8548_v5 = vadd.f32 %v8547_v44, %v8156_v21  ;;  %v7179_v47 = vmax.f32 %v5720_v34, 0.0  ;;  %v7767_v52 = vunpack.c.h.bf16 %v7401_v46  ;;  %v12477_v24 = vpop.f32.mrb[168].mxu0  ;;  %v12479_v44 = vpop.f32.mrb[168].mxu1 }
 0x259   : > { %v8158_v7 = vmul.f32 %v7766_v51, %v7178_v18  ;;  %v8157_v57 = vmul.f32 %v7765_v10, %v7177_v1  ;;  %v6984_v15 = vmax.f32 %v5757_v2, 0.0  ;;  %v5800_v30 = vadd.f32 %v12250_v43, %v10535_v60  ;;  %v12483_v10 = vpop.f32.mrb[169].mxu0  ;;  %v12485_v32 = vpop.f32.mrb[169].mxu1 }
 0x25a   : > { %v8354_v14 = vadd.f32 %v8353_v38, %v7963_v25  ;;  %v7574_v36 = vunpack.c.l.bf16 %v7305_v16  ;;  %v5759_v13 = vadd.f32 %v12252_v42, %v10535_v60  ;;  %v7573_v0 = vunpack.c.h.bf16 %v7304_v63  ;;  %v12494_v34 = vpop.f32.mrb[170].mxu1 }
 0x25b   : > { %v8549_v46 = vadd.f32 %v8548_v5, %v8157_v57  ;;  %v7964_v1 = vmul.f32 %v7572_v50, %v6984_v15  ;;  %v6986_v51 = vmax.f32 %v5800_v30, 0.0  ;;  %v5802_v43 = vadd.f32 %v12254_v11, %v10535_v60  ;;  %v12492_v5 = vpop.f32.mrb[170].mxu0  ;;  %13144 = vst [vmem:[#allocation6_spill] sm:$0xff] %v12494_v34  ;;  %v7306_v30 = vld [vmem:[%s12954_s3 + $0x250] sm:$0xff] }
 0x25c   : > { %v8159_v21 = vmul.f32 %v7767_v52, %v7179_v47  ;;  %v6985_v18 = vmax.f32 %v5759_v13, 0.0  ;;  %v5761_v42 = vadd.f32 %v12261_v20, %v10619_v29  ;;  %v7768_v63 = vunpack.c.l.bf16 %v7402_v48  ;;  %v12496_v38 = vpop.f32.mrb[171].mxu0  ;;  %v12498_v47 = vpop.f32.mrb[171].mxu1 }
 0x25d   : > { %v8550_v25 = vadd.f32 %v8549_v46, %v8158_v7  ;;  %v8355_v11 = vadd.f32 %v8354_v14, %v7964_v1  ;;  %v6987_v2 = vmax.f32 %v5802_v43, 0.0  ;;  %v7575_v50 = vunpack.c.h.bf16 %v7305_v16 }
 0x25e   : > { %v7966_v52 = vmul.f32 %v7574_v36, %v6986_v51  ;;  %v7965_v57 = vmul.f32 %v7573_v0, %v6985_v18  ;;  %v7180_v20 = vmax.f32 %v5761_v42, 0.0  ;;  %v5804_v15 = vadd.f32 %v12263_v39, %v10619_v29  ;;  %v13145_v36 = vld [vmem:[#allocation7_spill] sm:$0xff] }
 0x25f   : > { %v8551_v13 = vadd.f32 %v8550_v25, %v8159_v21  ;;  %v7770_v34 = vunpack.c.l.bf16 %v7403_v26  ;;  %v5763_v7 = vadd.f32 %v12267_v45, %v10619_v29  ;;  %v7769_v16 = vunpack.c.h.bf16 %v7402_v48  ;;  %v7307_v21 = vld [vmem:[%s12954_s3 + $0x258] sm:$0xff] }
 0x260   : > { %v8356_v14 = vadd.f32 %v8355_v11, %v7965_v57  ;;  %v8160_v46 = vmul.f32 %v7768_v63, %v7180_v20  ;;  %v7182_v1 = vmax.f32 %v5804_v15, 0.0  ;;  %v5806_v0 = vadd.f32 %v13145_v36, %v10619_v29  ;;  %v12514_v11 = vpop.f32.mrb[172].mxu0  ;;  %v12516_v63 = vpop.f32.mrb[172].mxu1 }
 0x261   : > { %v7967_v51 = vmul.f32 %v7575_v50, %v6987_v2  ;;  %v7181_v43 = vmax.f32 %v5763_v7, 0.0  ;;  %v5843_v39 = vadd.f32 %v12285_v23, %v10535_v60  ;;  %v7576_v18 = vunpack.c.l.bf16 %v7306_v30  ;;  %v7404_v23 = vld [vmem:[%s12954_s3 + $0x560] sm:$0xff]  ;;  %v12523_v15 = vpop.f32.mrb[173].mxu0 }
 0x262   : > { %v8357_v42 = vadd.f32 %v8356_v14, %v7966_v52  ;;  %v8552_v25 = vadd.f32 %v8551_v13, %v8160_v46  ;;  %v7183_v45 = vmax.f32 %v5806_v0, 0.0  ;;  %v7771_v48 = vunpack.c.h.bf16 %v7403_v26  ;;  %v12525_v52 = vpop.f32.mrb[173].mxu1 }
 0x263   : > { %v8162_v57 = vmul.f32 %v7770_v34, %v7182_v1  ;;  %v8161_v20 = vmul.f32 %v7769_v16, %v7181_v43  ;;  %v6988_v2 = vmax.f32 %v5843_v39, 0.0  ;;  %v5886_v50 = vadd.f32 %v12287_v59, %v10535_v60  ;;  %v12529_v34 = vpop.f32.mrb[174].mxu0  ;;  %v12531_v16 = vpop.f32.mrb[174].mxu1 }
 0x264   : > { %v8358_v13 = vadd.f32 %v8357_v42, %v7967_v51  ;;  %v7578_v26 = vunpack.c.l.bf16 %v7307_v21  ;;  %v5845_v7 = vadd.f32 %v12291_v40, %v10535_v60  ;;  %v7577_v14 = vunpack.c.h.bf16 %v7306_v30  ;;  %13146 = vst [vmem:[#allocation7_spill] sm:$0xff] %v12529_v34  ;;  %13147 = vst [vmem:[#allocation17_spill] sm:$0xff] %v12531_v16  ;;  %v12535_v0 = vpop.f32.mrb[175].mxu0  ;;  %v12537_v43 = vpop.f32.mrb[175].mxu1  ;;  %v7405_v42 = vld [vmem:[%s12954_s3 + $0x568] sm:$0xff] }
 0x265   : > { %v8553_v46 = vadd.f32 %v8552_v25, %v8161_v20  ;;  %v7968_v59 = vmul.f32 %v7576_v18, %v6988_v2  ;;  %v6990_v1 = vmax.f32 %v5886_v50, 0.0  ;;  %v5888_v36 = vadd.f32 %v12293_v56, %v10535_v60  ;;  %13148 = vst [vmem:[#allocation18_spill] sm:$0xff] %v12535_v0  ;;  %13149 = vst [vmem:[#allocation19_spill] sm:$0xff] %v12537_v43  ;;  %v13150_v0 = vld [vmem:[#allocation8_spill] sm:$0xff] }
 0x266   : > { %v8163_v51 = vmul.f32 %v7771_v48, %v7183_v45  ;;  %v6989_v39 = vmax.f32 %v5845_v7, 0.0  ;;  %v5847_v40 = vadd.f32 %v12300_v28, %v10619_v29  ;;  %v7772_v30 = vunpack.c.l.bf16 %v7404_v23  ;;  %v7308_v45 = vld [vmem:[%s12954_s3 + $0x260] sm:$0xff] }
 0x267   : > { %v8554_v25 = vadd.f32 %v8553_v46, %v8162_v57  ;;  %v8359_v18 = vadd.f32 %v8358_v13, %v7968_v59  ;;  %v6991_v20 = vmax.f32 %v5888_v36, 0.0  ;;  %v7579_v2 = vunpack.c.h.bf16 %v7307_v21 }
 0x268   : > { %v7970_v50 = vmul.f32 %v7578_v26, %v6990_v1  ;;  %v7969_v56 = vmul.f32 %v7577_v14, %v6989_v39  ;;  %v7184_v16 = vmax.f32 %v5847_v40, 0.0  ;;  %v5890_v43 = vadd.f32 %v13150_v0, %v10619_v29  ;;  %v12553_v26 = vpop.f32.mrb[176].mxu0  ;;  %v12555_v14 = vpop.f32.mrb[176].mxu1 }
 0x269   : > { %v8555_v28 = vadd.f32 %v8554_v25, %v8163_v51  ;;  %v7774_v48 = vunpack.c.l.bf16 %v7405_v42  ;;  %v5849_v7 = vadd.f32 %v12304_v61, %v10619_v29  ;;  %v7773_v34 = vunpack.c.h.bf16 %v7404_v23  ;;  %v7309_v61 = vld [vmem:[%s12954_s3 + $0x268] sm:$0xff]  ;;  %v12562_v23 = vpop.f32.mrb[177].mxu0 }
 0x26a   : > { %v8360_v57 = vadd.f32 %v8359_v18, %v7969_v56  ;;  %v8164_v13 = vmul.f32 %v7772_v30, %v7184_v16  ;;  %v7186_v46 = vmax.f32 %v5890_v43, 0.0  ;;  %v5892_v21 = vadd.f32 %v12306_v33, %v10619_v29  ;;  %v12564_v16 = vpop.f32.mrb[177].mxu1  ;;  %v12566_v40 = vpop.f32.mrb[178].mxu0 }
 0x26b   : > { %v7971_v59 = vmul.f32 %v7579_v2, %v6991_v20  ;;  %v7185_v1 = vmax.f32 %v5849_v7, 0.0  ;;  %v5929_v36 = vadd.f32 %v12322_v12, %v10535_v60  ;;  %v7580_v0 = vunpack.c.l.bf16 %v7308_v45  ;;  %v12568_v30 = vpop.f32.mrb[178].mxu1  ;;  %v7406_v2 = vld [vmem:[%s12954_s3 + $0x570] sm:$0xff]  ;;  %v12575_v56 = vpop.f32.mrb[179].mxu0 }
 0x26c   : > { %v8361_v43 = vadd.f32 %v8360_v57, %v7970_v50  ;;  %v8556_v33 = vadd.f32 %v8555_v28, %v8164_v13  ;;  %v7187_v51 = vmax.f32 %v5892_v21, 0.0  ;;  %v7775_v39 = vunpack.c.h.bf16 %v7405_v42  ;;  %v12577_v50 = vpop.f32.mrb[179].mxu1 }
 0x26d   : > { %v8166_v25 = vmul.f32 %v7774_v48, %v7186_v46  ;;  %v8165_v18 = vmul.f32 %v7773_v34, %v7185_v1  ;;  %v6992_v12 = vmax.f32 %v5929_v36, 0.0  ;;  %v5972_v20 = vadd.f32 %v12324_v3, %v10535_v60  ;;  %13151 = vst [vmem:[#allocation8_spill] sm:$0xff] %v12577_v50 }
 0x26e   : > { %v8362_v28 = vadd.f32 %v8361_v43, %v7971_v59  ;;  %v7582_v42 = vunpack.c.l.bf16 %v7309_v61  ;;  %v5931_v7 = vadd.f32 %v12331_v35, %v10535_v60  ;;  %v7581_v57 = vunpack.c.h.bf16 %v7308_v45  ;;  %v7407_v59 = vld [vmem:[%s12954_s3 + $0x578] sm:$0xff] }
 0x26f   : > { %v8557_v48 = vadd.f32 %v8556_v33, %v8165_v18  ;;  %v7972_v34 = vmul.f32 %v7580_v0, %v6992_v12  ;;  %v6994_v13 = vmax.f32 %v5972_v20, 0.0  ;;  %v5974_v3 = vadd.f32 %v12333_v8, %v10535_v60 }
 0x270   : > { %v8167_v46 = vmul.f32 %v7775_v39, %v7187_v51  ;;  %v6993_v21 = vmax.f32 %v5931_v7, 0.0  ;;  %v5933_v1 = vadd.f32 %v12337_v4, %v10619_v29  ;;  %v7776_v36 = vunpack.c.l.bf16 %v7406_v2  ;;  %v7310_v51 = vld [vmem:[%s12954_s3 + $0x270] sm:$0xff]  ;;  %v12593_v4 = vpop.f32.mrb[180].mxu0  ;;  %v12595_v39 = vpop.f32.mrb[180].mxu1 }
 0x271   : > { %v8558_v43 = vadd.f32 %v8557_v48, %v8166_v25  ;;  %v8363_v50 = vadd.f32 %v8362_v28, %v7972_v34  ;;  %v6995_v35 = vmax.f32 %v5974_v3, 0.0  ;;  %v7583_v45 = vunpack.c.h.bf16 %v7309_v61  ;;  %v13152_v25 = vld [vmem:[#allocation9_spill] sm:$0xff]  ;;  %v12601_v7 = vpop.f32.mrb[181].mxu1  ;;  %v13154_v34 = vld [vmem:[#allocation10_spill] sm:$0xff] }
 0x272   : > { %v7974_v33 = vmul.f32 %v7582_v42, %v6994_v13  ;;  %v7973_v0 = vmul.f32 %v7581_v57, %v6993_v21  ;;  %v7188_v18 = vmax.f32 %v5933_v1, 0.0  ;;  %v5976_v8 = vadd.f32 %v12339_v49, %v10619_v29  ;;  %v12599_v42 = vpop.f32.mrb[181].mxu0  ;;  %13153 = vst [vmem:[#allocation9_spill] sm:$0xff] %v12601_v7  ;;  %v12607_v21 = vpop.f32.mrb[182].mxu1 }
 0x273   : > { %v8559_v12 = vadd.f32 %v8558_v43, %v8167_v46  ;;  %v7778_v20 = vunpack.c.l.bf16 %v7407_v59  ;;  %v5935_v28 = vadd.f32 %v13152_v25, %v10619_v29  ;;  %v7777_v61 = vunpack.c.h.bf16 %v7406_v2  ;;  %v12605_v3 = vpop.f32.mrb[182].mxu0  ;;  %13156 = vst [vmem:[#allocation20_spill] sm:$0xff] %v12607_v21  ;;  %v7311_v25 = vld [vmem:[%s12954_s3 + $0x278] sm:$0xff] }
 0x274   : > { %v8364_v57 = vadd.f32 %v8363_v50, %v7973_v0  ;;  %v8168_v49 = vmul.f32 %v7776_v36, %v7188_v18  ;;  %v7190_v48 = vmax.f32 %v5976_v8, 0.0  ;;  %v5978_v13 = vadd.f32 %v13154_v34, %v10619_v29  ;;  %13155 = vst [vmem:[#allocation10_spill] sm:$0xff] %v12605_v3  ;;  %v12614_v50 = vpop.f32.mrb[183].mxu0  ;;  %v12616_v36 = vpop.f32.mrb[183].mxu1 }
 0x275   : > { %v7975_v46 = vmul.f32 %v7583_v45, %v6995_v35  ;;  %v7189_v1 = vmax.f32 %v5935_v28, 0.0  ;;  %v6015_v43 = vadd.f32 %v12361_v53, %v10535_v60  ;;  %v7584_v2 = vunpack.c.l.bf16 %v7310_v51  ;;  %13157 = vst [vmem:[#allocation21_spill] sm:$0xff] %v12614_v50  ;;  %13158 = vst [vmem:[#allocation22_spill] sm:$0xff] %v12616_v36  ;;  %v7408_v53 = vld [vmem:[%s12954_s3 + $0x580] sm:$0xff] }
 0x276   : > { %v8365_v0 = vadd.f32 %v8364_v57, %v7974_v33  ;;  %v8560_v18 = vadd.f32 %v8559_v12, %v8168_v49  ;;  %v7191_v8 = vmax.f32 %v5978_v13, 0.0  ;;  %v7779_v34 = vunpack.c.h.bf16 %v7407_v59  ;;  %v12632_v13 = vpop.f32.mrb[184].mxu0 }
 0x277   : > { %v8170_v3 = vmul.f32 %v7778_v20, %v7190_v48  ;;  %v8169_v21 = vmul.f32 %v7777_v61, %v7189_v1  ;;  %v6996_v35 = vmax.f32 %v6015_v43, 0.0  ;;  %v6058_v45 = vadd.f32 %v12363_v19, %v10535_v60  ;;  %v7409_v48 = vld [vmem:[%s12954_s3 + $0x588] sm:$0xff]  ;;  %v12636_v43 = vpop.f32.mrb[185].mxu0 }
 0x278   : > { %v8366_v28 = vadd.f32 %v8365_v0, %v7975_v46  ;;  %v7586_v7 = vunpack.c.l.bf16 %v7311_v25  ;;  %v6017_v50 = vadd.f32 %v12370_v62, %v10535_v60  ;;  %v7585_v36 = vunpack.c.h.bf16 %v7310_v51  ;;  %v12634_v62 = vpop.f32.mrb[184].mxu1 }
 0x279   : > { %v8561_v33 = vadd.f32 %v8560_v18, %v8169_v21  ;;  %v7976_v12 = vmul.f32 %v7584_v2, %v6996_v35  ;;  %v6998_v57 = vmax.f32 %v6058_v45, 0.0  ;;  %v6060_v59 = vadd.f32 %v12372_v55, %v10535_v60  ;;  %v12638_v55 = vpop.f32.mrb[185].mxu1  ;;  %v7312_v18 = vld [vmem:[%s12954_s3 + $0x280] sm:$0xff]  ;;  %v13160_v35 = vld [vmem:[#allocation11_spill] sm:$0xff] }
 0x27a   : > { %v8171_v20 = vmul.f32 %v7779_v34, %v7191_v8  ;;  %v6997_v61 = vmax.f32 %v6017_v50, 0.0  ;;  %v6019_v19 = vadd.f32 %v12374_v17, %v10619_v29  ;;  %v7780_v49 = vunpack.c.l.bf16 %v7408_v53  ;;  %v12645_v8 = vpop.f32.mrb[186].mxu0 }
 0x27b   : > { %v8562_v51 = vadd.f32 %v8561_v33, %v8170_v3  ;;  %v8367_v21 = vadd.f32 %v8366_v28, %v7976_v12  ;;  %v6999_v46 = vmax.f32 %v6060_v59, 0.0  ;;  %v7587_v1 = vunpack.c.h.bf16 %v7311_v25  ;;  %v12647_v3 = vpop.f32.mrb[186].mxu1 }
 0x27c   : > { %v7978_v2 = vmul.f32 %v7586_v7, %v6998_v57  ;;  %v7977_v50 = vmul.f32 %v7585_v36, %v6997_v61  ;;  %v7192_v17 = vmax.f32 %v6019_v19, 0.0  ;;  %v6062_v0 = vadd.f32 %v12376_v6, %v10619_v29  ;;  %13159 = vst [vmem:[#allocation23_spill] sm:$0xff] %v12647_v3  ;;  %v12651_v7 = vpop.f32.mrb[187].mxu0  ;;  %v12653_v36 = vpop.f32.mrb[187].mxu1  ;;  %v13163_v57 = vld [vmem:[#allocation12_spill] sm:$0xff] }
 0x27d   : > { %v8563_v34 = vadd.f32 %v8562_v51, %v8171_v20  ;;  %v7782_v25 = vunpack.c.l.bf16 %v7409_v48  ;;  %v6021_v45 = vadd.f32 %v13160_v35, %v10619_v29  ;;  %v7781_v28 = vunpack.c.h.bf16 %v7408_v53  ;;  %13161 = vst [vmem:[#allocation11_spill] sm:$0xff] %v12651_v7  ;;  %13162 = vst [vmem:[#allocation24_spill] sm:$0xff] %v12653_v36  ;;  %v7313_v53 = vld [vmem:[%s12954_s3 + $0x288] sm:$0xff] }
 0x27e   : > { %v8368_v33 = vadd.f32 %v8367_v21, %v7977_v50  ;;  %v8172_v6 = vmul.f32 %v7780_v49, %v7192_v17  ;;  %v7194_v12 = vmax.f32 %v6062_v0, 0.0  ;;  %v6064_v59 = vadd.f32 %v13163_v57, %v10619_v29 }
 0x27f   : > { %v7979_v61 = vmul.f32 %v7587_v1, %v6999_v46  ;;  %v7193_v19 = vmax.f32 %v6021_v45, 0.0  ;;  %v6101_v20 = vadd.f32 %v12401_v54, %v10535_v60  ;;  %v7588_v51 = vunpack.c.l.bf16 %v7312_v18  ;;  %v7410_v46 = vld [vmem:[%s12954_s3 + $0x590] sm:$0xff] }
 0x280   : > { %v8369_v35 = vadd.f32 %v8368_v33, %v7978_v2  ;;  %v8564_v7 = vadd.f32 %v8563_v34, %v8172_v6  ;;  %v7195_v3 = vmax.f32 %v6064_v59, 0.0  ;;  %v7783_v36 = vunpack.c.h.bf16 %v7409_v48  ;;  %v12669_v2 = vpop.f32.mrb[188].mxu0  ;;  %v12671_v34 = vpop.f32.mrb[188].mxu1  ;;  %v13165_v59 = vld [vmem:[#allocation13_spill] sm:$0xff] }
 0x281   : > { %v8174_v21 = vmul.f32 %v7782_v25, %v7194_v12  ;;  %v8173_v49 = vmul.f32 %v7781_v28, %v7193_v19  ;;  %v7000_v50 = vmax.f32 %v6101_v20, 0.0  ;;  %v6144_v17 = vadd.f32 %v12403_v9, %v10535_v60  ;;  %v12675_v33 = vpop.f32.mrb[189].mxu0  ;;  %v12677_v6 = vpop.f32.mrb[189].mxu1 }
 0x282   : > { %v8370_v54 = vadd.f32 %v8369_v35, %v7979_v61  ;;  %v7590_v1 = vunpack.c.l.bf16 %v7313_v53  ;;  %v6103_v0 = vadd.f32 %v12407_v31, %v10535_v60  ;;  %v7589_v45 = vunpack.c.h.bf16 %v7312_v18  ;;  %13164 = vst [vmem:[#allocation12_spill] sm:$0xff] %v12677_v6  ;;  %v7411_v61 = vld [vmem:[%s12954_s3 + $0x598] sm:$0xff]  ;;  %v12686_v19 = vpop.f32.mrb[190].mxu1 }
 0x283   : > { %v8565_v48 = vadd.f32 %v8564_v7, %v8173_v49  ;;  %v7980_v25 = vmul.f32 %v7588_v51, %v7000_v50  ;;  %v7002_v28 = vmax.f32 %v6144_v17, 0.0  ;;  %v6146_v9 = vadd.f32 %v12409_v41, %v10535_v60  ;;  %v12684_v7 = vpop.f32.mrb[190].mxu0  ;;  %13167 = vst [vmem:[#allocation25_spill] sm:$0xff] %v12686_v19 }
 0x284   : > { %v8175_v12 = vmul.f32 %v7783_v36, %v7195_v3  ;;  %v7001_v57 = vmax.f32 %v6103_v0, 0.0  ;;  %v6105_v31 = vadd.f32 %v13165_v59, %v10619_v29  ;;  %v7784_v18 = vunpack.c.l.bf16 %v7410_v46  ;;  %13166 = vst [vmem:[#allocation13_spill] sm:$0xff] %v12684_v7  ;;  %v12688_v49 = vpop.f32.mrb[191].mxu0  ;;  %v12690_v3 = vpop.f32.mrb[191].mxu1  ;;  %v13169_v0 = vld [vmem:[#allocation14_spill] sm:$0xff]  ;;  %v7314_v7 = vld [vmem:[%s12954_s3 + $0x290] sm:$0xff] }
 0x285   : > { %v8566_v20 = vadd.f32 %v8565_v48, %v8174_v21  ;;  %v8371_v41 = vadd.f32 %v8370_v54, %v7980_v25  ;;  %v7003_v51 = vmax.f32 %v6146_v9, 0.0  ;;  %v7591_v35 = vunpack.c.h.bf16 %v7313_v53  ;;  %13168 = vst [vmem:[#allocation26_spill] sm:$0xff] %v12690_v3  ;;  %v13170_v21 = vld [vmem:[#allocation15_spill] sm:$0xff] }
 0x286   : > { %v7982_v36 = vmul.f32 %v7590_v1, %v7002_v28  ;;  %v7981_v50 = vmul.f32 %v7589_v45, %v7001_v57  ;;  %v7196_v17 = vmax.f32 %v6105_v31, 0.0  ;;  %v6148_v59 = vadd.f32 %v13169_v0, %v10619_v29  ;;  %v13171_v1 = vld [vmem:[#allocation16_spill] sm:$0xff] }
 0x287   : > { %v8567_v6 = vadd.f32 %v8566_v20, %v8175_v12  ;;  %v7786_v19 = vunpack.c.l.bf16 %v7411_v61  ;;  %v6107_v54 = vadd.f32 %v13170_v21, %v10619_v29  ;;  %v7785_v53 = vunpack.c.h.bf16 %v7410_v46  ;;  %v7315_v12 = vld [vmem:[%s12954_s3 + $0x298] sm:$0xff] }
 0x288   : > { %v8372_v48 = vadd.f32 %v8371_v41, %v7981_v50  ;;  %v8176_v25 = vmul.f32 %v7784_v18, %v7196_v17  ;;  %v7198_v9 = vmax.f32 %v6148_v59, 0.0  ;;  %v6150_v45 = vadd.f32 %v13171_v1, %v10619_v29  ;;  %v12706_v41 = vpop.f32.mrb[192].mxu0  ;;  %v12708_v18 = vpop.f32.mrb[192].mxu1 }
 0x289   : > { %v7983_v28 = vmul.f32 %v7591_v35, %v7003_v51  ;;  %v7197_v57 = vmax.f32 %v6107_v54, 0.0  ;;  %v6187_v31 = vadd.f32 %v12440_v22, %v10535_v60  ;;  %v7592_v0 = vunpack.c.l.bf16 %v7314_v7  ;;  %v7412_v22 = vld [vmem:[%s12954_s3 + $0x5a0] sm:$0xff]  ;;  %v12715_v59 = vpop.f32.mrb[193].mxu0 }
 0x28a   : > { %v8373_v20 = vadd.f32 %v8372_v48, %v7982_v36  ;;  %v8568_v3 = vadd.f32 %v8567_v6, %v8176_v25  ;;  %v7199_v21 = vmax.f32 %v6150_v45, 0.0  ;;  %v7787_v46 = vunpack.c.h.bf16 %v7411_v61  ;;  %13172 = vst [vmem:[#allocation14_spill] sm:$0xff] %v12715_v59  ;;  %v12717_v36 = vpop.f32.mrb[193].mxu1 }
 0x28b   : > { %v8178_v50 = vmul.f32 %v7786_v19, %v7198_v9  ;;  %v8177_v17 = vmul.f32 %v7785_v53, %v7197_v57  ;;  %v7004_v51 = vmax.f32 %v6187_v31, 0.0  ;;  %v6230_v35 = vadd.f32 %v12442_v37, %v10535_v60  ;;  %13173 = vst [vmem:[#allocation15_spill] sm:$0xff] %v12717_v36  ;;  %v12721_v19 = vpop.f32.mrb[194].mxu0  ;;  %v12723_v53 = vpop.f32.mrb[194].mxu1 }
 0x28c   : > { %v8374_v6 = vadd.f32 %v8373_v20, %v7983_v28  ;;  %v7594_v61 = vunpack.c.l.bf16 %v7315_v12  ;;  %v6189_v54 = vadd.f32 %v12444_v58, %v10535_v60  ;;  %v7593_v48 = vunpack.c.h.bf16 %v7314_v7  ;;  %13174 = vst [vmem:[#allocation16_spill] sm:$0xff] %v12721_v19  ;;  %13175 = vst [vmem:[#allocation27_spill] sm:$0xff] %v12723_v53  ;;  %v12727_v45 = vpop.f32.mrb[195].mxu0  ;;  %v12729_v57 = vpop.f32.mrb[195].mxu1  ;;  %v13178_v20 = vld [vmem:[#allocation2_spill] sm:$0xff]  ;;  %v7413_v53 = vld [vmem:[%s12954_s3 + $0x5a8] sm:$0xff] }
 0x28d   : > { %v8569_v25 = vadd.f32 %v8568_v3, %v8177_v17  ;;  %v7984_v37 = vmul.f32 %v7592_v0, %v7004_v51  ;;  %v7006_v9 = vmax.f32 %v6230_v35, 0.0  ;;  %v6232_v1 = vadd.f32 %v12446_v27, %v10535_v60  ;;  %13176 = vst [vmem:[#allocation28_spill] sm:$0xff] %v12727_v45  ;;  %13177 = vst [vmem:[#allocation29_spill] sm:$0xff] %v12729_v57  ;;  %v13179_v45 = vld [vmem:[#allocation3_spill] sm:$0xff] }
 0x28e   : > { %v8179_v28 = vmul.f32 %v7787_v46, %v7199_v21  ;;  %v7005_v31 = vmax.f32 %v6189_v54, 0.0  ;;  %v6191_v58 = vadd.f32 %v13178_v20, %v10619_v29  ;;  %v7788_v7 = vunpack.c.l.bf16 %v7412_v22  ;;  %v7316_v21 = vld [vmem:[%s12954_s3 + $0x2a0] sm:$0xff]  ;;  %v13180_v20 = vld [vmem:[#allocation4_spill] sm:$0xff] }
 0x28f   : > { %v8570_v3 = vadd.f32 %v8569_v25, %v8178_v50  ;;  %v8375_v0 = vadd.f32 %v8374_v6, %v7984_v37  ;;  %v7007_v17 = vmax.f32 %v6232_v1, 0.0  ;;  %v7595_v51 = vunpack.c.h.bf16 %v7315_v12  ;;  %v13181_v12 = vld [vmem:[#allocation5_spill] sm:$0xff] }
 0x290   : > { %v7986_v35 = vmul.f32 %v7594_v61, %v7006_v9  ;;  %v7985_v27 = vmul.f32 %v7593_v48, %v7005_v31  ;;  %v7200_v19 = vmax.f32 %v6191_v58, 0.0  ;;  %v6234_v57 = vadd.f32 %v13179_v45, %v10619_v29  ;;  %v7317_v45 = vld [vmem:[%s12954_s3 + $0x2a8] sm:$0xff] }
 0x291   : > { %v8571_v46 = vadd.f32 %v8570_v3, %v8179_v28  ;;  %v7790_v54 = vunpack.c.l.bf16 %v7413_v53  ;;  %v6193_v36 = vadd.f32 %v13180_v20, %v10619_v29  ;;  %v7789_v59 = vunpack.c.h.bf16 %v7412_v22 }
 0x292   : > { %v8376_v50 = vadd.f32 %v8375_v0, %v7985_v27  ;;  %v8180_v6 = vmul.f32 %v7788_v7, %v7200_v19  ;;  %v7202_v25 = vmax.f32 %v6234_v57, 0.0  ;;  %v6236_v61 = vadd.f32 %v13181_v12, %v10619_v29 }
 0x293   : > { %v7987_v48 = vmul.f32 %v7595_v51, %v7007_v17  ;;  %v7201_v37 = vmax.f32 %v6193_v36, 0.0  ;;  %v6273_v9 = vadd.f32 %v12477_v24, %v10535_v60  ;;  %v7596_v1 = vunpack.c.l.bf16 %v7316_v21  ;;  %v7414_v36 = vld [vmem:[%s12954_s3 + $0x5b0] sm:$0xff] }
 0x294   : > { %v8377_v28 = vadd.f32 %v8376_v50, %v7986_v35  ;;  %v8572_v31 = vadd.f32 %v8571_v46, %v8180_v6  ;;  %v7203_v58 = vmax.f32 %v6236_v61, 0.0  ;;  %v7791_v22 = vunpack.c.h.bf16 %v7413_v53  ;;  %v7415_v50 = vld [vmem:[%s12954_s3 + $0x5b8] sm:$0xff] }
 0x295   : > { %v8182_v3 = vmul.f32 %v7790_v54, %v7202_v25  ;;  %v8181_v19 = vmul.f32 %v7789_v59, %v7201_v37  ;;  %v7008_v57 = vmax.f32 %v6273_v9, 0.0  ;;  %v6316_v7 = vadd.f32 %v12479_v44, %v10535_v60  ;;  %v13182_v37 = vld [vmem:[#allocation6_spill] sm:$0xff]  ;;  %v7318_v9 = vld [vmem:[%s12954_s3 + $0x2b0] sm:$0xff] }
 0x296   : > { %v8378_v24 = vadd.f32 %v8377_v28, %v7987_v48  ;;  %v7598_v0 = vunpack.c.l.bf16 %v7317_v45  ;;  %v6275_v17 = vadd.f32 %v12483_v10, %v10535_v60  ;;  %v7597_v51 = vunpack.c.h.bf16 %v7316_v21 }
 0x297   : > { %v8573_v35 = vadd.f32 %v8572_v31, %v8181_v19  ;;  %v7988_v27 = vmul.f32 %v7596_v1, %v7008_v57  ;;  %v7010_v46 = vmax.f32 %v6316_v7, 0.0  ;;  %v6318_v59 = vadd.f32 %v12485_v32, %v10535_v60 }
 0x298   : > { %v8183_v53 = vmul.f32 %v7791_v22, %v7203_v58  ;;  %v7009_v54 = vmax.f32 %v6275_v17, 0.0  ;;  %v6277_v44 = vadd.f32 %v12492_v5, %v10619_v29  ;;  %v7792_v20 = vunpack.c.l.bf16 %v7414_v36 }
 0x299   : > { %v8574_v6 = vadd.f32 %v8573_v35, %v8182_v3  ;;  %v8379_v25 = vadd.f32 %v8378_v24, %v7988_v27  ;;  %v7011_v10 = vmax.f32 %v6318_v59, 0.0  ;;  %v7599_v21 = vunpack.c.h.bf16 %v7317_v45  ;;  %v7416_v59 = vld [vmem:[%s12954_s3 + $0x5c0] sm:$0xff] }
 0x29a   : > { %v7990_v12 = vmul.f32 %v7598_v0, %v7010_v46  ;;  %v7989_v61 = vmul.f32 %v7597_v51, %v7009_v54  ;;  %v7204_v48 = vmax.f32 %v6277_v44, 0.0  ;;  %v6320_v32 = vadd.f32 %v13182_v37, %v10619_v29  ;;  %v7319_v0 = vld [vmem:[%s12954_s3 + $0x2b8] sm:$0xff] }
 0x29b   : > { %v8575_v5 = vadd.f32 %v8574_v6, %v8183_v53  ;;  %v7794_v1 = vunpack.c.l.bf16 %v7415_v50  ;;  %v6279_v28 = vadd.f32 %v12496_v38, %v10619_v29  ;;  %v7793_v31 = vunpack.c.h.bf16 %v7414_v36 }
 0x29c   : > { %v8380_v58 = vadd.f32 %v8379_v25, %v7989_v61  ;;  %v8184_v22 = vmul.f32 %v7792_v20, %v7204_v48  ;;  %v7206_v3 = vmax.f32 %v6320_v32, 0.0  ;;  %v6322_v45 = vadd.f32 %v12498_v47, %v10619_v29  ;;  %v7417_v48 = vld [vmem:[%s12954_s3 + $0x5c8] sm:$0xff] }
 0x29d   : > { %v7991_v19 = vmul.f32 %v7599_v21, %v7011_v10  ;;  %v7205_v57 = vmax.f32 %v6279_v28, 0.0  ;;  %v6359_v7 = vadd.f32 %v12514_v11, %v10535_v60  ;;  %v7600_v24 = vunpack.c.l.bf16 %v7318_v9 }
 0x29e   : > { %v8381_v17 = vadd.f32 %v8380_v58, %v7990_v12  ;;  %v8576_v51 = vadd.f32 %v8575_v5, %v8184_v22  ;;  %v7207_v38 = vmax.f32 %v6322_v45, 0.0  ;;  %v7795_v36 = vunpack.c.h.bf16 %v7415_v50  ;;  %v7320_v58 = vld [vmem:[%s12954_s3 + $0x2c0] sm:$0xff] }
 0x29f   : > { %v8186_v35 = vmul.f32 %v7794_v1, %v7206_v3  ;;  %v8185_v27 = vmul.f32 %v7793_v31, %v7205_v57  ;;  %v7012_v46 = vmax.f32 %v6359_v7, 0.0  ;;  %v6402_v47 = vadd.f32 %v12516_v63, %v10535_v60  ;;  %v13183_v63 = vld [vmem:[#allocation7_spill] sm:$0xff]  ;;  %v13184_v31 = vld [vmem:[#allocation17_spill] sm:$0xff]  ;;  %v13185_v45 = vld [vmem:[#allocation18_spill] sm:$0xff] }
 0x2a0   : > { %v8382_v11 = vadd.f32 %v8381_v17, %v7991_v19  ;;  %v7602_v53 = vunpack.c.l.bf16 %v7319_v0  ;;  %v6361_v54 = vadd.f32 %v12523_v15, %v10535_v60  ;;  %v7601_v44 = vunpack.c.h.bf16 %v7318_v9 }
 0x2a1   : > { %v8577_v20 = vadd.f32 %v8576_v51, %v8185_v27  ;;  %v7992_v6 = vmul.f32 %v7600_v24, %v7012_v46  ;;  %v7014_v25 = vmax.f32 %v6402_v47, 0.0  ;;  %v6404_v50 = vadd.f32 %v12525_v52, %v10535_v60  ;;  %v7321_v46 = vld [vmem:[%s12954_s3 + $0x2c8] sm:$0xff] }
 0x2a2   : > { %v8187_v10 = vmul.f32 %v7795_v36, %v7207_v38  ;;  %v7013_v21 = vmax.f32 %v6361_v54, 0.0  ;;  %v6363_v12 = vadd.f32 %v13183_v63, %v10619_v29  ;;  %v7796_v61 = vunpack.c.l.bf16 %v7416_v59 }
 0x2a3   : > { %v8578_v37 = vadd.f32 %v8577_v20, %v8186_v35  ;;  %v8383_v32 = vadd.f32 %v8382_v11, %v7992_v6  ;;  %v7015_v15 = vmax.f32 %v6404_v50, 0.0  ;;  %v7603_v9 = vunpack.c.h.bf16 %v7319_v0  ;;  %v13186_v0 = vld [vmem:[#allocation19_spill] sm:$0xff] }
 0x2a4   : > { %v7994_v5 = vmul.f32 %v7602_v53, %v7014_v25  ;;  %v7993_v1 = vmul.f32 %v7601_v44, %v7013_v21  ;;  %v7208_v28 = vmax.f32 %v6363_v12, 0.0  ;;  %v6406_v52 = vadd.f32 %v13184_v31, %v10619_v29  ;;  %v7418_v25 = vld [vmem:[%s12954_s3 + $0x5d0] sm:$0xff] }
 0x2a5   : > { %v8579_v22 = vadd.f32 %v8578_v37, %v8187_v10  ;;  %v7798_v3 = vunpack.c.l.bf16 %v7417_v48  ;;  %v6365_v19 = vadd.f32 %v13185_v45, %v10619_v29  ;;  %v7797_v57 = vunpack.c.h.bf16 %v7416_v59 }
 0x2a6   : > { %v8384_v7 = vadd.f32 %v8383_v32, %v7993_v1  ;;  %v8188_v24 = vmul.f32 %v7796_v61, %v7208_v28  ;;  %v7210_v17 = vmax.f32 %v6406_v52, 0.0  ;;  %v6408_v51 = vadd.f32 %v13186_v0, %v10619_v29 }
 0x2a7   : > { %v7995_v38 = vmul.f32 %v7603_v9, %v7015_v15  ;;  %v7209_v36 = vmax.f32 %v6365_v19, 0.0  ;;  %v6445_v35 = vadd.f32 %v12553_v26, %v10535_v60  ;;  %v7604_v27 = vunpack.c.l.bf16 %v7320_v58  ;;  %v7419_v9 = vld [vmem:[%s12954_s3 + $0x5d8] sm:$0xff] }
 0x2a8   : > { %v8385_v47 = vadd.f32 %v8384_v7, %v7994_v5  ;;  %v8580_v11 = vadd.f32 %v8579_v22, %v8188_v24  ;;  %v7211_v53 = vmax.f32 %v6408_v51, 0.0  ;;  %v7799_v59 = vunpack.c.h.bf16 %v7417_v48  ;;  %v7322_v22 = vld [vmem:[%s12954_s3 + $0x2d0] sm:$0xff] }
 0x2a9   : > { %v8190_v54 = vmul.f32 %v7798_v3, %v7210_v17  ;;  %v8189_v44 = vmul.f32 %v7797_v57, %v7209_v36  ;;  %v7016_v20 = vmax.f32 %v6445_v35, 0.0  ;;  %v6488_v6 = vadd.f32 %v12555_v14, %v10535_v60  ;;  %v13187_v17 = vld [vmem:[#allocation8_spill] sm:$0xff]  ;;  %v7323_v35 = vld [vmem:[%s12954_s3 + $0x2d8] sm:$0xff] }
 0x2aa   : > { %v8386_v26 = vadd.f32 %v8385_v47, %v7995_v38  ;;  %v7606_v50 = vunpack.c.l.bf16 %v7321_v46  ;;  %v6447_v10 = vadd.f32 %v12562_v23, %v10535_v60  ;;  %v7605_v21 = vunpack.c.h.bf16 %v7320_v58 }
 0x2ab   : > { %v8581_v63 = vadd.f32 %v8580_v11, %v8189_v44  ;;  %v7996_v12 = vmul.f32 %v7604_v27, %v7016_v20  ;;  %v7018_v61 = vmax.f32 %v6488_v6, 0.0  ;;  %v6490_v48 = vadd.f32 %v12564_v16, %v10535_v60  ;;  %v7420_v44 = vld [vmem:[%s12954_s3 + $0x5e0] sm:$0xff] }
 0x2ac   : > { %v8191_v37 = vmul.f32 %v7799_v59, %v7211_v53  ;;  %v7017_v32 = vmax.f32 %v6447_v10, 0.0  ;;  %v6449_v14 = vadd.f32 %v12566_v40, %v10619_v29  ;;  %v7800_v15 = vunpack.c.l.bf16 %v7418_v25 }
 0x2ad   : > { %v8582_v5 = vadd.f32 %v8581_v63, %v8190_v54  ;;  %v8387_v1 = vadd.f32 %v8386_v26, %v7996_v12  ;;  %v7019_v23 = vmax.f32 %v6490_v48, 0.0  ;;  %v7607_v28 = vunpack.c.h.bf16 %v7321_v46 }
 0x2ae   : > { %v7998_v31 = vmul.f32 %v7606_v50, %v7018_v61  ;;  %v7997_v52 = vmul.f32 %v7605_v21, %v7017_v32  ;;  %v7212_v58 = vmax.f32 %v6449_v14, 0.0  ;;  %v6492_v16 = vadd.f32 %v12568_v30, %v10619_v29  ;;  %v13188_v21 = vld [vmem:[#allocation9_spill] sm:$0xff]  ;;  %v7421_v32 = vld [vmem:[%s12954_s3 + $0x5e8] sm:$0xff] }
 0x2af   : > { %v8583_v40 = vadd.f32 %v8582_v5, %v8191_v37  ;;  %v7802_v3 = vunpack.c.l.bf16 %v7419_v9  ;;  %v6451_v45 = vadd.f32 %v12575_v56, %v10619_v29  ;;  %v7801_v19 = vunpack.c.h.bf16 %v7418_v25 }
 0x2b0   : > { %v8388_v57 = vadd.f32 %v8387_v1, %v7997_v52  ;;  %v8192_v7 = vmul.f32 %v7800_v15, %v7212_v58  ;;  %v7214_v24 = vmax.f32 %v6492_v16, 0.0  ;;  %v6494_v0 = vadd.f32 %v13187_v17, %v10619_v29  ;;  %v7324_v52 = vld [vmem:[%s12954_s3 + $0x2e0] sm:$0xff] }
 0x2b1   : > { %v7999_v51 = vmul.f32 %v7607_v28, %v7019_v23  ;;  %v7213_v38 = vmax.f32 %v6451_v45, 0.0  ;;  %v6531_v30 = vadd.f32 %v12593_v4, %v10535_v60  ;;  %v7608_v36 = vunpack.c.l.bf16 %v7322_v22  ;;  %v13190_v28 = vld [vmem:[#allocation20_spill] sm:$0xff] }
 0x2b2   : > { %v8389_v27 = vadd.f32 %v8388_v57, %v7998_v31  ;;  %v8584_v46 = vadd.f32 %v8583_v40, %v8192_v7  ;;  %v7215_v56 = vmax.f32 %v6494_v0, 0.0  ;;  %v7803_v47 = vunpack.c.h.bf16 %v7419_v9  ;;  %v13192_v7 = vld [vmem:[#allocation22_spill] sm:$0xff] }
 0x2b3   : > { %v8194_v11 = vmul.f32 %v7802_v3, %v7214_v24  ;;  %v8193_v53 = vmul.f32 %v7801_v19, %v7213_v38  ;;  %v7020_v59 = vmax.f32 %v6531_v30, 0.0  ;;  %v6574_v54 = vadd.f32 %v12595_v39, %v10535_v60  ;;  %v13189_v39 = vld [vmem:[#allocation10_spill] sm:$0xff]  ;;  %v7325_v30 = vld [vmem:[%s12954_s3 + $0x2e8] sm:$0xff] }
 0x2b4   : > { %v8390_v4 = vadd.f32 %v8389_v27, %v7999_v51  ;;  %v7610_v20 = vunpack.c.l.bf16 %v7323_v35  ;;  %v6533_v6 = vadd.f32 %v12599_v42, %v10535_v60  ;;  %v7609_v25 = vunpack.c.h.bf16 %v7322_v22  ;;  %v13191_v22 = vld [vmem:[#allocation21_spill] sm:$0xff] }
 0x2b5   : > { %v8585_v26 = vadd.f32 %v8584_v46, %v8193_v53  ;;  %v8000_v50 = vmul.f32 %v7608_v36, %v7020_v59  ;;  %v7022_v10 = vmax.f32 %v6574_v54, 0.0  ;;  %v6576_v63 = vadd.f32 %v13188_v21, %v10535_v60  ;;  %v7422_v59 = vld [vmem:[%s12954_s3 + $0x5f0] sm:$0xff] }
 0x2b6   : > { %v8195_v12 = vmul.f32 %v7803_v47, %v7215_v56  ;;  %v7021_v61 = vmax.f32 %v6533_v6, 0.0  ;;  %v6535_v48 = vadd.f32 %v13189_v39, %v10619_v29  ;;  %v7804_v37 = vunpack.c.l.bf16 %v7420_v44 }
 0x2b7   : > { %v8586_v14 = vadd.f32 %v8585_v26, %v8194_v11  ;;  %v8391_v15 = vadd.f32 %v8390_v4, %v8000_v50  ;;  %v7023_v42 = vmax.f32 %v6576_v63, 0.0  ;;  %v7611_v9 = vunpack.c.h.bf16 %v7323_v35  ;;  %v7423_v63 = vld [vmem:[%s12954_s3 + $0x5f8] sm:$0xff] }
 0x2b8   : > { %v8002_v5 = vmul.f32 %v7610_v20, %v7022_v10  ;;  %v8001_v1 = vmul.f32 %v7609_v25, %v7021_v61  ;;  %v7216_v23 = vmax.f32 %v6535_v48, 0.0  ;;  %v6578_v31 = vadd.f32 %v13190_v28, %v10619_v29 }
 0x2b9   : > { %v8587_v58 = vadd.f32 %v8586_v14, %v8195_v12  ;;  %v7806_v16 = vunpack.c.l.bf16 %v7421_v32  ;;  %v6537_v40 = vadd.f32 %v13191_v22, %v10619_v29  ;;  %v7805_v3 = vunpack.c.h.bf16 %v7420_v44  ;;  %v13193_v14 = vld [vmem:[#allocation23_spill] sm:$0xff] }
 0x2ba   : > { %v8392_v45 = vadd.f32 %v8391_v15, %v8001_v1  ;;  %v8196_v19 = vmul.f32 %v7804_v37, %v7216_v23  ;;  %v7218_v57 = vmax.f32 %v6578_v31, 0.0  ;;  %v6580_v24 = vadd.f32 %v13192_v7, %v10619_v29  ;;  %v7326_v15 = vld [vmem:[%s12954_s3 + $0x2f0] sm:$0xff] }
 0x2bb   : > { %v8003_v17 = vmul.f32 %v7611_v9, %v7023_v42  ;;  %v7217_v0 = vmax.f32 %v6537_v40, 0.0  ;;  %v6617_v51 = vadd.f32 %v12632_v13, %v10535_v60  ;;  %v7612_v38 = vunpack.c.l.bf16 %v7324_v52  ;;  %v13194_v9 = vld [vmem:[#allocation11_spill] sm:$0xff] }
 0x2bc   : > { %v8393_v36 = vadd.f32 %v8392_v45, %v8002_v5  ;;  %v8588_v35 = vadd.f32 %v8587_v58, %v8196_v19  ;;  %v7219_v27 = vmax.f32 %v6580_v24, 0.0  ;;  %v7807_v46 = vunpack.c.h.bf16 %v7421_v32 }
 0x2bd   : > { %v8198_v56 = vmul.f32 %v7806_v16, %v7218_v57  ;;  %v8197_v47 = vmul.f32 %v7805_v3, %v7217_v0  ;;  %v7024_v11 = vmax.f32 %v6617_v51, 0.0  ;;  %v6660_v53 = vadd.f32 %v12634_v62, %v10535_v60  ;;  %v7327_v16 = vld [vmem:[%s12954_s3 + $0x2f8] sm:$0xff] }
 0x2be   : > { %v8394_v13 = vadd.f32 %v8393_v36, %v8003_v17  ;;  %v7614_v54 = vunpack.c.l.bf16 %v7325_v30  ;;  %v6619_v44 = vadd.f32 %v12636_v43, %v10535_v60  ;;  %v7613_v4 = vunpack.c.h.bf16 %v7324_v52  ;;  %v13195_v52 = vld [vmem:[#allocation24_spill] sm:$0xff] }
 0x2bf   : > { %v8589_v20 = vadd.f32 %v8588_v35, %v8197_v47  ;;  %v8004_v6 = vmul.f32 %v7612_v38, %v7024_v11  ;;  %v7026_v25 = vmax.f32 %v6660_v53, 0.0  ;;  %v6662_v26 = vadd.f32 %v12638_v55, %v10535_v60  ;;  %v13196_v11 = vld [vmem:[#allocation12_spill] sm:$0xff] }
 0x2c0   : > { %v8199_v50 = vmul.f32 %v7807_v46, %v7219_v27  ;;  %v7025_v10 = vmax.f32 %v6619_v44, 0.0  ;;  %v6621_v62 = vadd.f32 %v12645_v8, %v10619_v29  ;;  %v7808_v21 = vunpack.c.l.bf16 %v7422_v59 }
 0x2c1   : > { %v8590_v12 = vadd.f32 %v8589_v20, %v8198_v56  ;;  %v8395_v61 = vadd.f32 %v8394_v13, %v8004_v6  ;;  %v7027_v43 = vmax.f32 %v6662_v26, 0.0  ;;  %v7615_v39 = vunpack.c.h.bf16 %v7325_v30  ;;  %v7424_v30 = vld [vmem:[%s12954_s3 + $0x600] sm:$0xff] }
 0x2c2   : > { %v8006_v48 = vmul.f32 %v7614_v54, %v7026_v25  ;;  %v8005_v37 = vmul.f32 %v7613_v4, %v7025_v10  ;;  %v7220_v32 = vmax.f32 %v6621_v62, 0.0  ;;  %v6664_v55 = vadd.f32 %v13193_v14, %v10619_v29  ;;  %v7425_v4 = vld [vmem:[%s12954_s3 + $0x608] sm:$0xff]  ;;  %v13198_v62 = vld [vmem:[#allocation25_spill] sm:$0xff]  ;;  %v13199_v14 = vld [vmem:[#allocation26_spill] sm:$0xff] }
 0x2c3   : > { %v8591_v8 = vadd.f32 %v8590_v12, %v8199_v50  ;;  %v7810_v42 = vunpack.c.l.bf16 %v7423_v63  ;;  %v6623_v5 = vadd.f32 %v13194_v9, %v10619_v29  ;;  %v7809_v1 = vunpack.c.h.bf16 %v7422_v59 }
 0x2c4   : > { %v8396_v23 = vadd.f32 %v8395_v61, %v8005_v37  ;;  %v8200_v28 = vmul.f32 %v7808_v21, %v7220_v32  ;;  %v7222_v31 = vmax.f32 %v6664_v55, 0.0  ;;  %v6666_v58 = vadd.f32 %v13195_v52, %v10619_v29 }
 0x2c5   : > { %v8007_v22 = vmul.f32 %v7615_v39, %v7027_v43  ;;  %v7221_v40 = vmax.f32 %v6623_v5, 0.0  ;;  %v6703_v3 = vadd.f32 %v12669_v2, %v10535_v60  ;;  %v7616_v45 = vunpack.c.l.bf16 %v7326_v15 }
 0x2c6   : > { %v8397_v19 = vadd.f32 %v8396_v23, %v8006_v48  ;;  %v8592_v57 = vadd.f32 %v8591_v8, %v8200_v28  ;;  %v7223_v7 = vmax.f32 %v6666_v58, 0.0  ;;  %v7811_v24 = vunpack.c.h.bf16 %v7423_v63  ;;  %v7328_v63 = vld [vmem:[%s12954_s3 + $0x300] sm:$0xff] }
 0x2c7   : > { %v8201_v17 = vmul.f32 %v7809_v1, %v7221_v40  ;;  %v7028_v0 = vmax.f32 %v6703_v3, 0.0  ;;  %v6746_v51 = vadd.f32 %v12671_v34, %v10535_v60  ;;  %v7618_v38 = vunpack.c.l.bf16 %v7327_v16  ;;  %v13197_v34 = vld [vmem:[#allocation13_spill] sm:$0xff]  ;;  %v13200_v40 = vld [vmem:[#allocation14_spill] sm:$0xff] }
 0x2c8   : > { %v8398_v36 = vadd.f32 %v8397_v19, %v8007_v22  ;;  %v8202_v35 = vmul.f32 %v7810_v42, %v7222_v31  ;;  %v6705_v2 = vadd.f32 %v12675_v33, %v10535_v60  ;;  %v7617_v27 = vunpack.c.h.bf16 %v7326_v15 }
 0x2c9   : > { %v8593_v46 = vadd.f32 %v8592_v57, %v8201_v17  ;;  %v8008_v56 = vmul.f32 %v7616_v45, %v7028_v0  ;;  %v7030_v47 = vmax.f32 %v6746_v51, 0.0  ;;  %v6748_v53 = vadd.f32 %v13196_v11, %v10535_v60 }
 0x2ca   : > { %v8203_v59 = vmul.f32 %v7811_v24, %v7223_v7  ;;  %v7029_v13 = vmax.f32 %v6705_v2, 0.0  ;;  %v6707_v54 = vadd.f32 %v13197_v34, %v10619_v29  ;;  %v7812_v44 = vunpack.c.l.bf16 %v7424_v30  ;;  %v13201_v24 = vld [vmem:[#allocation15_spill] sm:$0xff] }
 0x2cb   : > { %v8594_v20 = vadd.f32 %v8593_v46, %v8202_v35  ;;  %v8399_v6 = vadd.f32 %v8398_v36, %v8008_v56  ;;  %v8010_v33 = vmul.f32 %v7618_v38, %v7030_v47  ;;  %v7619_v25 = vunpack.c.h.bf16 %v7327_v16  ;;  %v7426_v16 = vld [vmem:[%s12954_s3 + $0x610] sm:$0xff] }
 0x2cc   : > { %v8009_v26 = vmul.f32 %v7617_v27, %v7029_v13  ;;  %v7031_v50 = vmax.f32 %v6748_v53, 0.0  ;;  %v7224_v10 = vmax.f32 %v6707_v54, 0.0  ;;  %v6750_v21 = vadd.f32 %v13198_v62, %v10619_v29  ;;  %v13203_v27 = vld [vmem:[#allocation27_spill] sm:$0xff]  ;;  %v7427_v53 = vld [vmem:[%s12954_s3 + $0x618] sm:$0xff] }
 0x2cd   : > { %v8595_v12 = vadd.f32 %v8594_v20, %v8203_v59  ;;  %v7814_v61 = vunpack.c.l.bf16 %v7425_v4  ;;  %v6709_v43 = vadd.f32 %v12688_v49, %v10619_v29  ;;  %v7813_v39 = vunpack.c.h.bf16 %v7424_v30  ;;  %v7329_v49 = vld [vmem:[%s12954_s3 + $0x308] sm:$0xff]  ;;  %v13204_v59 = vld [vmem:[#allocation28_spill] sm:$0xff]  ;;  %v13205_v54 = vld [vmem:[#allocation29_spill] sm:$0xff] }
 0x2ce   : > { %v8400_v48 = vadd.f32 %v8399_v6, %v8009_v26  ;;  %v8204_v37 = vmul.f32 %v7812_v44, %v7224_v10  ;;  %v7226_v32 = vmax.f32 %v6750_v21, 0.0  ;;  %v6752_v55 = vadd.f32 %v13199_v14, %v10619_v29 }
 0x2cf   : > { %v7225_v15 = vmax.f32 %v6709_v43, 0.0  ;;  %v6789_v8 = vadd.f32 %v12706_v41, %v10535_v60  ;;  %v7620_v42 = vunpack.c.l.bf16 %v7328_v63  ;;  %v8011_v9 = vmul.f32 %v7619_v25, %v7031_v50 }
 0x2d0   : > { %v8401_v5 = vadd.f32 %v8400_v48, %v8010_v33  ;;  %v8596_v1 = vadd.f32 %v8595_v12, %v8204_v37  ;;  %v7815_v23 = vunpack.c.h.bf16 %v7425_v4  ;;  %v7227_v31 = vmax.f32 %v6752_v55, 0.0 }
 0x2d1   : > { %v8205_v28 = vmul.f32 %v7813_v39, %v7225_v15  ;;  %v7032_v52 = vmax.f32 %v6789_v8, 0.0  ;;  %v6832_v58 = vadd.f32 %v12708_v18, %v10535_v60  ;;  %v8206_v22 = vmul.f32 %v7814_v61, %v7226_v32  ;;  %v13202_v18 = vld [vmem:[#allocation16_spill] sm:$0xff] }
 0x2d2   : > { %v8402_v41 = vadd.f32 %v8401_v5, %v8011_v9  ;;  %v6791_v3 = vadd.f32 %v13200_v40, %v10535_v60  ;;  %v7621_v45 = vunpack.c.h.bf16 %v7328_v63  ;;  %v7622_v7 = vunpack.c.l.bf16 %v7329_v49 }
 0x2d3   : > { %v8597_v19 = vadd.f32 %v8596_v1, %v8205_v28  ;;  %v8012_v57 = vmul.f32 %v7620_v42, %v7032_v52  ;;  %v6834_v17 = vadd.f32 %v13201_v24, %v10535_v60  ;;  %v7034_v0 = vmax.f32 %v6832_v58, 0.0 }
 0x2d4   : > { %v7033_v51 = vmax.f32 %v6791_v3, 0.0  ;;  %v6793_v38 = vadd.f32 %v13202_v18, %v10619_v29  ;;  %v7816_v30 = vunpack.c.l.bf16 %v7426_v16  ;;  %v8207_v36 = vmul.f32 %v7815_v23, %v7227_v31 }
 0x2d5   : > { %v8598_v35 = vadd.f32 %v8597_v19, %v8206_v22  ;;  %v8403_v2 = vadd.f32 %v8402_v41, %v8012_v57  ;;  %v6836_v46 = vadd.f32 %v13203_v27, %v10619_v29  ;;  %v7035_v47 = vmax.f32 %v6834_v17, 0.0 }
 0x2d6   : > { %v8013_v56 = vmul.f32 %v7621_v45, %v7033_v51  ;;  %v7228_v11 = vmax.f32 %v6793_v38, 0.0  ;;  %v6795_v13 = vadd.f32 %v13204_v59, %v10619_v29  ;;  %v7817_v34 = vunpack.c.h.bf16 %v7426_v16 }
 0x2d7   : > { %v8599_v60 = vadd.f32 %v8598_v35, %v8207_v36  ;;  %v6838_v44 = vadd.f32 %v13205_v54, %v10619_v29  ;;  %v8014_v4 = vmul.f32 %v7622_v7, %v7034_v0  ;;  %v7623_v6 = vunpack.c.h.bf16 %v7329_v49 }
 0x2d8   : > { %v8208_v20 = vmul.f32 %v7816_v30, %v7228_v11  ;;  %v7230_v33 = vmax.f32 %v6836_v46, 0.0  ;;  %v7818_v25 = vunpack.c.l.bf16 %v7427_v53  ;;  %v7229_v26 = vmax.f32 %v6795_v13, 0.0 }
 0x2d9   : > { %v8404_v50 = vadd.f32 %v8403_v2, %v8013_v56  ;;  %v7819_v62 = vunpack.c.h.bf16 %v7427_v53  ;;  %v7231_v63 = vmax.f32 %v6838_v44, 0.0  ;;  %v8015_v12 = vmul.f32 %v7623_v6, %v7035_v47 }
 0x2da   : > { %v8600_v10 = vadd.f32 %v8599_v60, %v8208_v20  ;;  %v8209_v21 = vmul.f32 %v7817_v34, %v7229_v26  ;;  %v8210_v43 = vmul.f32 %v7818_v25, %v7230_v33  ;;  %v9851_v9 = vmov 0.0  }
 0x2db   : > { %v8405_v61 = vadd.f32 %v8404_v50, %v8014_v4  ;;  %v8211_v37 = vmul.f32 %v7819_v62, %v7231_v63  ;;  %250 = vst.msk [vmem:[%s243_s24] sm:$0x1] %vm249_vm2, %v9851_v9 }
 0x2dc   : > { %v8601_v39 = vadd.f32 %v8600_v10, %v8209_v21 }
 0x2dd   : > { %v8406_v48 = vadd.f32 %v8405_v61, %v8015_v12 }
 0x2de   : > { %v8602_v29 = vadd.f32 %v8601_v39, %v8210_v43 }
 0x2df   : > { %8407 = vadd.xlane.f32.xlu1 %v8406_v48 }
 0x2e0   : > { %v8603_v32 = vadd.f32 %v8602_v29, %v8211_v37 }
 0x2e2   : > { %v8606_v58 = vld [vmem:[%s243_s24] sm:$0x1] }
 0x2e3   : > { %8604 = vadd.xlane.f32.xlu1 %v8603_v32 }
 0x36c   : > { %v8408_v14 = vpop.xlane.xlu1 %8407 }
 0x36d   : > { %v8608_v15 = vsel %vm8607_vm1, %v8408_v14, 0.0 }
 0x370   : > { %v8605_v55 = vpop.xlane.xlu1 %8604 }
 0x371   : > { %v8609_v8 = vsel %vm8607_vm1, %v8605_v55, 0.0 }
 0x372   : > { %v8610_v42 = vadd.f32 %v8609_v8, %v8608_v15 }
 0x374   : > { %8611 = vadd.xlane.f32.xlu0 %v8610_v42 }
 0x401   : > { %v8612_v5 = vpop.xlane.xlu0 %8611 }
 0x402   : > { %v8613_v1 = vrot.slane %v8612_v5, 4 }
 0x404   : > { %v8614_v23 = vadd.f32 %v8613_v1, %v8612_v5 }
 0x406   : > { %v8615_v49 = vrot.slane %v8614_v23, 2 }
 0x408   : > { %v8616_v28 = vadd.f32 %v8615_v49, %v8614_v23 }
 0x40a   : > { %v8617_v31 = vrot.slane %v8616_v28, 1 }
 0x40c   : > { %v8618_v52 = vadd.f32 %v8617_v31, %v8616_v28 }
 0x40e   : > { %9202 = vpush %v8618_v52 }
 0x43f   : > { %s9203_s25 = spop %9202 }
 0x440   : > { %v8620_v16 = vstv %s9203_s25 }
 0x441   : > { %v8621_v41 = vadd.f32 %v8620_v16, %v8606_v58 }
 0x443   : > { %8623 = vst.msk [vmem:[%s243_s24] sm:$0x1] %vm249_vm2, %v8621_v41 }
 0x444 PF: > { %s14_s17 = sadd.s32 1, %s9848_s17   ;;  %s13206_s15 = smov %s9844_s16 }
 0x445   : > { %p11_p5 = scmp.ge.s32.totalorder %s14_s17, 4   ;;  %s13207_s16 = smov %s13209_s18 }
 0x447   :  { %13 = sbr.rel (!%p11_p5) target bundleno = 2 (0x2), region = 73 }

</bundles_post_ra>
